<compile_context>
chip_gen: v5e
topology: v5e:2x2
jax: 0.10.0
libtpu: 0.0.40
codegen_flags: <defaults>
</compile_context>

<pallas_src>
import functools

import jax
import jax.numpy as jnp
from jax.experimental import pallas as pl
from jax.experimental.pallas import tpu as pltpu

# ----------------------------- small CLIP config -----------------------------
B = 2                      # batch
C = 3                      # image channels
IMG = 16                   # image size
PATCH = 8                  # patch size -> 2x2 = 4 patches
V_SEQ = (IMG // PATCH) ** 2 + 1    # +1 class token = 5
V_SEQ_PAD = 8                      # pad to one full sublane tile
V_HIDDEN, V_HEADS, V_LAYERS, V_MLP = 32, 4, 2, 64
T_SEQ = 8
VOCAB = 64
T_HIDDEN, T_HEADS, T_LAYERS, T_MLP = 32, 4, 2, 64
PROJ = 16
LN_EPS = 1e-5


# ------------------------------- spec helpers ----------------------------------
def _const_spec(shape):
    """Whole-array block, same block every grid step (fetched once)."""
    nd = len(shape)
    return pl.BlockSpec(shape, lambda l, nd=nd: (0,) * nd)


def _stacked_spec(per_layer_shape):
    """Layer-stacked weight [L, *shape]; grid step l selects layer l's block."""
    nd = len(per_layer_shape)
    return pl.BlockSpec((1,) + tuple(per_layer_shape),
                        lambda l, nd=nd: (l,) + (0,) * nd)


# ------------------------------- math helpers ----------------------------------
def _layer_norm(x, g, b, eps):
    mean = jnp.mean(x, axis=-1, keepdims=True)
    var = jnp.mean(jnp.square(x - mean), axis=-1, keepdims=True)
    return (x - mean) * jax.lax.rsqrt(var + eps) * g + b


def _attn_bias(sp, real_seq, causal):
    """Additive attention bias built in-kernel (no (S,S) mask DMA)."""
    if real_seq == sp and not causal:
        return None
    rows = jax.lax.broadcasted_iota(jnp.int32, (sp, sp), 0)
    cols = jax.lax.broadcasted_iota(jnp.int32, (sp, sp), 1)
    bad = (cols > rows) if causal else (cols >= real_seq)
    if causal and real_seq < sp:
        bad = jnp.logical_or(bad, cols >= real_seq)
    return jnp.where(bad, -1e9, 0.0).astype(jnp.float32)


def _layer_view(refs):
    """Slice layer-l weights out of the (1, ...) stacked blocks."""
    (ln1_g, ln1_b, qkv_w, qkv_b, o_w, o_b, ln2_g, ln2_b,
     fc1_w, fc1_b, fc2_w, fc2_b) = refs
    return dict(ln1_g=ln1_g[0], ln1_b=ln1_b[0], qkv_w=qkv_w[0], qkv_b=qkv_b[0],
                o_w=o_w[0], o_b=o_b[0], ln2_g=ln2_g[0], ln2_b=ln2_b[0],
                fc1_w=fc1_w[0], fc1_b=fc1_b[0], fc2_w=fc2_w[0], fc2_b=fc2_b[0])


def _encoder_block(x, lw, *, batch, sp, heads, head_dim, bias, eps):
    """One CLIP encoder layer on [batch*sp, D] activations (everything in vregs/VMEM)."""
    d = heads * head_dim
    scale = float(head_dim) ** -0.5

    # LN1 + fused QKV projection (one wide 2D matmul)
    h = _layer_norm(x, lw["ln1_g"], lw["ln1_b"], eps)
    qkv = jnp.dot(h, lw["qkv_w"], preferred_element_type=jnp.float32) + lw["qkv_b"]
    qkv3 = qkv.reshape(batch, sp, 3 * d)             # sublane-aligned (sp == 8)

    # attention: batched over batch via 3D einsums; heads as a short static loop
    ctx_heads = []
    for hh in range(heads):
        c0 = hh * head_dim
        q = qkv3[:, :, c0:c0 + head_dim] * scale
        k = qkv3[:, :, d + c0:d + c0 + head_dim]
        v = qkv3[:, :, 2 * d + c0:2 * d + c0 + head_dim]
        s = jnp.einsum("bqd,bkd->bqk", q, k, preferred_element_type=jnp.float32)
        if bias is not None:
            s = s + bias
        s = s - jnp.max(s, axis=-1, keepdims=True)
        p = jnp.exp(s)
        p = p * pl.reciprocal(jnp.sum(p, axis=-1, keepdims=True), approx=True)
        ctx_heads.append(jnp.einsum("bqk,bkd->bqd", p, v,
                                    preferred_element_type=jnp.float32))
    ctx = jnp.concatenate(ctx_heads, axis=-1).reshape(batch * sp, d)

    # single out-projection + residual
    attn = jnp.dot(ctx, lw["o_w"], preferred_element_type=jnp.float32) + lw["o_b"]
    h1 = x + attn

    # LN2 + MLP (fc1 -> quick GELU -> fc2) + residual
    h2 = _layer_norm(h1, lw["ln2_g"], lw["ln2_b"], eps)
    f = jnp.dot(h2, lw["fc1_w"], preferred_element_type=jnp.float32) + lw["fc1_b"]
    f = f * jax.nn.sigmoid(1.702 * f)
    f = jnp.dot(f, lw["fc2_w"], preferred_element_type=jnp.float32) + lw["fc2_b"]
    return h1 + f


def _head_block(pooled, g, b, w, eps):
    """Final LN + projection (no bias) + L2 normalize."""
    hp = _layer_norm(pooled, g, b, eps)
    e = jnp.dot(hp, w, preferred_element_type=jnp.float32)
    ss = jnp.sum(e * e, axis=-1, keepdims=True)
    # F.normalize: x / max(||x||, 1e-12)  ==  x * rsqrt(max(||x||^2, 1e-24))
    return e * jax.lax.rsqrt(jnp.maximum(ss, 1e-24))


# --------------------------- fused vision-tower kernel -------------------------
def _vision_tower_kernel(patches_ref, patch_w_ref, cls_ref, pos_ref, preg_ref, preb_ref,
                         ln1_g, ln1_b, qkv_w, qkv_b, o_w, o_b, ln2_g, ln2_b,
                         fc1_w, fc1_b, fc2_w, fc2_b,
                         sel_ref, postg_ref, postb_ref, proj_ref,
                         out_ref, h_scr,
                         *, batch, sp, real_seq, heads, head_dim, num_layers, eps):
    l = pl.program_id(0)
    d = heads * head_dim

    # stem (patch embed + CLS + pos + pre-LN + zero padding rows), first step only
    @pl.when(l == 0)
    def _():
        w = patch_w_ref[...]
        preg, preb = preg_ref[...], preb_ref[...]
        row0 = _layer_norm(cls_ref[...] + pos_ref[0:1, :], preg, preb, eps)      # [1, D]
        pad = jnp.zeros((sp - real_seq, d), jnp.float32)
        for bi in range(batch):
            pe = jnp.dot(patches_ref[bi], w, preferred_element_type=jnp.float32)  # [NP, D]
            rows = _layer_norm(pe + pos_ref[1:real_seq, :], preg, preb, eps)
            base = bi * sp
            h_scr[base:base + 1, :] = row0
            h_scr[base + 1:base + real_seq, :] = rows
            h_scr[base + real_seq:base + sp, :] = pad

    # encoder layer l (weights for this step are layer l's stacked block)
    lw = _layer_view((ln1_g, ln1_b, qkv_w, qkv_b, o_w, o_b, ln2_g, ln2_b,
                      fc1_w, fc1_b, fc2_w, fc2_b))
    bias = _attn_bias(sp, real_seq, causal=False)      # mask padded key rows only
    h_new = _encoder_block(h_scr[...], lw, batch=batch, sp=sp, heads=heads,
                           head_dim=head_dim, bias=bias, eps=eps)
    h_scr[...] = h_new

    # head (CLS pool + post-LN + visual projection + L2 normalize), last step only
    @pl.when(l == num_layers - 1)
    def _():
        pooled = jnp.dot(sel_ref[...], h_new, preferred_element_type=jnp.float32)  # [B, D]
        out_ref[...] = _head_block(pooled, postg_ref[...], postb_ref[...],
                                   proj_ref[...], eps)


# ---------------------------- fused text-tower kernel --------------------------
def _text_tower_kernel(x_ref, sel_ref,
                       ln1_g, ln1_b, qkv_w, qkv_b, o_w, o_b, ln2_g, ln2_b,
                       fc1_w, fc1_b, fc2_w, fc2_b,
                       fing_ref, finb_ref, proj_ref,
                       out_ref, h_scr,
                       *, batch, sp, heads, head_dim, num_layers, eps):
    l = pl.program_id(0)

    @pl.when(l == 0)
    def _():
        h_scr[...] = x_ref[...]

    lw = _layer_view((ln1_g, ln1_b, qkv_w, qkv_b, o_w, o_b, ln2_g, ln2_b,
                      fc1_w, fc1_b, fc2_w, fc2_b))
    bias = _attn_bias(sp, sp, causal=True)             # causal mask built in-kernel
    h_new = _encoder_block(h_scr[...], lw, batch=batch, sp=sp, heads=heads,
                           head_dim=head_dim, bias=bias, eps=eps)
    h_scr[...] = h_new

    # head (EOS pool + final-LN + text projection + L2 normalize), last step only
    @pl.when(l == num_layers - 1)
    def _():
        pooled = jnp.dot(sel_ref[...], h_new, preferred_element_type=jnp.float32)  # [B, D]
        out_ref[...] = _head_block(pooled, fing_ref[...], finb_ref[...],
                                   proj_ref[...], eps)


# ------------------------------- tower wrappers --------------------------------
def _layer_specs(d, mlp):
    return [
        _stacked_spec((1, d)), _stacked_spec((1, d)),
        _stacked_spec((d, 3 * d)), _stacked_spec((1, 3 * d)),
        _stacked_spec((d, d)), _stacked_spec((1, d)),
        _stacked_spec((1, d)), _stacked_spec((1, d)),
        _stacked_spec((d, mlp)), _stacked_spec((1, mlp)),
        _stacked_spec((mlp, d)), _stacked_spec((1, d)),
    ]


def _layer_args(stk):
    return [stk["ln1_g"], stk["ln1_b"], stk["qkv_w"], stk["qkv_b"],
            stk["o_w"], stk["o_b"], stk["ln2_g"], stk["ln2_b"],
            stk["fc1_w"], stk["fc1_b"], stk["fc2_w"], stk["fc2_b"]]


def vision_encode(images, p):
    b, c, hh, ww = images.shape
    gh, gw = hh // PATCH, ww // PATCH
    np_, cpp = gh * gw, c * PATCH * PATCH
    d, sp, nlayers = V_HIDDEN, V_SEQ_PAD, V_LAYERS

    # patch unfold (stride==kernel conv rewritten as matmul) -- XLA glue, fuses under jit
    patches = images.reshape(b, c, gh, PATCH, gw, PATCH)
    patches = patches.transpose(0, 2, 4, 1, 3, 5).reshape(b, np_, cpp)
    # row-selection matrix picking the CLS row of each (padded) batch block
    sel = jax.nn.one_hot(jnp.arange(b) * sp, b * sp, dtype=jnp.float32)

    kernel = functools.partial(
        _vision_tower_kernel, batch=b, sp=sp, real_seq=V_SEQ, heads=V_HEADS,
        head_dim=d // V_HEADS, num_layers=nlayers, eps=LN_EPS)

    in_specs = ([
        _const_spec((b, np_, cpp)),
        _const_spec((cpp, d)),
        _const_spec((1, d)),
        _const_spec((V_SEQ, d)),
        _const_spec((1, d)), _const_spec((1, d)),
    ] + _layer_specs(d, V_MLP) + [
        _const_spec((b, b * sp)),
        _const_spec((1, d)), _const_spec((1, d)),
        _const_spec((d, PROJ)),
    ])
    args = ([patches, p["patch_w"], p["class_emb"], p["pos_emb"],
             p["pre_ln_g"], p["pre_ln_b"]]
            + _layer_args(p["layers"])
            + [sel, p["post_ln_g"], p["post_ln_b"], p["proj_w"]])

    return pl.pallas_call(
        kernel,
        out_shape=jax.ShapeDtypeStruct((b, PROJ), jnp.float32),
        grid=(nlayers,),
        in_specs=in_specs,
        out_specs=_const_spec((b, PROJ)),
        scratch_shapes=[pltpu.VMEM((b * sp, d), jnp.float32)],
        compiler_params=pltpu.CompilerParams(dimension_semantics=("arbitrary",)),
    )(*args)


def text_encode(ids, p):
    b, s = ids.shape
    d, nlayers = T_HIDDEN, T_LAYERS

    # token-embedding gather + positional add = XLA glue
    x = (p["tok_emb"][ids] + p["pos_emb"][None, :s, :]).reshape(b * s, d)
    # HF CLIP pooling: token at argmax(ids) (EOS) -> row-selection matrix
    eos_rows = jnp.arange(b) * s + jnp.argmax(ids, axis=-1)
    sel = jax.nn.one_hot(eos_rows, b * s, dtype=jnp.float32)

    kernel = functools.partial(
        _text_tower_kernel, batch=b, sp=s, heads=T_HEADS,
        head_dim=d // T_HEADS, num_layers=nlayers, eps=LN_EPS)

    in_specs = ([
        _const_spec((b * s, d)),
        _const_spec((b, b * s)),
    ] + _layer_specs(d, T_MLP) + [
        _const_spec((1, d)), _const_spec((1, d)),
        _const_spec((d, PROJ)),
    ])
    args = ([x, sel] + _layer_args(p["layers"])
            + [p["final_ln_g"], p["final_ln_b"], p["proj_w"]])

    return pl.pallas_call(
        kernel,
        out_shape=jax.ShapeDtypeStruct((b, PROJ), jnp.float32),
        grid=(nlayers,),
        in_specs=in_specs,
        out_specs=_const_spec((b, PROJ)),
        scratch_shapes=[pltpu.VMEM((b * s, d), jnp.float32)],
        compiler_params=pltpu.CompilerParams(dimension_semantics=("arbitrary",)),
    )(*args)


# TODO(synk): on v7x the two independent towers could run on separate TensorCores
# (pl.core_map over pltpu.create_tensorcore_mesh); kept single-core here so the same
# script runs on v5e/v6e/v7x.
@jax.jit
def clip_forward(images, ids, params):
    image_embeddings = vision_encode(images, params["vision"])
    text_embeddings = text_encode(ids, params["text"])
    return image_embeddings, text_embeddings


# ------------------------------- parameter init --------------------------------
def init_params(key):
    keys = iter(jax.random.split(key, 256))

    def nrm(shape, scale=0.02):
        return (scale * jax.random.normal(next(keys), shape)).astype(jnp.float32)

    def layer_params(hidden, mlp):
        # q/k/v fused at init into [hidden, 3*hidden] (q | k | v) + [1, 3*hidden] bias
        q_w, k_w, v_w = nrm((hidden, hidden)), nrm((hidden, hidden)), nrm((hidden, hidden))
        return dict(
            ln1_g=jnp.ones((1, hidden), jnp.float32), ln1_b=jnp.zeros((1, hidden), jnp.float32),
            qkv_w=jnp.concatenate([q_w, k_w, v_w], axis=1),
            qkv_b=jnp.zeros((1, 3 * hidden), jnp.float32),
            o_w=nrm((hidden, hidden)), o_b=jnp.zeros((1, hidden), jnp.float32),
            ln2_g=jnp.ones((1, hidden), jnp.float32), ln2_b=jnp.zeros((1, hidden), jnp.float32),
            fc1_w=nrm((hidden, mlp)), fc1_b=jnp.zeros((1, mlp), jnp.float32),
            fc2_w=nrm((mlp, hidden)), fc2_b=jnp.zeros((1, hidden), jnp.float32),
        )

    def stack_layers(layer_list):
        # stack per-layer weights along a leading L axis for the grid=(L,) kernels
        return {k: jnp.stack([lyr[k] for lyr in layer_list], axis=0)
                for k in layer_list[0]}

    vision = dict(
        patch_w=nrm((C * PATCH * PATCH, V_HIDDEN)),       # conv has no bias in CLIP
        class_emb=nrm((1, V_HIDDEN)),
        pos_emb=nrm((V_SEQ, V_HIDDEN)),
        pre_ln_g=jnp.ones((1, V_HIDDEN), jnp.float32),
        pre_ln_b=jnp.zeros((1, V_HIDDEN), jnp.float32),
        layers=stack_layers([layer_params(V_HIDDEN, V_MLP) for _ in range(V_LAYERS)]),
        post_ln_g=jnp.ones((1, V_HIDDEN), jnp.float32),
        post_ln_b=jnp.zeros((1, V_HIDDEN), jnp.float32),
        proj_w=nrm((V_HIDDEN, PROJ)),                     # visual_projection (no bias)
    )
    text = dict(
        tok_emb=nrm((VOCAB, T_HIDDEN)),
        pos_emb=nrm((T_SEQ, T_HIDDEN)),
        layers=stack_layers([layer_params(T_HIDDEN, T_MLP) for _ in range(T_LAYERS)]),
        final_ln_g=jnp.ones((1, T_HIDDEN), jnp.float32),
        final_ln_b=jnp.zeros((1, T_HIDDEN), jnp.float32),
        proj_w=nrm((T_HIDDEN, PROJ)),                     # text_projection (no bias)
    )
    # TODO(synk): logit_scale exists in the module but is unused by forward(); omitted here.
    return dict(vision=vision, text=text)


# ------------------------------------ main --------------------------------------
if __name__ == "__main__":
    key = jax.random.PRNGKey(0)
    k_img, k_ids, k_par = jax.random.split(key, 3)

    images = jax.random.normal(k_img, (B, C, IMG, IMG), dtype=jnp.float32)  # NCHW
    ids = jax.random.randint(k_ids, (B, T_SEQ), 1, VOCAB - 1, dtype=jnp.int32)
    ids = ids.at[:, -1].set(VOCAB - 1)  # EOS-like max token at the end (argmax pooling)

    params = init_params(k_par)

    img_emb, txt_emb = clip_forward(images, ids, params)
    jax.block_until_ready((img_emb, txt_emb))

    assert img_emb.shape == (B, PROJ) and txt_emb.shape == (B, PROJ)
    assert bool(jnp.all(jnp.isfinite(img_emb))) and bool(jnp.all(jnp.isfinite(txt_emb)))
    print("KERNEL_OK")
</pallas_src>

<mosaic_0001>
module attributes {stable_mosaic.version = 11 : i64} {
  func.func @_text_tower_kernel(%arg0: i32, %arg1: memref<16x32xf32, #tpu.memory_space<vmem>>, %arg2: memref<2x16xf32, #tpu.memory_space<vmem>>, %arg3: memref<1x1x32xf32, #tpu.memory_space<vmem>>, %arg4: memref<1x1x32xf32, #tpu.memory_space<vmem>>, %arg5: memref<1x32x96xf32, #tpu.memory_space<vmem>>, %arg6: memref<1x1x96xf32, #tpu.memory_space<vmem>>, %arg7: memref<1x32x32xf32, #tpu.memory_space<vmem>>, %arg8: memref<1x1x32xf32, #tpu.memory_space<vmem>>, %arg9: memref<1x1x32xf32, #tpu.memory_space<vmem>>, %arg10: memref<1x1x32xf32, #tpu.memory_space<vmem>>, %arg11: memref<1x32x64xf32, #tpu.memory_space<vmem>>, %arg12: memref<1x1x64xf32, #tpu.memory_space<vmem>>, %arg13: memref<1x64x32xf32, #tpu.memory_space<vmem>>, %arg14: memref<1x1x32xf32, #tpu.memory_space<vmem>>, %arg15: memref<1x32xf32, #tpu.memory_space<vmem>>, %arg16: memref<1x32xf32, #tpu.memory_space<vmem>>, %arg17: memref<32x16xf32, #tpu.memory_space<vmem>>, %arg18: memref<2x16xf32, #tpu.memory_space<vmem>>, %arg19: memref<16x32xf32, #tpu.memory_space<vmem>>) attributes {dimension_semantics = [#tpu.dimension_semantics<arbitrary>], iteration_bounds = array<i64: 2>, scalar_prefetch = 0 : i64, scratch_operands = 1 : i64, tpu.core_type = #tpu.core_type<tc>, window_params = [{pipeline_mode = #tpu.pipeline_mode<synchronous>, transform_indices = @transform_0, window_bounds = array<i64: 16, 32>}, {pipeline_mode = #tpu.pipeline_mode<synchronous>, transform_indices = @transform_1, window_bounds = array<i64: 2, 16>}, {transform_indices = @transform_2, window_bounds = array<i64: 1, 1, 32>}, {transform_indices = @transform_3, window_bounds = array<i64: 1, 1, 32>}, {transform_indices = @transform_4, window_bounds = array<i64: 1, 32, 96>}, {transform_indices = @transform_5, window_bounds = array<i64: 1, 1, 96>}, {transform_indices = @transform_6, window_bounds = array<i64: 1, 32, 32>}, {transform_indices = @transform_7, window_bounds = array<i64: 1, 1, 32>}, {transform_indices = @transform_8, window_bounds = array<i64: 1, 1, 32>}, {transform_indices = @transform_9, window_bounds = array<i64: 1, 1, 32>}, {transform_indices = @transform_10, window_bounds = array<i64: 1, 32, 64>}, {transform_indices = @transform_11, window_bounds = array<i64: 1, 1, 64>}, {transform_indices = @transform_12, window_bounds = array<i64: 1, 64, 32>}, {transform_indices = @transform_13, window_bounds = array<i64: 1, 1, 32>}, {pipeline_mode = #tpu.pipeline_mode<synchronous>, transform_indices = @transform_14, window_bounds = array<i64: 1, 32>}, {pipeline_mode = #tpu.pipeline_mode<synchronous>, transform_indices = @transform_15, window_bounds = array<i64: 1, 32>}, {pipeline_mode = #tpu.pipeline_mode<synchronous>, transform_indices = @transform_16, window_bounds = array<i64: 32, 16>}, {pipeline_mode = #tpu.pipeline_mode<synchronous>, transform_indices = @transform_17, window_bounds = array<i64: 2, 16>}]} {
    %c0_i32 = arith.constant 0 : i32
    %0 = arith.cmpi eq, %arg0, %c0_i32 : i32
    %1 = arith.extui %0 : i1 to i32
    %c0_i32_0 = arith.constant 0 : i32
    %2 = arith.cmpi ne, %1, %c0_i32_0 : i32
    scf.if %2 {
      %c0_78 = arith.constant 0 : index
      %c0_79 = arith.constant 0 : index
      %187 = vector.load %arg1[%c0_78, %c0_79] : memref<16x32xf32, #tpu.memory_space<vmem>>, vector<16x32xf32>
      %c0_80 = arith.constant 0 : index
      %c0_81 = arith.constant 0 : index
      %188 = vector.load %arg19[%c0_80, %c0_81] : memref<16x32xf32, #tpu.memory_space<vmem>>, vector<16x32xf32>
      tpu.vector_store %arg19[%c0_80, %c0_81], %187 {strides = array<i32>} : memref<16x32xf32, #tpu.memory_space<vmem>>, vector<16x32xf32>,
    } else {
    }
    %c0 = arith.constant 0 : index
    %c0_1 = arith.constant 0 : index
    %c0_2 = arith.constant 0 : index
    %3 = vector.load %arg3[%c0, %c0_1, %c0_2] : memref<1x1x32xf32, #tpu.memory_space<vmem>>, vector<1x1x32xf32>
    %4 = vector.shape_cast %3 : vector<1x1x32xf32> to vector<1x32xf32>
    %c0_3 = arith.constant 0 : index
    %c0_4 = arith.constant 0 : index
    %c0_5 = arith.constant 0 : index
    %5 = vector.load %arg4[%c0_3, %c0_4, %c0_5] : memref<1x1x32xf32, #tpu.memory_space<vmem>>, vector<1x1x32xf32>
    %6 = vector.shape_cast %5 : vector<1x1x32xf32> to vector<1x32xf32>
    %c0_6 = arith.constant 0 : index
    %c0_7 = arith.constant 0 : index
    %c0_8 = arith.constant 0 : index
    %7 = vector.load %arg5[%c0_6, %c0_7, %c0_8] : memref<1x32x96xf32, #tpu.memory_space<vmem>>, vector<1x32x96xf32>
    %8 = vector.shape_cast %7 : vector<1x32x96xf32> to vector<32x96xf32>
    %c0_9 = arith.constant 0 : index
    %c0_10 = arith.constant 0 : index
    %c0_11 = arith.constant 0 : index
    %9 = vector.load %arg6[%c0_9, %c0_10, %c0_11] : memref<1x1x96xf32, #tpu.memory_space<vmem>>, vector<1x1x96xf32>
    %10 = vector.shape_cast %9 : vector<1x1x96xf32> to vector<1x96xf32>
    %c0_12 = arith.constant 0 : index
    %c0_13 = arith.constant 0 : index
    %c0_14 = arith.constant 0 : index
    %11 = vector.load %arg7[%c0_12, %c0_13, %c0_14] : memref<1x32x32xf32, #tpu.memory_space<vmem>>, vector<1x32x32xf32>
    %12 = vector.shape_cast %11 : vector<1x32x32xf32> to vector<32x32xf32>
    %c0_15 = arith.constant 0 : index
    %c0_16 = arith.constant 0 : index
    %c0_17 = arith.constant 0 : index
    %13 = vector.load %arg8[%c0_15, %c0_16, %c0_17] : memref<1x1x32xf32, #tpu.memory_space<vmem>>, vector<1x1x32xf32>
    %14 = vector.shape_cast %13 : vector<1x1x32xf32> to vector<1x32xf32>
    %c0_18 = arith.constant 0 : index
    %c0_19 = arith.constant 0 : index
    %c0_20 = arith.constant 0 : index
    %15 = vector.load %arg9[%c0_18, %c0_19, %c0_20] : memref<1x1x32xf32, #tpu.memory_space<vmem>>, vector<1x1x32xf32>
    %16 = vector.shape_cast %15 : vector<1x1x32xf32> to vector<1x32xf32>
    %c0_21 = arith.constant 0 : index
    %c0_22 = arith.constant 0 : index
    %c0_23 = arith.constant 0 : index
    %17 = vector.load %arg10[%c0_21, %c0_22, %c0_23] : memref<1x1x32xf32, #tpu.memory_space<vmem>>, vector<1x1x32xf32>
    %18 = vector.shape_cast %17 : vector<1x1x32xf32> to vector<1x32xf32>
    %c0_24 = arith.constant 0 : index
    %c0_25 = arith.constant 0 : index
    %c0_26 = arith.constant 0 : index
    %19 = vector.load %arg11[%c0_24, %c0_25, %c0_26] : memref<1x32x64xf32, #tpu.memory_space<vmem>>, vector<1x32x64xf32>
    %20 = vector.shape_cast %19 : vector<1x32x64xf32> to vector<32x64xf32>
    %c0_27 = arith.constant 0 : index
    %c0_28 = arith.constant 0 : index
    %c0_29 = arith.constant 0 : index
    %21 = vector.load %arg12[%c0_27, %c0_28, %c0_29] : memref<1x1x64xf32, #tpu.memory_space<vmem>>, vector<1x1x64xf32>
    %22 = vector.shape_cast %21 : vector<1x1x64xf32> to vector<1x64xf32>
    %c0_30 = arith.constant 0 : index
    %c0_31 = arith.constant 0 : index
    %c0_32 = arith.constant 0 : index
    %23 = vector.load %arg13[%c0_30, %c0_31, %c0_32] : memref<1x64x32xf32, #tpu.memory_space<vmem>>, vector<1x64x32xf32>
    %24 = vector.shape_cast %23 : vector<1x64x32xf32> to vector<64x32xf32>
    %c0_33 = arith.constant 0 : index
    %c0_34 = arith.constant 0 : index
    %c0_35 = arith.constant 0 : index
    %25 = vector.load %arg14[%c0_33, %c0_34, %c0_35] : memref<1x1x32xf32, #tpu.memory_space<vmem>>, vector<1x1x32xf32>
    %26 = vector.shape_cast %25 : vector<1x1x32xf32> to vector<1x32xf32>
    %27 = tpu.iota {dimensions = array<i32: 0>} : vector<8x8xi32>
    %28 = tpu.iota {dimensions = array<i32: 1>} : vector<8x8xi32>
    %29 = arith.cmpi sgt, %28, %27 : vector<8x8xi32>
    %cst = arith.constant -1.000000e+09 : f32
    %cst_36 = arith.constant 0.000000e+00 : f32
    %30 = vector.broadcast %cst : f32 to vector<8x8xf32>
    %31 = vector.broadcast %cst_36 : f32 to vector<8x8xf32>
    %32 = arith.select %29, %30, %31 : vector<8x8xi1>, vector<8x8xf32>
    %c0_37 = arith.constant 0 : index
    %c0_38 = arith.constant 0 : index
    %33 = vector.load %arg19[%c0_37, %c0_38] : memref<16x32xf32, #tpu.memory_space<vmem>>, vector<16x32xf32>
    %cst_39 = arith.constant dense<0.000000e+00> : vector<16xf32>
    %34 = vector.multi_reduction <add>, %33, %cst_39 [1] : vector<16x32xf32> to vector<16xf32>
    %35 = vector.shape_cast %34 : vector<16xf32> to vector<16x1xf32>
    %cst_40 = arith.constant 3.200000e+01 : f32
    %36 = vector.broadcast %cst_40 : f32 to vector<16x1xf32>
    %37 = arith.divf %35, %36 : vector<16x1xf32>
    %38 = vector.broadcast %37 : vector<16x1xf32> to vector<16x32xf32>
    %39 = arith.subf %33, %38 : vector<16x32xf32>
    %40 = arith.mulf %39, %39 : vector<16x32xf32>
    %cst_41 = arith.constant dense<0.000000e+00> : vector<16xf32>
    %41 = vector.multi_reduction <add>, %40, %cst_41 [1] : vector<16x32xf32> to vector<16xf32>
    %42 = vector.shape_cast %41 : vector<16xf32> to vector<16x1xf32>
    %cst_42 = arith.constant 3.200000e+01 : f32
    %43 = vector.broadcast %cst_42 : f32 to vector<16x1xf32>
    %44 = arith.divf %42, %43 : vector<16x1xf32>
    %45 = vector.broadcast %37 : vector<16x1xf32> to vector<16x32xf32>
    %46 = arith.subf %33, %45 : vector<16x32xf32>
    %cst_43 = arith.constant 9.99999974E-6 : f32
    %47 = vector.broadcast %cst_43 : f32 to vector<16x1xf32>
    %48 = arith.addf %44, %47 : vector<16x1xf32>
    %49 = math.rsqrt %48 : vector<16x1xf32>
    %50 = vector.broadcast %49 : vector<16x1xf32> to vector<16x32xf32>
    %51 = arith.mulf %46, %50 : vector<16x32xf32>
    %52 = vector.broadcast %4 : vector<1x32xf32> to vector<16x32xf32>
    %53 = arith.mulf %51, %52 : vector<16x32xf32>
    %54 = vector.broadcast %6 : vector<1x32xf32> to vector<16x32xf32>
    %55 = arith.addf %53, %54 : vector<16x32xf32>
    %cst_44 = arith.constant dense<0.000000e+00> : vector<16x96xf32>
    %56 = tpu.matmul %55, %8, %cst_44 {dimension_numbers = #tpu.dot_dimension_numbers<[1], [0], [0], [1], [0, 0, 1, 1], [], []>} : vector<16x32xf32>, vector<32x96xf32>, vector<16x96xf32> -> vector<16x96xf32>
    %57 = vector.broadcast %10 : vector<1x96xf32> to vector<16x96xf32>
    %58 = arith.addf %56, %57 : vector<16x96xf32>
    %59 = vector.shape_cast %58 : vector<16x96xf32> to vector<2x8x96xf32>
    %60 = vector.extract_strided_slice %59 {offsets = [0, 0, 0], sizes = [2, 8, 8], strides = [1, 1, 1]} : vector<2x8x96xf32> to vector<2x8x8xf32>
    %cst_45 = arith.constant 0.353553385 : f32
    %61 = vector.broadcast %cst_45 : f32 to vector<2x8x8xf32>
    %62 = arith.mulf %60, %61 : vector<2x8x8xf32>
    %63 = vector.extract_strided_slice %59 {offsets = [0, 0, 32], sizes = [2, 8, 8], strides = [1, 1, 1]} : vector<2x8x96xf32> to vector<2x8x8xf32>
    %64 = vector.extract_strided_slice %59 {offsets = [0, 0, 64], sizes = [2, 8, 8], strides = [1, 1, 1]} : vector<2x8x96xf32> to vector<2x8x8xf32>
    "tpu.trace_start"() <{level = 10 : i32, message = "bqd,bkd->bqk"}> : () -> ()
    %cst_46 = arith.constant dense<0.000000e+00> : vector<2x8x8xf32>
    %65 = tpu.matmul %62, %63, %cst_46 {dimension_numbers = #tpu.dot_dimension_numbers<[2], [2], [1], [1], [0, 0, 0, 1, 1, 1], [0], [0]>} : vector<2x8x8xf32>, vector<2x8x8xf32>, vector<2x8x8xf32> -> vector<2x8x8xf32>
    "tpu.trace_stop"() : () -> ()
    %66 = vector.shape_cast %32 : vector<8x8xf32> to vector<1x8x8xf32>
    %67 = vector.broadcast %66 : vector<1x8x8xf32> to vector<2x8x8xf32>
    %68 = arith.addf %65, %67 : vector<2x8x8xf32>
    %cst_47 = arith.constant dense<0xFF800000> : vector<2x8xf32>
    %69 = vector.multi_reduction <maximumf>, %68, %cst_47 [2] : vector<2x8x8xf32> to vector<2x8xf32>
    %70 = vector.shape_cast %69 : vector<2x8xf32> to vector<2x8x1xf32>
    %71 = vector.broadcast %70 : vector<2x8x1xf32> to vector<2x8x8xf32>
    %72 = arith.subf %68, %71 : vector<2x8x8xf32>
    %73 = math.exp %72 : vector<2x8x8xf32>
    %cst_48 = arith.constant dense<0.000000e+00> : vector<2x8xf32>
    %74 = vector.multi_reduction <add>, %73, %cst_48 [2] : vector<2x8x8xf32> to vector<2x8xf32>
    %75 = vector.shape_cast %74 : vector<2x8xf32> to vector<2x8x1xf32>
    %76 = tpu.reciprocal %75 {approx = true} : vector<2x8x1xf32> -> vector<2x8x1xf32>
    %77 = vector.broadcast %76 : vector<2x8x1xf32> to vector<2x8x8xf32>
    %78 = arith.mulf %73, %77 : vector<2x8x8xf32>
    "tpu.trace_start"() <{level = 10 : i32, message = "bqk,bkd->bqd"}> : () -> ()
    %cst_49 = arith.constant dense<0.000000e+00> : vector<2x8x8xf32>
    %79 = tpu.matmul %78, %64, %cst_49 {dimension_numbers = #tpu.dot_dimension_numbers<[2], [1], [1], [2], [0, 0, 0, 1, 1, 2], [0], [0]>} : vector<2x8x8xf32>, vector<2x8x8xf32>, vector<2x8x8xf32> -> vector<2x8x8xf32>
    "tpu.trace_stop"() : () -> ()
    %80 = vector.extract_strided_slice %59 {offsets = [0, 0, 8], sizes = [2, 8, 8], strides = [1, 1, 1]} : vector<2x8x96xf32> to vector<2x8x8xf32>
    %cst_50 = arith.constant 0.353553385 : f32
    %81 = vector.broadcast %cst_50 : f32 to vector<2x8x8xf32>
    %82 = arith.mulf %80, %81 : vector<2x8x8xf32>
    %83 = vector.extract_strided_slice %59 {offsets = [0, 0, 40], sizes = [2, 8, 8], strides = [1, 1, 1]} : vector<2x8x96xf32> to vector<2x8x8xf32>
    %84 = vector.extract_strided_slice %59 {offsets = [0, 0, 72], sizes = [2, 8, 8], strides = [1, 1, 1]} : vector<2x8x96xf32> to vector<2x8x8xf32>
    "tpu.trace_start"() <{level = 10 : i32, message = "bqd,bkd->bqk"}> : () -> ()
    %cst_51 = arith.constant dense<0.000000e+00> : vector<2x8x8xf32>
    %85 = tpu.matmul %82, %83, %cst_51 {dimension_numbers = #tpu.dot_dimension_numbers<[2], [2], [1], [1], [0, 0, 0, 1, 1, 1], [0], [0]>} : vector<2x8x8xf32>, vector<2x8x8xf32>, vector<2x8x8xf32> -> vector<2x8x8xf32>
    "tpu.trace_stop"() : () -> ()
    %86 = vector.shape_cast %32 : vector<8x8xf32> to vector<1x8x8xf32>
    %87 = vector.broadcast %86 : vector<1x8x8xf32> to vector<2x8x8xf32>
    %88 = arith.addf %85, %87 : vector<2x8x8xf32>
    %cst_52 = arith.constant dense<0xFF800000> : vector<2x8xf32>
    %89 = vector.multi_reduction <maximumf>, %88, %cst_52 [2] : vector<2x8x8xf32> to vector<2x8xf32>
    %90 = vector.shape_cast %89 : vector<2x8xf32> to vector<2x8x1xf32>
    %91 = vector.broadcast %90 : vector<2x8x1xf32> to vector<2x8x8xf32>
    %92 = arith.subf %88, %91 : vector<2x8x8xf32>
    %93 = math.exp %92 : vector<2x8x8xf32>
    %cst_53 = arith.constant dense<0.000000e+00> : vector<2x8xf32>
    %94 = vector.multi_reduction <add>, %93, %cst_53 [2] : vector<2x8x8xf32> to vector<2x8xf32>
    %95 = vector.shape_cast %94 : vector<2x8xf32> to vector<2x8x1xf32>
    %96 = tpu.reciprocal %95 {approx = true} : vector<2x8x1xf32> -> vector<2x8x1xf32>
    %97 = vector.broadcast %96 : vector<2x8x1xf32> to vector<2x8x8xf32>
    %98 = arith.mulf %93, %97 : vector<2x8x8xf32>
    "tpu.trace_start"() <{level = 10 : i32, message = "bqk,bkd->bqd"}> : () -> ()
    %cst_54 = arith.constant dense<0.000000e+00> : vector<2x8x8xf32>
    %99 = tpu.matmul %98, %84, %cst_54 {dimension_numbers = #tpu.dot_dimension_numbers<[2], [1], [1], [2], [0, 0, 0, 1, 1, 2], [0], [0]>} : vector<2x8x8xf32>, vector<2x8x8xf32>, vector<2x8x8xf32> -> vector<2x8x8xf32>
    "tpu.trace_stop"() : () -> ()
    %100 = vector.extract_strided_slice %59 {offsets = [0, 0, 16], sizes = [2, 8, 8], strides = [1, 1, 1]} : vector<2x8x96xf32> to vector<2x8x8xf32>
    %cst_55 = arith.constant 0.353553385 : f32
    %101 = vector.broadcast %cst_55 : f32 to vector<2x8x8xf32>
    %102 = arith.mulf %100, %101 : vector<2x8x8xf32>
    %103 = vector.extract_strided_slice %59 {offsets = [0, 0, 48], sizes = [2, 8, 8], strides = [1, 1, 1]} : vector<2x8x96xf32> to vector<2x8x8xf32>
    %104 = vector.extract_strided_slice %59 {offsets = [0, 0, 80], sizes = [2, 8, 8], strides = [1, 1, 1]} : vector<2x8x96xf32> to vector<2x8x8xf32>
    "tpu.trace_start"() <{level = 10 : i32, message = "bqd,bkd->bqk"}> : () -> ()
    %cst_56 = arith.constant dense<0.000000e+00> : vector<2x8x8xf32>
    %105 = tpu.matmul %102, %103, %cst_56 {dimension_numbers = #tpu.dot_dimension_numbers<[2], [2], [1], [1], [0, 0, 0, 1, 1, 1], [0], [0]>} : vector<2x8x8xf32>, vector<2x8x8xf32>, vector<2x8x8xf32> -> vector<2x8x8xf32>
    "tpu.trace_stop"() : () -> ()
    %106 = vector.shape_cast %32 : vector<8x8xf32> to vector<1x8x8xf32>
    %107 = vector.broadcast %106 : vector<1x8x8xf32> to vector<2x8x8xf32>
    %108 = arith.addf %105, %107 : vector<2x8x8xf32>
    %cst_57 = arith.constant dense<0xFF800000> : vector<2x8xf32>
    %109 = vector.multi_reduction <maximumf>, %108, %cst_57 [2] : vector<2x8x8xf32> to vector<2x8xf32>
    %110 = vector.shape_cast %109 : vector<2x8xf32> to vector<2x8x1xf32>
    %111 = vector.broadcast %110 : vector<2x8x1xf32> to vector<2x8x8xf32>
    %112 = arith.subf %108, %111 : vector<2x8x8xf32>
    %113 = math.exp %112 : vector<2x8x8xf32>
    %cst_58 = arith.constant dense<0.000000e+00> : vector<2x8xf32>
    %114 = vector.multi_reduction <add>, %113, %cst_58 [2] : vector<2x8x8xf32> to vector<2x8xf32>
    %115 = vector.shape_cast %114 : vector<2x8xf32> to vector<2x8x1xf32>
    %116 = tpu.reciprocal %115 {approx = true} : vector<2x8x1xf32> -> vector<2x8x1xf32>
    %117 = vector.broadcast %116 : vector<2x8x1xf32> to vector<2x8x8xf32>
    %118 = arith.mulf %113, %117 : vector<2x8x8xf32>
    "tpu.trace_start"() <{level = 10 : i32, message = "bqk,bkd->bqd"}> : () -> ()
    %cst_59 = arith.constant dense<0.000000e+00> : vector<2x8x8xf32>
    %119 = tpu.matmul %118, %104, %cst_59 {dimension_numbers = #tpu.dot_dimension_numbers<[2], [1], [1], [2], [0, 0, 0, 1, 1, 2], [0], [0]>} : vector<2x8x8xf32>, vector<2x8x8xf32>, vector<2x8x8xf32> -> vector<2x8x8xf32>
    "tpu.trace_stop"() : () -> ()
    %120 = vector.extract_strided_slice %59 {offsets = [0, 0, 24], sizes = [2, 8, 8], strides = [1, 1, 1]} : vector<2x8x96xf32> to vector<2x8x8xf32>
    %cst_60 = arith.constant 0.353553385 : f32
    %121 = vector.broadcast %cst_60 : f32 to vector<2x8x8xf32>
    %122 = arith.mulf %120, %121 : vector<2x8x8xf32>
    %123 = vector.extract_strided_slice %59 {offsets = [0, 0, 56], sizes = [2, 8, 8], strides = [1, 1, 1]} : vector<2x8x96xf32> to vector<2x8x8xf32>
    %124 = vector.extract_strided_slice %59 {offsets = [0, 0, 88], sizes = [2, 8, 8], strides = [1, 1, 1]} : vector<2x8x96xf32> to vector<2x8x8xf32>
    "tpu.trace_start"() <{level = 10 : i32, message = "bqd,bkd->bqk"}> : () -> ()
    %cst_61 = arith.constant dense<0.000000e+00> : vector<2x8x8xf32>
    %125 = tpu.matmul %122, %123, %cst_61 {dimension_numbers = #tpu.dot_dimension_numbers<[2], [2], [1], [1], [0, 0, 0, 1, 1, 1], [0], [0]>} : vector<2x8x8xf32>, vector<2x8x8xf32>, vector<2x8x8xf32> -> vector<2x8x8xf32>
    "tpu.trace_stop"() : () -> ()
    %126 = vector.shape_cast %32 : vector<8x8xf32> to vector<1x8x8xf32>
    %127 = vector.broadcast %126 : vector<1x8x8xf32> to vector<2x8x8xf32>
    %128 = arith.addf %125, %127 : vector<2x8x8xf32>
    %cst_62 = arith.constant dense<0xFF800000> : vector<2x8xf32>
    %129 = vector.multi_reduction <maximumf>, %128, %cst_62 [2] : vector<2x8x8xf32> to vector<2x8xf32>
    %130 = vector.shape_cast %129 : vector<2x8xf32> to vector<2x8x1xf32>
    %131 = vector.broadcast %130 : vector<2x8x1xf32> to vector<2x8x8xf32>
    %132 = arith.subf %128, %131 : vector<2x8x8xf32>
    %133 = math.exp %132 : vector<2x8x8xf32>
    %cst_63 = arith.constant dense<0.000000e+00> : vector<2x8xf32>
    %134 = vector.multi_reduction <add>, %133, %cst_63 [2] : vector<2x8x8xf32> to vector<2x8xf32>
    %135 = vector.shape_cast %134 : vector<2x8xf32> to vector<2x8x1xf32>
    %136 = tpu.reciprocal %135 {approx = true} : vector<2x8x1xf32> -> vector<2x8x1xf32>
    %137 = vector.broadcast %136 : vector<2x8x1xf32> to vector<2x8x8xf32>
    %138 = arith.mulf %133, %137 : vector<2x8x8xf32>
    "tpu.trace_start"() <{level = 10 : i32, message = "bqk,bkd->bqd"}> : () -> ()
    %cst_64 = arith.constant dense<0.000000e+00> : vector<2x8x8xf32>
    %139 = tpu.matmul %138, %124, %cst_64 {dimension_numbers = #tpu.dot_dimension_numbers<[2], [1], [1], [2], [0, 0, 0, 1, 1, 2], [0], [0]>} : vector<2x8x8xf32>, vector<2x8x8xf32>, vector<2x8x8xf32> -> vector<2x8x8xf32>
    "tpu.trace_stop"() : () -> ()
    %140 = tpu.concatenate %79, %99, %119, %139 in 2 : vector<2x8x8xf32>, vector<2x8x8xf32>, vector<2x8x8xf32>, vector<2x8x8xf32> -> vector<2x8x32xf32>
    %141 = vector.shape_cast %140 : vector<2x8x32xf32> to vector<16x32xf32>
    %cst_65 = arith.constant dense<0.000000e+00> : vector<16x32xf32>
    %142 = tpu.matmul %141, %12, %cst_65 {dimension_numbers = #tpu.dot_dimension_numbers<[1], [0], [0], [1], [0, 0, 1, 1], [], []>} : vector<16x32xf32>, vector<32x32xf32>, vector<16x32xf32> -> vector<16x32xf32>
    %143 = vector.broadcast %14 : vector<1x32xf32> to vector<16x32xf32>
    %144 = arith.addf %142, %143 : vector<16x32xf32>
    %145 = arith.addf %33, %144 : vector<16x32xf32>
    %cst_66 = arith.constant dense<0.000000e+00> : vector<16xf32>
    %146 = vector.multi_reduction <add>, %145, %cst_66 [1] : vector<16x32xf32> to vector<16xf32>
    %147 = vector.shape_cast %146 : vector<16xf32> to vector<16x1xf32>
    %cst_67 = arith.constant 3.200000e+01 : f32
    %148 = vector.broadcast %cst_67 : f32 to vector<16x1xf32>
    %149 = arith.divf %147, %148 : vector<16x1xf32>
    %150 = vector.broadcast %149 : vector<16x1xf32> to vector<16x32xf32>
    %151 = arith.subf %145, %150 : vector<16x32xf32>
    %152 = arith.mulf %151, %151 : vector<16x32xf32>
    %cst_68 = arith.constant dense<0.000000e+00> : vector<16xf32>
    %153 = vector.multi_reduction <add>, %152, %cst_68 [1] : vector<16x32xf32> to vector<16xf32>
    %154 = vector.shape_cast %153 : vector<16xf32> to vector<16x1xf32>
    %cst_69 = arith.constant 3.200000e+01 : f32
    %155 = vector.broadcast %cst_69 : f32 to vector<16x1xf32>
    %156 = arith.divf %154, %155 : vector<16x1xf32>
    %157 = vector.broadcast %149 : vector<16x1xf32> to vector<16x32xf32>
    %158 = arith.subf %145, %157 : vector<16x32xf32>
    %cst_70 = arith.constant 9.99999974E-6 : f32
    %159 = vector.broadcast %cst_70 : f32 to vector<16x1xf32>
    %160 = arith.addf %156, %159 : vector<16x1xf32>
    %161 = math.rsqrt %160 : vector<16x1xf32>
    %162 = vector.broadcast %161 : vector<16x1xf32> to vector<16x32xf32>
    %163 = arith.mulf %158, %162 : vector<16x32xf32>
    %164 = vector.broadcast %16 : vector<1x32xf32> to vector<16x32xf32>
    %165 = arith.mulf %163, %164 : vector<16x32xf32>
    %166 = vector.broadcast %18 : vector<1x32xf32> to vector<16x32xf32>
    %167 = arith.addf %165, %166 : vector<16x32xf32>
    %cst_71 = arith.constant dense<0.000000e+00> : vector<16x64xf32>
    %168 = tpu.matmul %167, %20, %cst_71 {dimension_numbers = #tpu.dot_dimension_numbers<[1], [0], [0], [1], [0, 0, 1, 1], [], []>} : vector<16x32xf32>, vector<32x64xf32>, vector<16x64xf32> -> vector<16x64xf32>
    %169 = vector.broadcast %22 : vector<1x64xf32> to vector<16x64xf32>
    %170 = arith.addf %168, %169 : vector<16x64xf32>
    %cst_72 = arith.constant 1.702000e+00 : f32
    %171 = vector.broadcast %cst_72 : f32 to vector<16x64xf32>
    %172 = arith.mulf %171, %170 : vector<16x64xf32>
    %173 = arith.negf %172 : vector<16x64xf32>
    %174 = math.exp %173 : vector<16x64xf32>
    %cst_73 = arith.constant 1.000000e+00 : f32
    %175 = vector.broadcast %cst_73 : f32 to vector<16x64xf32>
    %176 = arith.addf %175, %174 : vector<16x64xf32>
    %177 = arith.divf %175, %176 : vector<16x64xf32>
    %178 = arith.mulf %170, %177 : vector<16x64xf32>
    %cst_74 = arith.constant dense<0.000000e+00> : vector<16x32xf32>
    %179 = tpu.matmul %178, %24, %cst_74 {dimension_numbers = #tpu.dot_dimension_numbers<[1], [0], [0], [1], [0, 0, 1, 1], [], []>} : vector<16x64xf32>, vector<64x32xf32>, vector<16x32xf32> -> vector<16x32xf32>
    %180 = vector.broadcast %26 : vector<1x32xf32> to vector<16x32xf32>
    %181 = arith.addf %179, %180 : vector<16x32xf32>
    %182 = arith.addf %145, %181 : vector<16x32xf32>
    %c0_75 = arith.constant 0 : index
    %c0_76 = arith.constant 0 : index
    %183 = vector.load %arg19[%c0_75, %c0_76] : memref<16x32xf32, #tpu.memory_space<vmem>>, vector<16x32xf32>
    tpu.vector_store %arg19[%c0_75, %c0_76], %182 {strides = array<i32>} : memref<16x32xf32, #tpu.memory_space<vmem>>, vector<16x32xf32>,
    %c1_i32 = arith.constant 1 : i32
    %184 = arith.cmpi eq, %arg0, %c1_i32 : i32
    %185 = arith.extui %184 : i1 to i32
    %c0_i32_77 = arith.constant 0 : i32
    %186 = arith.cmpi ne, %185, %c0_i32_77 : i32
    scf.if %186 {
      %c0_78 = arith.constant 0 : index
      %c0_79 = arith.constant 0 : index
      %187 = vector.load %arg2[%c0_78, %c0_79] : memref<2x16xf32, #tpu.memory_space<vmem>>, vector<2x16xf32>
      %cst_80 = arith.constant dense<0.000000e+00> : vector<2x32xf32>
      %188 = tpu.matmul %187, %182, %cst_80 {dimension_numbers = #tpu.dot_dimension_numbers<[1], [0], [0], [1], [0, 0, 1, 1], [], []>} : vector<2x16xf32>, vector<16x32xf32>, vector<2x32xf32> -> vector<2x32xf32>
      %c0_81 = arith.constant 0 : index
      %c0_82 = arith.constant 0 : index
      %189 = vector.load %arg15[%c0_81, %c0_82] : memref<1x32xf32, #tpu.memory_space<vmem>>, vector<1x32xf32>
      %c0_83 = arith.constant 0 : index
      %c0_84 = arith.constant 0 : index
      %190 = vector.load %arg16[%c0_83, %c0_84] : memref<1x32xf32, #tpu.memory_space<vmem>>, vector<1x32xf32>
      %c0_85 = arith.constant 0 : index
      %c0_86 = arith.constant 0 : index
      %191 = vector.load %arg17[%c0_85, %c0_86] : memref<32x16xf32, #tpu.memory_space<vmem>>, vector<32x16xf32>
      %cst_87 = arith.constant dense<0.000000e+00> : vector<2xf32>
      %192 = vector.multi_reduction <add>, %188, %cst_87 [1] : vector<2x32xf32> to vector<2xf32>
      %193 = vector.shape_cast %192 : vector<2xf32> to vector<2x1xf32>
      %cst_88 = arith.constant 3.200000e+01 : f32
      %194 = vector.broadcast %cst_88 : f32 to vector<2x1xf32>
      %195 = arith.divf %193, %194 : vector<2x1xf32>
      %196 = vector.broadcast %195 : vector<2x1xf32> to vector<2x32xf32>
      %197 = arith.subf %188, %196 : vector<2x32xf32>
      %198 = arith.mulf %197, %197 : vector<2x32xf32>
      %cst_89 = arith.constant dense<0.000000e+00> : vector<2xf32>
      %199 = vector.multi_reduction <add>, %198, %cst_89 [1] : vector<2x32xf32> to vector<2xf32>
      %200 = vector.shape_cast %199 : vector<2xf32> to vector<2x1xf32>
      %cst_90 = arith.constant 3.200000e+01 : f32
      %201 = vector.broadcast %cst_90 : f32 to vector<2x1xf32>
      %202 = arith.divf %200, %201 : vector<2x1xf32>
      %203 = vector.broadcast %195 : vector<2x1xf32> to vector<2x32xf32>
      %204 = arith.subf %188, %203 : vector<2x32xf32>
      %cst_91 = arith.constant 9.99999974E-6 : f32
      %205 = vector.broadcast %cst_91 : f32 to vector<2x1xf32>
      %206 = arith.addf %202, %205 : vector<2x1xf32>
      %207 = math.rsqrt %206 : vector<2x1xf32>
      %208 = vector.broadcast %207 : vector<2x1xf32> to vector<2x32xf32>
      %209 = arith.mulf %204, %208 : vector<2x32xf32>
      %210 = vector.broadcast %189 : vector<1x32xf32> to vector<2x32xf32>
      %211 = arith.mulf %209, %210 : vector<2x32xf32>
      %212 = vector.broadcast %190 : vector<1x32xf32> to vector<2x32xf32>
      %213 = arith.addf %211, %212 : vector<2x32xf32>
      %cst_92 = arith.constant dense<0.000000e+00> : vector<2x16xf32>
      %214 = tpu.matmul %213, %191, %cst_92 {dimension_numbers = #tpu.dot_dimension_numbers<[1], [0], [0], [1], [0, 0, 1, 1], [], []>} : vector<2x32xf32>, vector<32x16xf32>, vector<2x16xf32> -> vector<2x16xf32>
      %215 = arith.mulf %214, %214 : vector<2x16xf32>
      %cst_93 = arith.constant dense<0.000000e+00> : vector<2xf32>
      %216 = vector.multi_reduction <add>, %215, %cst_93 [1] : vector<2x16xf32> to vector<2xf32>
      %217 = vector.shape_cast %216 : vector<2xf32> to vector<2x1xf32>
      %cst_94 = arith.constant 1.000000e-24 : f32
      %218 = vector.broadcast %cst_94 : f32 to vector<2x1xf32>
      %219 = arith.maximumf %217, %218 : vector<2x1xf32>
      %220 = math.rsqrt %219 : vector<2x1xf32>
      %221 = vector.broadcast %220 : vector<2x1xf32> to vector<2x16xf32>
      %222 = arith.mulf %214, %221 : vector<2x16xf32>
      %c0_95 = arith.constant 0 : index
      %c0_96 = arith.constant 0 : index
      %223 = vector.load %arg18[%c0_95, %c0_96] : memref<2x16xf32, #tpu.memory_space<vmem>>, vector<2x16xf32>
      tpu.vector_store %arg18[%c0_95, %c0_96], %222 {strides = array<i32>} : memref<2x16xf32, #tpu.memory_space<vmem>>, vector<2x16xf32>,
    } else {
    }
    return
  }
  func.func @transform_0(%arg0: i32) -> (i32, i32) {
    %c0_i32 = arith.constant 0 : i32
    %c0_i32_0 = arith.constant 0 : i32
    %c0_i32_1 = arith.constant 0 : i32
    return %c0_i32, %c0_i32_0 : i32, i32
  }
  func.func @transform_1(%arg0: i32) -> (i32, i32) {
    %c0_i32 = arith.constant 0 : i32
    %c0_i32_0 = arith.constant 0 : i32
    %c0_i32_1 = arith.constant 0 : i32
    return %c0_i32, %c0_i32_0 : i32, i32
  }
  func.func @transform_2(%arg0: i32) -> (i32, i32, i32) {
    %c0_i32 = arith.constant 0 : i32
    %c0_i32_0 = arith.constant 0 : i32
    %c0_i32_1 = arith.constant 0 : i32
    return %arg0, %c0_i32, %c0_i32_0 : i32, i32, i32
  }
  func.func @transform_3(%arg0: i32) -> (i32, i32, i32) {
    %c0_i32 = arith.constant 0 : i32
    %c0_i32_0 = arith.constant 0 : i32
    %c0_i32_1 = arith.constant 0 : i32
    return %arg0, %c0_i32, %c0_i32_0 : i32, i32, i32
  }
  func.func @transform_4(%arg0: i32) -> (i32, i32, i32) {
    %c0_i32 = arith.constant 0 : i32
    %c0_i32_0 = arith.constant 0 : i32
    %c0_i32_1 = arith.constant 0 : i32
    return %arg0, %c0_i32, %c0_i32_0 : i32, i32, i32
  }
  func.func @transform_5(%arg0: i32) -> (i32, i32, i32) {
    %c0_i32 = arith.constant 0 : i32
    %c0_i32_0 = arith.constant 0 : i32
    %c0_i32_1 = arith.constant 0 : i32
    return %arg0, %c0_i32, %c0_i32_0 : i32, i32, i32
  }
  func.func @transform_6(%arg0: i32) -> (i32, i32, i32) {
    %c0_i32 = arith.constant 0 : i32
    %c0_i32_0 = arith.constant 0 : i32
    %c0_i32_1 = arith.constant 0 : i32
    return %arg0, %c0_i32, %c0_i32_0 : i32, i32, i32
  }
  func.func @transform_7(%arg0: i32) -> (i32, i32, i32) {
    %c0_i32 = arith.constant 0 : i32
    %c0_i32_0 = arith.constant 0 : i32
    %c0_i32_1 = arith.constant 0 : i32
    return %arg0, %c0_i32, %c0_i32_0 : i32, i32, i32
  }
  func.func @transform_8(%arg0: i32) -> (i32, i32, i32) {
    %c0_i32 = arith.constant 0 : i32
    %c0_i32_0 = arith.constant 0 : i32
    %c0_i32_1 = arith.constant 0 : i32
    return %arg0, %c0_i32, %c0_i32_0 : i32, i32, i32
  }
  func.func @transform_9(%arg0: i32) -> (i32, i32, i32) {
    %c0_i32 = arith.constant 0 : i32
    %c0_i32_0 = arith.constant 0 : i32
    %c0_i32_1 = arith.constant 0 : i32
    return %arg0, %c0_i32, %c0_i32_0 : i32, i32, i32
  }
  func.func @transform_10(%arg0: i32) -> (i32, i32, i32) {
    %c0_i32 = arith.constant 0 : i32
    %c0_i32_0 = arith.constant 0 : i32
    %c0_i32_1 = arith.constant 0 : i32
    return %arg0, %c0_i32, %c0_i32_0 : i32, i32, i32
  }
  func.func @transform_11(%arg0: i32) -> (i32, i32, i32) {
    %c0_i32 = arith.constant 0 : i32
    %c0_i32_0 = arith.constant 0 : i32
    %c0_i32_1 = arith.constant 0 : i32
    return %arg0, %c0_i32, %c0_i32_0 : i32, i32, i32
  }
  func.func @transform_12(%arg0: i32) -> (i32, i32, i32) {
    %c0_i32 = arith.constant 0 : i32
    %c0_i32_0 = arith.constant 0 : i32
    %c0_i32_1 = arith.constant 0 : i32
    return %arg0, %c0_i32, %c0_i32_0 : i32, i32, i32
  }
  func.func @transform_13(%arg0: i32) -> (i32, i32, i32) {
    %c0_i32 = arith.constant 0 : i32
    %c0_i32_0 = arith.constant 0 : i32
    %c0_i32_1 = arith.constant 0 : i32
    return %arg0, %c0_i32, %c0_i32_0 : i32, i32, i32
  }
  func.func @transform_14(%arg0: i32) -> (i32, i32) {
    %c0_i32 = arith.constant 0 : i32
    %c0_i32_0 = arith.constant 0 : i32
    %c0_i32_1 = arith.constant 0 : i32
    return %c0_i32, %c0_i32_0 : i32, i32
  }
  func.func @transform_15(%arg0: i32) -> (i32, i32) {
    %c0_i32 = arith.constant 0 : i32
    %c0_i32_0 = arith.constant 0 : i32
    %c0_i32_1 = arith.constant 0 : i32
    return %c0_i32, %c0_i32_0 : i32, i32
  }
  func.func @transform_16(%arg0: i32) -> (i32, i32) {
    %c0_i32 = arith.constant 0 : i32
    %c0_i32_0 = arith.constant 0 : i32
    %c0_i32_1 = arith.constant 0 : i32
    return %c0_i32, %c0_i32_0 : i32, i32
  }
  func.func @transform_17(%arg0: i32) -> (i32, i32) {
    %c0_i32 = arith.constant 0 : i32
    %c0_i32_0 = arith.constant 0 : i32
    %c0_i32_1 = arith.constant 0 : i32
    return %c0_i32, %c0_i32_0 : i32, i32
  }
}

module attributes {stable_mosaic.version = 11 : i64} {
  func.func @_vision_tower_kernel(%arg0: i32, %arg1: memref<2x4x192xf32, #tpu.memory_space<vmem>>, %arg2: memref<192x32xf32, #tpu.memory_space<vmem>>, %arg3: memref<1x32xf32, #tpu.memory_space<vmem>>, %arg4: memref<5x32xf32, #tpu.memory_space<vmem>>, %arg5: memref<1x32xf32, #tpu.memory_space<vmem>>, %arg6: memref<1x32xf32, #tpu.memory_space<vmem>>, %arg7: memref<1x1x32xf32, #tpu.memory_space<vmem>>, %arg8: memref<1x1x32xf32, #tpu.memory_space<vmem>>, %arg9: memref<1x32x96xf32, #tpu.memory_space<vmem>>, %arg10: memref<1x1x96xf32, #tpu.memory_space<vmem>>, %arg11: memref<1x32x32xf32, #tpu.memory_space<vmem>>, %arg12: memref<1x1x32xf32, #tpu.memory_space<vmem>>, %arg13: memref<1x1x32xf32, #tpu.memory_space<vmem>>, %arg14: memref<1x1x32xf32, #tpu.memory_space<vmem>>, %arg15: memref<1x32x64xf32, #tpu.memory_space<vmem>>, %arg16: memref<1x1x64xf32, #tpu.memory_space<vmem>>, %arg17: memref<1x64x32xf32, #tpu.memory_space<vmem>>, %arg18: memref<1x1x32xf32, #tpu.memory_space<vmem>>, %arg19: memref<2x16xf32, #tpu.memory_space<vmem>>, %arg20: memref<1x32xf32, #tpu.memory_space<vmem>>, %arg21: memref<1x32xf32, #tpu.memory_space<vmem>>, %arg22: memref<32x16xf32, #tpu.memory_space<vmem>>, %arg23: memref<2x16xf32, #tpu.memory_space<vmem>>, %arg24: memref<16x32xf32, #tpu.memory_space<vmem>>) attributes {dimension_semantics = [#tpu.dimension_semantics<arbitrary>], iteration_bounds = array<i64: 2>, scalar_prefetch = 0 : i64, scratch_operands = 1 : i64, tpu.core_type = #tpu.core_type<tc>, window_params = [{pipeline_mode = #tpu.pipeline_mode<synchronous>, transform_indices = @transform_0, window_bounds = array<i64: 2, 4, 192>}, {pipeline_mode = #tpu.pipeline_mode<synchronous>, transform_indices = @transform_1, window_bounds = array<i64: 192, 32>}, {pipeline_mode = #tpu.pipeline_mode<synchronous>, transform_indices = @transform_2, window_bounds = array<i64: 1, 32>}, {pipeline_mode = #tpu.pipeline_mode<synchronous>, transform_indices = @transform_3, window_bounds = array<i64: 5, 32>}, {pipeline_mode = #tpu.pipeline_mode<synchronous>, transform_indices = @transform_4, window_bounds = array<i64: 1, 32>}, {pipeline_mode = #tpu.pipeline_mode<synchronous>, transform_indices = @transform_5, window_bounds = array<i64: 1, 32>}, {transform_indices = @transform_6, window_bounds = array<i64: 1, 1, 32>}, {transform_indices = @transform_7, window_bounds = array<i64: 1, 1, 32>}, {transform_indices = @transform_8, window_bounds = array<i64: 1, 32, 96>}, {transform_indices = @transform_9, window_bounds = array<i64: 1, 1, 96>}, {transform_indices = @transform_10, window_bounds = array<i64: 1, 32, 32>}, {transform_indices = @transform_11, window_bounds = array<i64: 1, 1, 32>}, {transform_indices = @transform_12, window_bounds = array<i64: 1, 1, 32>}, {transform_indices = @transform_13, window_bounds = array<i64: 1, 1, 32>}, {transform_indices = @transform_14, window_bounds = array<i64: 1, 32, 64>}, {transform_indices = @transform_15, window_bounds = array<i64: 1, 1, 64>}, {transform_indices = @transform_16, window_bounds = array<i64: 1, 64, 32>}, {transform_indices = @transform_17, window_bounds = array<i64: 1, 1, 32>}, {pipeline_mode = #tpu.pipeline_mode<synchronous>, transform_indices = @transform_18, window_bounds = array<i64: 2, 16>}, {pipeline_mode = #tpu.pipeline_mode<synchronous>, transform_indices = @transform_19, window_bounds = array<i64: 1, 32>}, {pipeline_mode = #tpu.pipeline_mode<synchronous>, transform_indices = @transform_20, window_bounds = array<i64: 1, 32>}, {pipeline_mode = #tpu.pipeline_mode<synchronous>, transform_indices = @transform_21, window_bounds = array<i64: 32, 16>}, {pipeline_mode = #tpu.pipeline_mode<synchronous>, transform_indices = @transform_22, window_bounds = array<i64: 2, 16>}]} {
    %c0_i32 = arith.constant 0 : i32
    %0 = arith.cmpi eq, %arg0, %c0_i32 : i32
    %1 = arith.extui %0 : i1 to i32
    %c0_i32_0 = arith.constant 0 : i32
    %2 = arith.cmpi ne, %1, %c0_i32_0 : i32
    scf.if %2 {
      %c0_78 = arith.constant 0 : index
      %c0_79 = arith.constant 0 : index
      %187 = vector.load %arg2[%c0_78, %c0_79] : memref<192x32xf32, #tpu.memory_space<vmem>>, vector<192x32xf32>
      %c0_80 = arith.constant 0 : index
      %c0_81 = arith.constant 0 : index
      %188 = vector.load %arg5[%c0_80, %c0_81] : memref<1x32xf32, #tpu.memory_space<vmem>>, vector<1x32xf32>
      %c0_82 = arith.constant 0 : index
      %c0_83 = arith.constant 0 : index
      %189 = vector.load %arg6[%c0_82, %c0_83] : memref<1x32xf32, #tpu.memory_space<vmem>>, vector<1x32xf32>
      %c0_84 = arith.constant 0 : index
      %c0_85 = arith.constant 0 : index
      %190 = vector.load %arg3[%c0_84, %c0_85] : memref<1x32xf32, #tpu.memory_space<vmem>>, vector<1x32xf32>
      %c0_86 = arith.constant 0 : index
      %c0_87 = arith.constant 0 : index
      %191 = vector.load %arg4[%c0_86, %c0_87] : memref<5x32xf32, #tpu.memory_space<vmem>>, vector<1x32xf32>
      %192 = arith.addf %190, %191 : vector<1x32xf32>
      %cst_88 = arith.constant dense<0.000000e+00> : vector<1xf32>
      %193 = vector.multi_reduction <add>, %192, %cst_88 [1] : vector<1x32xf32> to vector<1xf32>
      %194 = vector.shape_cast %193 : vector<1xf32> to vector<1x1xf32>
      %cst_89 = arith.constant 3.200000e+01 : f32
      %195 = vector.broadcast %cst_89 : f32 to vector<1x1xf32>
      %196 = arith.divf %194, %195 : vector<1x1xf32>
      %197 = vector.broadcast %196 : vector<1x1xf32> to vector<1x32xf32>
      %198 = arith.subf %192, %197 : vector<1x32xf32>
      %199 = arith.mulf %198, %198 : vector<1x32xf32>
      %cst_90 = arith.constant dense<0.000000e+00> : vector<1xf32>
      %200 = vector.multi_reduction <add>, %199, %cst_90 [1] : vector<1x32xf32> to vector<1xf32>
      %201 = vector.shape_cast %200 : vector<1xf32> to vector<1x1xf32>
      %cst_91 = arith.constant 3.200000e+01 : f32
      %202 = vector.broadcast %cst_91 : f32 to vector<1x1xf32>
      %203 = arith.divf %201, %202 : vector<1x1xf32>
      %204 = vector.broadcast %196 : vector<1x1xf32> to vector<1x32xf32>
      %205 = arith.subf %192, %204 : vector<1x32xf32>
      %cst_92 = arith.constant 9.99999974E-6 : f32
      %206 = vector.broadcast %cst_92 : f32 to vector<1x1xf32>
      %207 = arith.addf %203, %206 : vector<1x1xf32>
      %208 = math.rsqrt %207 : vector<1x1xf32>
      %209 = vector.broadcast %208 : vector<1x1xf32> to vector<1x32xf32>
      %210 = arith.mulf %205, %209 : vector<1x32xf32>
      %211 = arith.mulf %210, %188 : vector<1x32xf32>
      %212 = arith.addf %211, %189 : vector<1x32xf32>
      %cst_93 = arith.constant 0.000000e+00 : f32
      %213 = vector.broadcast %cst_93 : f32 to vector<3x32xf32>
      %c0_94 = arith.constant 0 : index
      %c0_95 = arith.constant 0 : index
      %c0_96 = arith.constant 0 : index
      %214 = vector.load %arg1[%c0_94, %c0_95, %c0_96] : memref<2x4x192xf32, #tpu.memory_space<vmem>>, vector<1x4x192xf32>
      %215 = vector.shape_cast %214 : vector<1x4x192xf32> to vector<4x192xf32>
      %cst_97 = arith.constant dense<0.000000e+00> : vector<4x32xf32>
      %216 = tpu.matmul %215, %187, %cst_97 {dimension_numbers = #tpu.dot_dimension_numbers<[1], [0], [0], [1], [0, 0, 1, 1], [], []>} : vector<4x192xf32>, vector<192x32xf32>, vector<4x32xf32> -> vector<4x32xf32>
      %c1 = arith.constant 1 : index
      %c0_98 = arith.constant 0 : index
      %217 = vector.load %arg4[%c1, %c0_98] : memref<5x32xf32, #tpu.memory_space<vmem>>, vector<4x32xf32>
      %218 = arith.addf %216, %217 : vector<4x32xf32>
      %cst_99 = arith.constant dense<0.000000e+00> : vector<4xf32>
      %219 = vector.multi_reduction <add>, %218, %cst_99 [1] : vector<4x32xf32> to vector<4xf32>
      %220 = vector.shape_cast %219 : vector<4xf32> to vector<4x1xf32>
      %cst_100 = arith.constant 3.200000e+01 : f32
      %221 = vector.broadcast %cst_100 : f32 to vector<4x1xf32>
      %222 = arith.divf %220, %221 : vector<4x1xf32>
      %223 = vector.broadcast %222 : vector<4x1xf32> to vector<4x32xf32>
      %224 = arith.subf %218, %223 : vector<4x32xf32>
      %225 = arith.mulf %224, %224 : vector<4x32xf32>
      %cst_101 = arith.constant dense<0.000000e+00> : vector<4xf32>
      %226 = vector.multi_reduction <add>, %225, %cst_101 [1] : vector<4x32xf32> to vector<4xf32>
      %227 = vector.shape_cast %226 : vector<4xf32> to vector<4x1xf32>
      %cst_102 = arith.constant 3.200000e+01 : f32
      %228 = vector.broadcast %cst_102 : f32 to vector<4x1xf32>
      %229 = arith.divf %227, %228 : vector<4x1xf32>
      %230 = vector.broadcast %222 : vector<4x1xf32> to vector<4x32xf32>
      %231 = arith.subf %218, %230 : vector<4x32xf32>
      %cst_103 = arith.constant 9.99999974E-6 : f32
      %232 = vector.broadcast %cst_103 : f32 to vector<4x1xf32>
      %233 = arith.addf %229, %232 : vector<4x1xf32>
      %234 = math.rsqrt %233 : vector<4x1xf32>
      %235 = vector.broadcast %234 : vector<4x1xf32> to vector<4x32xf32>
      %236 = arith.mulf %231, %235 : vector<4x32xf32>
      %237 = vector.broadcast %188 : vector<1x32xf32> to vector<4x32xf32>
      %238 = arith.mulf %236, %237 : vector<4x32xf32>
      %239 = vector.broadcast %189 : vector<1x32xf32> to vector<4x32xf32>
      %240 = arith.addf %238, %239 : vector<4x32xf32>
      %c0_104 = arith.constant 0 : index
      %c0_105 = arith.constant 0 : index
      %241 = vector.load %arg24[%c0_104, %c0_105] : memref<16x32xf32, #tpu.memory_space<vmem>>, vector<1x32xf32>
      tpu.vector_store %arg24[%c0_104, %c0_105], %212 {strides = array<i32>} : memref<16x32xf32, #tpu.memory_space<vmem>>, vector<1x32xf32>,
      %c1_106 = arith.constant 1 : index
      %c0_107 = arith.constant 0 : index
      %242 = vector.load %arg24[%c1_106, %c0_107] : memref<16x32xf32, #tpu.memory_space<vmem>>, vector<4x32xf32>
      tpu.vector_store %arg24[%c1_106, %c0_107], %240 {strides = array<i32>} : memref<16x32xf32, #tpu.memory_space<vmem>>, vector<4x32xf32>,
      %c5 = arith.constant 5 : index
      %c0_108 = arith.constant 0 : index
      %243 = vector.load %arg24[%c5, %c0_108] : memref<16x32xf32, #tpu.memory_space<vmem>>, vector<3x32xf32>
      tpu.vector_store %arg24[%c5, %c0_108], %213 {strides = array<i32>} : memref<16x32xf32, #tpu.memory_space<vmem>>, vector<3x32xf32>,
      %c1_109 = arith.constant 1 : index
      %c0_110 = arith.constant 0 : index
      %c0_111 = arith.constant 0 : index
      %244 = vector.load %arg1[%c1_109, %c0_110, %c0_111] : memref<2x4x192xf32, #tpu.memory_space<vmem>>, vector<1x4x192xf32>
      %245 = vector.shape_cast %244 : vector<1x4x192xf32> to vector<4x192xf32>
      %cst_112 = arith.constant dense<0.000000e+00> : vector<4x32xf32>
      %246 = tpu.matmul %245, %187, %cst_112 {dimension_numbers = #tpu.dot_dimension_numbers<[1], [0], [0], [1], [0, 0, 1, 1], [], []>} : vector<4x192xf32>, vector<192x32xf32>, vector<4x32xf32> -> vector<4x32xf32>
      %c1_113 = arith.constant 1 : index
      %c0_114 = arith.constant 0 : index
      %247 = vector.load %arg4[%c1_113, %c0_114] : memref<5x32xf32, #tpu.memory_space<vmem>>, vector<4x32xf32>
      %248 = arith.addf %246, %247 : vector<4x32xf32>
      %cst_115 = arith.constant dense<0.000000e+00> : vector<4xf32>
      %249 = vector.multi_reduction <add>, %248, %cst_115 [1] : vector<4x32xf32> to vector<4xf32>
      %250 = vector.shape_cast %249 : vector<4xf32> to vector<4x1xf32>
      %cst_116 = arith.constant 3.200000e+01 : f32
      %251 = vector.broadcast %cst_116 : f32 to vector<4x1xf32>
      %252 = arith.divf %250, %251 : vector<4x1xf32>
      %253 = vector.broadcast %252 : vector<4x1xf32> to vector<4x32xf32>
      %254 = arith.subf %248, %253 : vector<4x32xf32>
      %255 = arith.mulf %254, %254 : vector<4x32xf32>
      %cst_117 = arith.constant dense<0.000000e+00> : vector<4xf32>
      %256 = vector.multi_reduction <add>, %255, %cst_117 [1] : vector<4x32xf32> to vector<4xf32>
      %257 = vector.shape_cast %256 : vector<4xf32> to vector<4x1xf32>
      %cst_118 = arith.constant 3.200000e+01 : f32
      %258 = vector.broadcast %cst_118 : f32 to vector<4x1xf32>
      %259 = arith.divf %257, %258 : vector<4x1xf32>
      %260 = vector.broadcast %252 : vector<4x1xf32> to vector<4x32xf32>
      %261 = arith.subf %248, %260 : vector<4x32xf32>
      %cst_119 = arith.constant 9.99999974E-6 : f32
      %262 = vector.broadcast %cst_119 : f32 to vector<4x1xf32>
      %263 = arith.addf %259, %262 : vector<4x1xf32>
      %264 = math.rsqrt %263 : vector<4x1xf32>
      %265 = vector.broadcast %264 : vector<4x1xf32> to vector<4x32xf32>
      %266 = arith.mulf %261, %265 : vector<4x32xf32>
      %267 = vector.broadcast %188 : vector<1x32xf32> to vector<4x32xf32>
      %268 = arith.mulf %266, %267 : vector<4x32xf32>
      %269 = vector.broadcast %189 : vector<1x32xf32> to vector<4x32xf32>
      %270 = arith.addf %268, %269 : vector<4x32xf32>
      %c8 = arith.constant 8 : index
      %c0_120 = arith.constant 0 : index
      %271 = vector.load %arg24[%c8, %c0_120] : memref<16x32xf32, #tpu.memory_space<vmem>>, vector<1x32xf32>
      tpu.vector_store %arg24[%c8, %c0_120], %212 {strides = array<i32>} : memref<16x32xf32, #tpu.memory_space<vmem>>, vector<1x32xf32>,
      %c9 = arith.constant 9 : index
      %c0_121 = arith.constant 0 : index
      %272 = vector.load %arg24[%c9, %c0_121] : memref<16x32xf32, #tpu.memory_space<vmem>>, vector<4x32xf32>
      tpu.vector_store %arg24[%c9, %c0_121], %270 {strides = array<i32>} : memref<16x32xf32, #tpu.memory_space<vmem>>, vector<4x32xf32>,
      %c13 = arith.constant 13 : index
      %c0_122 = arith.constant 0 : index
      %273 = vector.load %arg24[%c13, %c0_122] : memref<16x32xf32, #tpu.memory_space<vmem>>, vector<3x32xf32>
      tpu.vector_store %arg24[%c13, %c0_122], %213 {strides = array<i32>} : memref<16x32xf32, #tpu.memory_space<vmem>>, vector<3x32xf32>,
    } else {
    }
    %c0 = arith.constant 0 : index
    %c0_1 = arith.constant 0 : index
    %c0_2 = arith.constant 0 : index
    %3 = vector.load %arg7[%c0, %c0_1, %c0_2] : memref<1x1x32xf32, #tpu.memory_space<vmem>>, vector<1x1x32xf32>
    %4 = vector.shape_cast %3 : vector<1x1x32xf32> to vector<1x32xf32>
    %c0_3 = arith.constant 0 : index
    %c0_4 = arith.constant 0 : index
    %c0_5 = arith.constant 0 : index
    %5 = vector.load %arg8[%c0_3, %c0_4, %c0_5] : memref<1x1x32xf32, #tpu.memory_space<vmem>>, vector<1x1x32xf32>
    %6 = vector.shape_cast %5 : vector<1x1x32xf32> to vector<1x32xf32>
    %c0_6 = arith.constant 0 : index
    %c0_7 = arith.constant 0 : index
    %c0_8 = arith.constant 0 : index
    %7 = vector.load %arg9[%c0_6, %c0_7, %c0_8] : memref<1x32x96xf32, #tpu.memory_space<vmem>>, vector<1x32x96xf32>
    %8 = vector.shape_cast %7 : vector<1x32x96xf32> to vector<32x96xf32>
    %c0_9 = arith.constant 0 : index
    %c0_10 = arith.constant 0 : index
    %c0_11 = arith.constant 0 : index
    %9 = vector.load %arg10[%c0_9, %c0_10, %c0_11] : memref<1x1x96xf32, #tpu.memory_space<vmem>>, vector<1x1x96xf32>
    %10 = vector.shape_cast %9 : vector<1x1x96xf32> to vector<1x96xf32>
    %c0_12 = arith.constant 0 : index
    %c0_13 = arith.constant 0 : index
    %c0_14 = arith.constant 0 : index
    %11 = vector.load %arg11[%c0_12, %c0_13, %c0_14] : memref<1x32x32xf32, #tpu.memory_space<vmem>>, vector<1x32x32xf32>
    %12 = vector.shape_cast %11 : vector<1x32x32xf32> to vector<32x32xf32>
    %c0_15 = arith.constant 0 : index
    %c0_16 = arith.constant 0 : index
    %c0_17 = arith.constant 0 : index
    %13 = vector.load %arg12[%c0_15, %c0_16, %c0_17] : memref<1x1x32xf32, #tpu.memory_space<vmem>>, vector<1x1x32xf32>
    %14 = vector.shape_cast %13 : vector<1x1x32xf32> to vector<1x32xf32>
    %c0_18 = arith.constant 0 : index
    %c0_19 = arith.constant 0 : index
    %c0_20 = arith.constant 0 : index
    %15 = vector.load %arg13[%c0_18, %c0_19, %c0_20] : memref<1x1x32xf32, #tpu.memory_space<vmem>>, vector<1x1x32xf32>
    %16 = vector.shape_cast %15 : vector<1x1x32xf32> to vector<1x32xf32>
    %c0_21 = arith.constant 0 : index
    %c0_22 = arith.constant 0 : index
    %c0_23 = arith.constant 0 : index
    %17 = vector.load %arg14[%c0_21, %c0_22, %c0_23] : memref<1x1x32xf32, #tpu.memory_space<vmem>>, vector<1x1x32xf32>
    %18 = vector.shape_cast %17 : vector<1x1x32xf32> to vector<1x32xf32>
    %c0_24 = arith.constant 0 : index
    %c0_25 = arith.constant 0 : index
    %c0_26 = arith.constant 0 : index
    %19 = vector.load %arg15[%c0_24, %c0_25, %c0_26] : memref<1x32x64xf32, #tpu.memory_space<vmem>>, vector<1x32x64xf32>
    %20 = vector.shape_cast %19 : vector<1x32x64xf32> to vector<32x64xf32>
    %c0_27 = arith.constant 0 : index
    %c0_28 = arith.constant 0 : index
    %c0_29 = arith.constant 0 : index
    %21 = vector.load %arg16[%c0_27, %c0_28, %c0_29] : memref<1x1x64xf32, #tpu.memory_space<vmem>>, vector<1x1x64xf32>
    %22 = vector.shape_cast %21 : vector<1x1x64xf32> to vector<1x64xf32>
    %c0_30 = arith.constant 0 : index
    %c0_31 = arith.constant 0 : index
    %c0_32 = arith.constant 0 : index
    %23 = vector.load %arg17[%c0_30, %c0_31, %c0_32] : memref<1x64x32xf32, #tpu.memory_space<vmem>>, vector<1x64x32xf32>
    %24 = vector.shape_cast %23 : vector<1x64x32xf32> to vector<64x32xf32>
    %c0_33 = arith.constant 0 : index
    %c0_34 = arith.constant 0 : index
    %c0_35 = arith.constant 0 : index
    %25 = vector.load %arg18[%c0_33, %c0_34, %c0_35] : memref<1x1x32xf32, #tpu.memory_space<vmem>>, vector<1x1x32xf32>
    %26 = vector.shape_cast %25 : vector<1x1x32xf32> to vector<1x32xf32>
    %27 = tpu.iota {dimensions = array<i32: 1>} : vector<8x8xi32>
    %c5_i32 = arith.constant 5 : i32
    %28 = vector.broadcast %c5_i32 : i32 to vector<8x8xi32>
    %29 = arith.cmpi sge, %27, %28 : vector<8x8xi32>
    %cst = arith.constant -1.000000e+09 : f32
    %cst_36 = arith.constant 0.000000e+00 : f32
    %30 = vector.broadcast %cst : f32 to vector<8x8xf32>
    %31 = vector.broadcast %cst_36 : f32 to vector<8x8xf32>
    %32 = arith.select %29, %30, %31 : vector<8x8xi1>, vector<8x8xf32>
    %c0_37 = arith.constant 0 : index
    %c0_38 = arith.constant 0 : index
    %33 = vector.load %arg24[%c0_37, %c0_38] : memref<16x32xf32, #tpu.memory_space<vmem>>, vector<16x32xf32>
    %cst_39 = arith.constant dense<0.000000e+00> : vector<16xf32>
    %34 = vector.multi_reduction <add>, %33, %cst_39 [1] : vector<16x32xf32> to vector<16xf32>
    %35 = vector.shape_cast %34 : vector<16xf32> to vector<16x1xf32>
    %cst_40 = arith.constant 3.200000e+01 : f32
    %36 = vector.broadcast %cst_40 : f32 to vector<16x1xf32>
    %37 = arith.divf %35, %36 : vector<16x1xf32>
    %38 = vector.broadcast %37 : vector<16x1xf32> to vector<16x32xf32>
    %39 = arith.subf %33, %38 : vector<16x32xf32>
    %40 = arith.mulf %39, %39 : vector<16x32xf32>
    %cst_41 = arith.constant dense<0.000000e+00> : vector<16xf32>
    %41 = vector.multi_reduction <add>, %40, %cst_41 [1] : vector<16x32xf32> to vector<16xf32>
    %42 = vector.shape_cast %41 : vector<16xf32> to vector<16x1xf32>
    %cst_42 = arith.constant 3.200000e+01 : f32
    %43 = vector.broadcast %cst_42 : f32 to vector<16x1xf32>
    %44 = arith.divf %42, %43 : vector<16x1xf32>
    %45 = vector.broadcast %37 : vector<16x1xf32> to vector<16x32xf32>
    %46 = arith.subf %33, %45 : vector<16x32xf32>
    %cst_43 = arith.constant 9.99999974E-6 : f32
    %47 = vector.broadcast %cst_43 : f32 to vector<16x1xf32>
    %48 = arith.addf %44, %47 : vector<16x1xf32>
    %49 = math.rsqrt %48 : vector<16x1xf32>
    %50 = vector.broadcast %49 : vector<16x1xf32> to vector<16x32xf32>
    %51 = arith.mulf %46, %50 : vector<16x32xf32>
    %52 = vector.broadcast %4 : vector<1x32xf32> to vector<16x32xf32>
    %53 = arith.mulf %51, %52 : vector<16x32xf32>
    %54 = vector.broadcast %6 : vector<1x32xf32> to vector<16x32xf32>
    %55 = arith.addf %53, %54 : vector<16x32xf32>
    %cst_44 = arith.constant dense<0.000000e+00> : vector<16x96xf32>
    %56 = tpu.matmul %55, %8, %cst_44 {dimension_numbers = #tpu.dot_dimension_numbers<[1], [0], [0], [1], [0, 0, 1, 1], [], []>} : vector<16x32xf32>, vector<32x96xf32>, vector<16x96xf32> -> vector<16x96xf32>
    %57 = vector.broadcast %10 : vector<1x96xf32> to vector<16x96xf32>
    %58 = arith.addf %56, %57 : vector<16x96xf32>
    %59 = vector.shape_cast %58 : vector<16x96xf32> to vector<2x8x96xf32>
    %60 = vector.extract_strided_slice %59 {offsets = [0, 0, 0], sizes = [2, 8, 8], strides = [1, 1, 1]} : vector<2x8x96xf32> to vector<2x8x8xf32>
    %cst_45 = arith.constant 0.353553385 : f32
    %61 = vector.broadcast %cst_45 : f32 to vector<2x8x8xf32>
    %62 = arith.mulf %60, %61 : vector<2x8x8xf32>
    %63 = vector.extract_strided_slice %59 {offsets = [0, 0, 32], sizes = [2, 8, 8], strides = [1, 1, 1]} : vector<2x8x96xf32> to vector<2x8x8xf32>
    %64 = vector.extract_strided_slice %59 {offsets = [0, 0, 64], sizes = [2, 8, 8], strides = [1, 1, 1]} : vector<2x8x96xf32> to vector<2x8x8xf32>
    "tpu.trace_start"() <{level = 10 : i32, message = "bqd,bkd->bqk"}> : () -> ()
    %cst_46 = arith.constant dense<0.000000e+00> : vector<2x8x8xf32>
    %65 = tpu.matmul %62, %63, %cst_46 {dimension_numbers = #tpu.dot_dimension_numbers<[2], [2], [1], [1], [0, 0, 0, 1, 1, 1], [0], [0]>} : vector<2x8x8xf32>, vector<2x8x8xf32>, vector<2x8x8xf32> -> vector<2x8x8xf32>
    "tpu.trace_stop"() : () -> ()
    %66 = vector.shape_cast %32 : vector<8x8xf32> to vector<1x8x8xf32>
    %67 = vector.broadcast %66 : vector<1x8x8xf32> to vector<2x8x8xf32>
    %68 = arith.addf %65, %67 : vector<2x8x8xf32>
    %cst_47 = arith.constant dense<0xFF800000> : vector<2x8xf32>
    %69 = vector.multi_reduction <maximumf>, %68, %cst_47 [2] : vector<2x8x8xf32> to vector<2x8xf32>
    %70 = vector.shape_cast %69 : vector<2x8xf32> to vector<2x8x1xf32>
    %71 = vector.broadcast %70 : vector<2x8x1xf32> to vector<2x8x8xf32>
    %72 = arith.subf %68, %71 : vector<2x8x8xf32>
    %73 = math.exp %72 : vector<2x8x8xf32>
    %cst_48 = arith.constant dense<0.000000e+00> : vector<2x8xf32>
    %74 = vector.multi_reduction <add>, %73, %cst_48 [2] : vector<2x8x8xf32> to vector<2x8xf32>
    %75 = vector.shape_cast %74 : vector<2x8xf32> to vector<2x8x1xf32>
    %76 = tpu.reciprocal %75 {approx = true} : vector<2x8x1xf32> -> vector<2x8x1xf32>
    %77 = vector.broadcast %76 : vector<2x8x1xf32> to vector<2x8x8xf32>
    %78 = arith.mulf %73, %77 : vector<2x8x8xf32>
    "tpu.trace_start"() <{level = 10 : i32, message = "bqk,bkd->bqd"}> : () -> ()
    %cst_49 = arith.constant dense<0.000000e+00> : vector<2x8x8xf32>
    %79 = tpu.matmul %78, %64, %cst_49 {dimension_numbers = #tpu.dot_dimension_numbers<[2], [1], [1], [2], [0, 0, 0, 1, 1, 2], [0], [0]>} : vector<2x8x8xf32>, vector<2x8x8xf32>, vector<2x8x8xf32> -> vector<2x8x8xf32>
    "tpu.trace_stop"() : () -> ()
    %80 = vector.extract_strided_slice %59 {offsets = [0, 0, 8], sizes = [2, 8, 8], strides = [1, 1, 1]} : vector<2x8x96xf32> to vector<2x8x8xf32>
    %cst_50 = arith.constant 0.353553385 : f32
    %81 = vector.broadcast %cst_50 : f32 to vector<2x8x8xf32>
    %82 = arith.mulf %80, %81 : vector<2x8x8xf32>
    %83 = vector.extract_strided_slice %59 {offsets = [0, 0, 40], sizes = [2, 8, 8], strides = [1, 1, 1]} : vector<2x8x96xf32> to vector<2x8x8xf32>
    %84 = vector.extract_strided_slice %59 {offsets = [0, 0, 72], sizes = [2, 8, 8], strides = [1, 1, 1]} : vector<2x8x96xf32> to vector<2x8x8xf32>
    "tpu.trace_start"() <{level = 10 : i32, message = "bqd,bkd->bqk"}> : () -> ()
    %cst_51 = arith.constant dense<0.000000e+00> : vector<2x8x8xf32>
    %85 = tpu.matmul %82, %83, %cst_51 {dimension_numbers = #tpu.dot_dimension_numbers<[2], [2], [1], [1], [0, 0, 0, 1, 1, 1], [0], [0]>} : vector<2x8x8xf32>, vector<2x8x8xf32>, vector<2x8x8xf32> -> vector<2x8x8xf32>
    "tpu.trace_stop"() : () -> ()
    %86 = vector.shape_cast %32 : vector<8x8xf32> to vector<1x8x8xf32>
    %87 = vector.broadcast %86 : vector<1x8x8xf32> to vector<2x8x8xf32>
    %88 = arith.addf %85, %87 : vector<2x8x8xf32>
    %cst_52 = arith.constant dense<0xFF800000> : vector<2x8xf32>
    %89 = vector.multi_reduction <maximumf>, %88, %cst_52 [2] : vector<2x8x8xf32> to vector<2x8xf32>
    %90 = vector.shape_cast %89 : vector<2x8xf32> to vector<2x8x1xf32>
    %91 = vector.broadcast %90 : vector<2x8x1xf32> to vector<2x8x8xf32>
    %92 = arith.subf %88, %91 : vector<2x8x8xf32>
    %93 = math.exp %92 : vector<2x8x8xf32>
    %cst_53 = arith.constant dense<0.000000e+00> : vector<2x8xf32>
    %94 = vector.multi_reduction <add>, %93, %cst_53 [2] : vector<2x8x8xf32> to vector<2x8xf32>
    %95 = vector.shape_cast %94 : vector<2x8xf32> to vector<2x8x1xf32>
    %96 = tpu.reciprocal %95 {approx = true} : vector<2x8x1xf32> -> vector<2x8x1xf32>
    %97 = vector.broadcast %96 : vector<2x8x1xf32> to vector<2x8x8xf32>
    %98 = arith.mulf %93, %97 : vector<2x8x8xf32>
    "tpu.trace_start"() <{level = 10 : i32, message = "bqk,bkd->bqd"}> : () -> ()
    %cst_54 = arith.constant dense<0.000000e+00> : vector<2x8x8xf32>
    %99 = tpu.matmul %98, %84, %cst_54 {dimension_numbers = #tpu.dot_dimension_numbers<[2], [1], [1], [2], [0, 0, 0, 1, 1, 2], [0], [0]>} : vector<2x8x8xf32>, vector<2x8x8xf32>, vector<2x8x8xf32> -> vector<2x8x8xf32>
    "tpu.trace_stop"() : () -> ()
    %100 = vector.extract_strided_slice %59 {offsets = [0, 0, 16], sizes = [2, 8, 8], strides = [1, 1, 1]} : vector<2x8x96xf32> to vector<2x8x8xf32>
    %cst_55 = arith.constant 0.353553385 : f32
    %101 = vector.broadcast %cst_55 : f32 to vector<2x8x8xf32>
    %102 = arith.mulf %100, %101 : vector<2x8x8xf32>
    %103 = vector.extract_strided_slice %59 {offsets = [0, 0, 48], sizes = [2, 8, 8], strides = [1, 1, 1]} : vector<2x8x96xf32> to vector<2x8x8xf32>
    %104 = vector.extract_strided_slice %59 {offsets = [0, 0, 80], sizes = [2, 8, 8], strides = [1, 1, 1]} : vector<2x8x96xf32> to vector<2x8x8xf32>
    "tpu.trace_start"() <{level = 10 : i32, message = "bqd,bkd->bqk"}> : () -> ()
    %cst_56 = arith.constant dense<0.000000e+00> : vector<2x8x8xf32>
    %105 = tpu.matmul %102, %103, %cst_56 {dimension_numbers = #tpu.dot_dimension_numbers<[2], [2], [1], [1], [0, 0, 0, 1, 1, 1], [0], [0]>} : vector<2x8x8xf32>, vector<2x8x8xf32>, vector<2x8x8xf32> -> vector<2x8x8xf32>
    "tpu.trace_stop"() : () -> ()
    %106 = vector.shape_cast %32 : vector<8x8xf32> to vector<1x8x8xf32>
    %107 = vector.broadcast %106 : vector<1x8x8xf32> to vector<2x8x8xf32>
    %108 = arith.addf %105, %107 : vector<2x8x8xf32>
    %cst_57 = arith.constant dense<0xFF800000> : vector<2x8xf32>
    %109 = vector.multi_reduction <maximumf>, %108, %cst_57 [2] : vector<2x8x8xf32> to vector<2x8xf32>
    %110 = vector.shape_cast %109 : vector<2x8xf32> to vector<2x8x1xf32>
    %111 = vector.broadcast %110 : vector<2x8x1xf32> to vector<2x8x8xf32>
    %112 = arith.subf %108, %111 : vector<2x8x8xf32>
    %113 = math.exp %112 : vector<2x8x8xf32>
    %cst_58 = arith.constant dense<0.000000e+00> : vector<2x8xf32>
    %114 = vector.multi_reduction <add>, %113, %cst_58 [2] : vector<2x8x8xf32> to vector<2x8xf32>
    %115 = vector.shape_cast %114 : vector<2x8xf32> to vector<2x8x1xf32>
    %116 = tpu.reciprocal %115 {approx = true} : vector<2x8x1xf32> -> vector<2x8x1xf32>
    %117 = vector.broadcast %116 : vector<2x8x1xf32> to vector<2x8x8xf32>
    %118 = arith.mulf %113, %117 : vector<2x8x8xf32>
    "tpu.trace_start"() <{level = 10 : i32, message = "bqk,bkd->bqd"}> : () -> ()
    %cst_59 = arith.constant dense<0.000000e+00> : vector<2x8x8xf32>
    %119 = tpu.matmul %118, %104, %cst_59 {dimension_numbers = #tpu.dot_dimension_numbers<[2], [1], [1], [2], [0, 0, 0, 1, 1, 2], [0], [0]>} : vector<2x8x8xf32>, vector<2x8x8xf32>, vector<2x8x8xf32> -> vector<2x8x8xf32>
    "tpu.trace_stop"() : () -> ()
    %120 = vector.extract_strided_slice %59 {offsets = [0, 0, 24], sizes = [2, 8, 8], strides = [1, 1, 1]} : vector<2x8x96xf32> to vector<2x8x8xf32>
    %cst_60 = arith.constant 0.353553385 : f32
    %121 = vector.broadcast %cst_60 : f32 to vector<2x8x8xf32>
    %122 = arith.mulf %120, %121 : vector<2x8x8xf32>
    %123 = vector.extract_strided_slice %59 {offsets = [0, 0, 56], sizes = [2, 8, 8], strides = [1, 1, 1]} : vector<2x8x96xf32> to vector<2x8x8xf32>
    %124 = vector.extract_strided_slice %59 {offsets = [0, 0, 88], sizes = [2, 8, 8], strides = [1, 1, 1]} : vector<2x8x96xf32> to vector<2x8x8xf32>
    "tpu.trace_start"() <{level = 10 : i32, message = "bqd,bkd->bqk"}> : () -> ()
    %cst_61 = arith.constant dense<0.000000e+00> : vector<2x8x8xf32>
    %125 = tpu.matmul %122, %123, %cst_61 {dimension_numbers = #tpu.dot_dimension_numbers<[2], [2], [1], [1], [0, 0, 0, 1, 1, 1], [0], [0]>} : vector<2x8x8xf32>, vector<2x8x8xf32>, vector<2x8x8xf32> -> vector<2x8x8xf32>
    "tpu.trace_stop"() : () -> ()
    %126 = vector.shape_cast %32 : vector<8x8xf32> to vector<1x8x8xf32>
    %127 = vector.broadcast %126 : vector<1x8x8xf32> to vector<2x8x8xf32>
    %128 = arith.addf %125, %127 : vector<2x8x8xf32>
    %cst_62 = arith.constant dense<0xFF800000> : vector<2x8xf32>
    %129 = vector.multi_reduction <maximumf>, %128, %cst_62 [2] : vector<2x8x8xf32> to vector<2x8xf32>
    %130 = vector.shape_cast %129 : vector<2x8xf32> to vector<2x8x1xf32>
    %131 = vector.broadcast %130 : vector<2x8x1xf32> to vector<2x8x8xf32>
    %132 = arith.subf %128, %131 : vector<2x8x8xf32>
    %133 = math.exp %132 : vector<2x8x8xf32>
    %cst_63 = arith.constant dense<0.000000e+00> : vector<2x8xf32>
    %134 = vector.multi_reduction <add>, %133, %cst_63 [2] : vector<2x8x8xf32> to vector<2x8xf32>
    %135 = vector.shape_cast %134 : vector<2x8xf32> to vector<2x8x1xf32>
    %136 = tpu.reciprocal %135 {approx = true} : vector<2x8x1xf32> -> vector<2x8x1xf32>
    %137 = vector.broadcast %136 : vector<2x8x1xf32> to vector<2x8x8xf32>
    %138 = arith.mulf %133, %137 : vector<2x8x8xf32>
    "tpu.trace_start"() <{level = 10 : i32, message = "bqk,bkd->bqd"}> : () -> ()
    %cst_64 = arith.constant dense<0.000000e+00> : vector<2x8x8xf32>
    %139 = tpu.matmul %138, %124, %cst_64 {dimension_numbers = #tpu.dot_dimension_numbers<[2], [1], [1], [2], [0, 0, 0, 1, 1, 2], [0], [0]>} : vector<2x8x8xf32>, vector<2x8x8xf32>, vector<2x8x8xf32> -> vector<2x8x8xf32>
    "tpu.trace_stop"() : () -> ()
    %140 = tpu.concatenate %79, %99, %119, %139 in 2 : vector<2x8x8xf32>, vector<2x8x8xf32>, vector<2x8x8xf32>, vector<2x8x8xf32> -> vector<2x8x32xf32>
    %141 = vector.shape_cast %140 : vector<2x8x32xf32> to vector<16x32xf32>
    %cst_65 = arith.constant dense<0.000000e+00> : vector<16x32xf32>
    %142 = tpu.matmul %141, %12, %cst_65 {dimension_numbers = #tpu.dot_dimension_numbers<[1], [0], [0], [1], [0, 0, 1, 1], [], []>} : vector<16x32xf32>, vector<32x32xf32>, vector<16x32xf32> -> vector<16x32xf32>
    %143 = vector.broadcast %14 : vector<1x32xf32> to vector<16x32xf32>
    %144 = arith.addf %142, %143 : vector<16x32xf32>
    %145 = arith.addf %33, %144 : vector<16x32xf32>
    %cst_66 = arith.constant dense<0.000000e+00> : vector<16xf32>
    %146 = vector.multi_reduction <add>, %145, %cst_66 [1] : vector<16x32xf32> to vector<16xf32>
    %147 = vector.shape_cast %146 : vector<16xf32> to vector<16x1xf32>
    %cst_67 = arith.constant 3.200000e+01 : f32
    %148 = vector.broadcast %cst_67 : f32 to vector<16x1xf32>
    %149 = arith.divf %147, %148 : vector<16x1xf32>
    %150 = vector.broadcast %149 : vector<16x1xf32> to vector<16x32xf32>
    %151 = arith.subf %145, %150 : vector<16x32xf32>
    %152 = arith.mulf %151, %151 : vector<16x32xf32>
    %cst_68 = arith.constant dense<0.000000e+00> : vector<16xf32>
    %153 = vector.multi_reduction <add>, %152, %cst_68 [1] : vector<16x32xf32> to vector<16xf32>
    %154 = vector.shape_cast %153 : vector<16xf32> to vector<16x1xf32>
    %cst_69 = arith.constant 3.200000e+01 : f32
    %155 = vector.broadcast %cst_69 : f32 to vector<16x1xf32>
    %156 = arith.divf %154, %155 : vector<16x1xf32>
    %157 = vector.broadcast %149 : vector<16x1xf32> to vector<16x32xf32>
    %158 = arith.subf %145, %157 : vector<16x32xf32>
    %cst_70 = arith.constant 9.99999974E-6 : f32
    %159 = vector.broadcast %cst_70 : f32 to vector<16x1xf32>
    %160 = arith.addf %156, %159 : vector<16x1xf32>
    %161 = math.rsqrt %160 : vector<16x1xf32>
    %162 = vector.broadcast %161 : vector<16x1xf32> to vector<16x32xf32>
    %163 = arith.mulf %158, %162 : vector<16x32xf32>
    %164 = vector.broadcast %16 : vector<1x32xf32> to vector<16x32xf32>
    %165 = arith.mulf %163, %164 : vector<16x32xf32>
    %166 = vector.broadcast %18 : vector<1x32xf32> to vector<16x32xf32>
    %167 = arith.addf %165, %166 : vector<16x32xf32>
    %cst_71 = arith.constant dense<0.000000e+00> : vector<16x64xf32>
    %168 = tpu.matmul %167, %20, %cst_71 {dimension_numbers = #tpu.dot_dimension_numbers<[1], [0], [0], [1], [0, 0, 1, 1], [], []>} : vector<16x32xf32>, vector<32x64xf32>, vector<16x64xf32> -> vector<16x64xf32>
    %169 = vector.broadcast %22 : vector<1x64xf32> to vector<16x64xf32>
    %170 = arith.addf %168, %169 : vector<16x64xf32>
    %cst_72 = arith.constant 1.702000e+00 : f32
    %171 = vector.broadcast %cst_72 : f32 to vector<16x64xf32>
    %172 = arith.mulf %171, %170 : vector<16x64xf32>
    %173 = arith.negf %172 : vector<16x64xf32>
    %174 = math.exp %173 : vector<16x64xf32>
    %cst_73 = arith.constant 1.000000e+00 : f32
    %175 = vector.broadcast %cst_73 : f32 to vector<16x64xf32>
    %176 = arith.addf %175, %174 : vector<16x64xf32>
    %177 = arith.divf %175, %176 : vector<16x64xf32>
    %178 = arith.mulf %170, %177 : vector<16x64xf32>
    %cst_74 = arith.constant dense<0.000000e+00> : vector<16x32xf32>
    %179 = tpu.matmul %178, %24, %cst_74 {dimension_numbers = #tpu.dot_dimension_numbers<[1], [0], [0], [1], [0, 0, 1, 1], [], []>} : vector<16x64xf32>, vector<64x32xf32>, vector<16x32xf32> -> vector<16x32xf32>
    %180 = vector.broadcast %26 : vector<1x32xf32> to vector<16x32xf32>
    %181 = arith.addf %179, %180 : vector<16x32xf32>
    %182 = arith.addf %145, %181 : vector<16x32xf32>
    %c0_75 = arith.constant 0 : index
    %c0_76 = arith.constant 0 : index
    %183 = vector.load %arg24[%c0_75, %c0_76] : memref<16x32xf32, #tpu.memory_space<vmem>>, vector<16x32xf32>
    tpu.vector_store %arg24[%c0_75, %c0_76], %182 {strides = array<i32>} : memref<16x32xf32, #tpu.memory_space<vmem>>, vector<16x32xf32>,
    %c1_i32 = arith.constant 1 : i32
    %184 = arith.cmpi eq, %arg0, %c1_i32 : i32
    %185 = arith.extui %184 : i1 to i32
    %c0_i32_77 = arith.constant 0 : i32
    %186 = arith.cmpi ne, %185, %c0_i32_77 : i32
    scf.if %186 {
      %c0_78 = arith.constant 0 : index
      %c0_79 = arith.constant 0 : index
      %187 = vector.load %arg19[%c0_78, %c0_79] : memref<2x16xf32, #tpu.memory_space<vmem>>, vector<2x16xf32>
      %cst_80 = arith.constant dense<0.000000e+00> : vector<2x32xf32>
      %188 = tpu.matmul %187, %182, %cst_80 {dimension_numbers = #tpu.dot_dimension_numbers<[1], [0], [0], [1], [0, 0, 1, 1], [], []>} : vector<2x16xf32>, vector<16x32xf32>, vector<2x32xf32> -> vector<2x32xf32>
      %c0_81 = arith.constant 0 : index
      %c0_82 = arith.constant 0 : index
      %189 = vector.load %arg20[%c0_81, %c0_82] : memref<1x32xf32, #tpu.memory_space<vmem>>, vector<1x32xf32>
      %c0_83 = arith.constant 0 : index
      %c0_84 = arith.constant 0 : index
      %190 = vector.load %arg21[%c0_83, %c0_84] : memref<1x32xf32, #tpu.memory_space<vmem>>, vector<1x32xf32>
      %c0_85 = arith.constant 0 : index
      %c0_86 = arith.constant 0 : index
      %191 = vector.load %arg22[%c0_85, %c0_86] : memref<32x16xf32, #tpu.memory_space<vmem>>, vector<32x16xf32>
      %cst_87 = arith.constant dense<0.000000e+00> : vector<2xf32>
      %192 = vector.multi_reduction <add>, %188, %cst_87 [1] : vector<2x32xf32> to vector<2xf32>
      %193 = vector.shape_cast %192 : vector<2xf32> to vector<2x1xf32>
      %cst_88 = arith.constant 3.200000e+01 : f32
      %194 = vector.broadcast %cst_88 : f32 to vector<2x1xf32>
      %195 = arith.divf %193, %194 : vector<2x1xf32>
      %196 = vector.broadcast %195 : vector<2x1xf32> to vector<2x32xf32>
      %197 = arith.subf %188, %196 : vector<2x32xf32>
      %198 = arith.mulf %197, %197 : vector<2x32xf32>
      %cst_89 = arith.constant dense<0.000000e+00> : vector<2xf32>
      %199 = vector.multi_reduction <add>, %198, %cst_89 [1] : vector<2x32xf32> to vector<2xf32>
      %200 = vector.shape_cast %199 : vector<2xf32> to vector<2x1xf32>
      %cst_90 = arith.constant 3.200000e+01 : f32
      %201 = vector.broadcast %cst_90 : f32 to vector<2x1xf32>
      %202 = arith.divf %200, %201 : vector<2x1xf32>
      %203 = vector.broadcast %195 : vector<2x1xf32> to vector<2x32xf32>
      %204 = arith.subf %188, %203 : vector<2x32xf32>
      %cst_91 = arith.constant 9.99999974E-6 : f32
      %205 = vector.broadcast %cst_91 : f32 to vector<2x1xf32>
      %206 = arith.addf %202, %205 : vector<2x1xf32>
      %207 = math.rsqrt %206 : vector<2x1xf32>
      %208 = vector.broadcast %207 : vector<2x1xf32> to vector<2x32xf32>
      %209 = arith.mulf %204, %208 : vector<2x32xf32>
      %210 = vector.broadcast %189 : vector<1x32xf32> to vector<2x32xf32>
      %211 = arith.mulf %209, %210 : vector<2x32xf32>
      %212 = vector.broadcast %190 : vector<1x32xf32> to vector<2x32xf32>
      %213 = arith.addf %211, %212 : vector<2x32xf32>
      %cst_92 = arith.constant dense<0.000000e+00> : vector<2x16xf32>
      %214 = tpu.matmul %213, %191, %cst_92 {dimension_numbers = #tpu.dot_dimension_numbers<[1], [0], [0], [1], [0, 0, 1, 1], [], []>} : vector<2x32xf32>, vector<32x16xf32>, vector<2x16xf32> -> vector<2x16xf32>
      %215 = arith.mulf %214, %214 : vector<2x16xf32>
      %cst_93 = arith.constant dense<0.000000e+00> : vector<2xf32>
      %216 = vector.multi_reduction <add>, %215, %cst_93 [1] : vector<2x16xf32> to vector<2xf32>
      %217 = vector.shape_cast %216 : vector<2xf32> to vector<2x1xf32>
      %cst_94 = arith.constant 1.000000e-24 : f32
      %218 = vector.broadcast %cst_94 : f32 to vector<2x1xf32>
      %219 = arith.maximumf %217, %218 : vector<2x1xf32>
      %220 = math.rsqrt %219 : vector<2x1xf32>
      %221 = vector.broadcast %220 : vector<2x1xf32> to vector<2x16xf32>
      %222 = arith.mulf %214, %221 : vector<2x16xf32>
      %c0_95 = arith.constant 0 : index
      %c0_96 = arith.constant 0 : index
      %223 = vector.load %arg23[%c0_95, %c0_96] : memref<2x16xf32, #tpu.memory_space<vmem>>, vector<2x16xf32>
      tpu.vector_store %arg23[%c0_95, %c0_96], %222 {strides = array<i32>} : memref<2x16xf32, #tpu.memory_space<vmem>>, vector<2x16xf32>,
    } else {
    }
    return
  }
  func.func @transform_0(%arg0: i32) -> (i32, i32, i32) {
    %c0_i32 = arith.constant 0 : i32
    %c0_i32_0 = arith.constant 0 : i32
    %c0_i32_1 = arith.constant 0 : i32
    %c0_i32_2 = arith.constant 0 : i32
    return %c0_i32, %c0_i32_0, %c0_i32_1 : i32, i32, i32
  }
  func.func @transform_1(%arg0: i32) -> (i32, i32) {
    %c0_i32 = arith.constant 0 : i32
    %c0_i32_0 = arith.constant 0 : i32
    %c0_i32_1 = arith.constant 0 : i32
    return %c0_i32, %c0_i32_0 : i32, i32
  }
  func.func @transform_2(%arg0: i32) -> (i32, i32) {
    %c0_i32 = arith.constant 0 : i32
    %c0_i32_0 = arith.constant 0 : i32
    %c0_i32_1 = arith.constant 0 : i32
    return %c0_i32, %c0_i32_0 : i32, i32
  }
  func.func @transform_3(%arg0: i32) -> (i32, i32) {
    %c0_i32 = arith.constant 0 : i32
    %c0_i32_0 = arith.constant 0 : i32
    %c0_i32_1 = arith.constant 0 : i32
    return %c0_i32, %c0_i32_0 : i32, i32
  }
  func.func @transform_4(%arg0: i32) -> (i32, i32) {
    %c0_i32 = arith.constant 0 : i32
    %c0_i32_0 = arith.constant 0 : i32
    %c0_i32_1 = arith.constant 0 : i32
    return %c0_i32, %c0_i32_0 : i32, i32
  }
  func.func @transform_5(%arg0: i32) -> (i32, i32) {
    %c0_i32 = arith.constant 0 : i32
    %c0_i32_0 = arith.constant 0 : i32
    %c0_i32_1 = arith.constant 0 : i32
    return %c0_i32, %c0_i32_0 : i32, i32
  }
  func.func @transform_6(%arg0: i32) -> (i32, i32, i32) {
    %c0_i32 = arith.constant 0 : i32
    %c0_i32_0 = arith.constant 0 : i32
    %c0_i32_1 = arith.constant 0 : i32
    return %arg0, %c0_i32, %c0_i32_0 : i32, i32, i32
  }
  func.func @transform_7(%arg0: i32) -> (i32, i32, i32) {
    %c0_i32 = arith.constant 0 : i32
    %c0_i32_0 = arith.constant 0 : i32
    %c0_i32_1 = arith.constant 0 : i32
    return %arg0, %c0_i32, %c0_i32_0 : i32, i32, i32
  }
  func.func @transform_8(%arg0: i32) -> (i32, i32, i32) {
    %c0_i32 = arith.constant 0 : i32
    %c0_i32_0 = arith.constant 0 : i32
    %c0_i32_1 = arith.constant 0 : i32
    return %arg0, %c0_i32, %c0_i32_0 : i32, i32, i32
  }
  func.func @transform_9(%arg0: i32) -> (i32, i32, i32) {
    %c0_i32 = arith.constant 0 : i32
    %c0_i32_0 = arith.constant 0 : i32
    %c0_i32_1 = arith.constant 0 : i32
    return %arg0, %c0_i32, %c0_i32_0 : i32, i32, i32
  }
  func.func @transform_10(%arg0: i32) -> (i32, i32, i32) {
    %c0_i32 = arith.constant 0 : i32
    %c0_i32_0 = arith.constant 0 : i32
    %c0_i32_1 = arith.constant 0 : i32
    return %arg0, %c0_i32, %c0_i32_0 : i32, i32, i32
  }
  func.func @transform_11(%arg0: i32) -> (i32, i32, i32) {
    %c0_i32 = arith.constant 0 : i32
    %c0_i32_0 = arith.constant 0 : i32
    %c0_i32_1 = arith.constant 0 : i32
    return %arg0, %c0_i32, %c0_i32_0 : i32, i32, i32
  }
  func.func @transform_12(%arg0: i32) -> (i32, i32, i32) {
    %c0_i32 = arith.constant 0 : i32
    %c0_i32_0 = arith.constant 0 : i32
    %c0_i32_1 = arith.constant 0 : i32
    return %arg0, %c0_i32, %c0_i32_0 : i32, i32, i32
  }
  func.func @transform_13(%arg0: i32) -> (i32, i32, i32) {
    %c0_i32 = arith.constant 0 : i32
    %c0_i32_0 = arith.constant 0 : i32
    %c0_i32_1 = arith.constant 0 : i32
    return %arg0, %c0_i32, %c0_i32_0 : i32, i32, i32
  }
  func.func @transform_14(%arg0: i32) -> (i32, i32, i32) {
    %c0_i32 = arith.constant 0 : i32
    %c0_i32_0 = arith.constant 0 : i32
    %c0_i32_1 = arith.constant 0 : i32
    return %arg0, %c0_i32, %c0_i32_0 : i32, i32, i32
  }
  func.func @transform_15(%arg0: i32) -> (i32, i32, i32) {
    %c0_i32 = arith.constant 0 : i32
    %c0_i32_0 = arith.constant 0 : i32
    %c0_i32_1 = arith.constant 0 : i32
    return %arg0, %c0_i32, %c0_i32_0 : i32, i32, i32
  }
  func.func @transform_16(%arg0: i32) -> (i32, i32, i32) {
    %c0_i32 = arith.constant 0 : i32
    %c0_i32_0 = arith.constant 0 : i32
    %c0_i32_1 = arith.constant 0 : i32
    return %arg0, %c0_i32, %c0_i32_0 : i32, i32, i32
  }
  func.func @transform_17(%arg0: i32) -> (i32, i32, i32) {
    %c0_i32 = arith.constant 0 : i32
    %c0_i32_0 = arith.constant 0 : i32
    %c0_i32_1 = arith.constant 0 : i32
    return %arg0, %c0_i32, %c0_i32_0 : i32, i32, i32
  }
  func.func @transform_18(%arg0: i32) -> (i32, i32) {
    %c0_i32 = arith.constant 0 : i32
    %c0_i32_0 = arith.constant 0 : i32
    %c0_i32_1 = arith.constant 0 : i32
    return %c0_i32, %c0_i32_0 : i32, i32
  }
  func.func @transform_19(%arg0: i32) -> (i32, i32) {
    %c0_i32 = arith.constant 0 : i32
    %c0_i32_0 = arith.constant 0 : i32
    %c0_i32_1 = arith.constant 0 : i32
    return %c0_i32, %c0_i32_0 : i32, i32
  }
  func.func @transform_20(%arg0: i32) -> (i32, i32) {
    %c0_i32 = arith.constant 0 : i32
    %c0_i32_0 = arith.constant 0 : i32
    %c0_i32_1 = arith.constant 0 : i32
    return %c0_i32, %c0_i32_0 : i32, i32
  }
  func.func @transform_21(%arg0: i32) -> (i32, i32) {
    %c0_i32 = arith.constant 0 : i32
    %c0_i32_0 = arith.constant 0 : i32
    %c0_i32_1 = arith.constant 0 : i32
    return %c0_i32, %c0_i32_0 : i32, i32
  }
  func.func @transform_22(%arg0: i32) -> (i32, i32) {
    %c0_i32 = arith.constant 0 : i32
    %c0_i32_0 = arith.constant 0 : i32
    %c0_i32_1 = arith.constant 0 : i32
    return %c0_i32, %c0_i32_0 : i32, i32
  }
}

</mosaic_0001>

<bundles_post_ra>
// kernel: clip_forward.3
= control target key start
LH: loop header
LB: loop body
LE: loop exit
PB: predicated region body
PF: predicated region fallthrough
CT: control target
= control target key end

     0   :  { %s2482_s0 = inlined_call_operand.vmem [shape: f32[16,32], index: 0, kind: input, shape index: {}]   ;;  %s2483_s1 = inlined_call_operand.vmem [shape: f32[2,16], index: 1, kind: input, shape index: {}]   ;;  %s2484_s2 = inlined_call_operand.vmem [shape: f32[2,1,32], index: 2, kind: input, shape index: {}]   ;;  %s2485_s3 = inlined_call_operand.vmem [shape: f32[2,1,32], index: 3, kind: input, shape index: {}]   ;;  %s2486_s4 = inlined_call_operand.vmem [shape: f32[2,32,96], index: 4, kind: input, shape index: {}]   ;;  %s2487_s5 = inlined_call_operand.vmem [shape: f32[2,1,96], index: 5, kind: input, shape index: {}]   ;;  %s2488_s6 = inlined_call_operand.vmem [shape: f32[2,32,32], index: 6, kind: input, shape index: {}]   ;;  %s2489_s7 = inlined_call_operand.vmem [shape: f32[2,1,32], index: 7, kind: input, shape index: {}]   ;;  %s2490_s8 = inlined_call_operand.vmem [shape: f32[2,1,32], index: 8, kind: input, shape index: {}]   ;;  %s2491_s9 = inlined_call_operand.vmem [shape: f32[2,1,32], index: 9, kind: input, shape index: {}]   ;;  %s2492_s10 = inlined_call_operand.vmem [shape: f32[2,32,64], index: 10, kind: input, shape index: {}]   ;;  %s2493_s11 = inlined_call_operand.vmem [shape: f32[2,1,64], index: 11, kind: input, shape index: {}]   ;;  %s2494_s12 = inlined_call_operand.vmem [shape: f32[2,64,32], index: 12, kind: input, shape index: {}]   ;;  %s2495_s13 = inlined_call_operand.vmem [shape: f32[2,1,32], index: 13, kind: input, shape index: {}]   ;;  %s2496_s14 = inlined_call_operand.vmem [shape: f32[1,32], index: 14, kind: input, shape index: {}]   ;;  %s2497_s15 = inlined_call_operand.vmem [shape: f32[1,32], index: 15, kind: input, shape index: {}]   ;;  %s2498_s16 = inlined_call_operand.vmem [shape: f32[32,16], index: 16, kind: input, shape index: {}]   ;;  %s2499_s17 = inlined_call_operand.hbm [shape: f32[2,16], index: 17, kind: output, shape index: {}]  }
   0x1   :  { %2503 = sst [smem:[#allocation7_spill]] %s2482_s0 }
   0x2   :  { %2504 = sst [smem:[#allocation8_spill]] %s2483_s1 }
   0x3   :  { %2505 = sst [smem:[#allocation9_spill]] %s2486_s4 }
   0x4   :  { %2506 = sst [smem:[#allocation10_spill]] %s2488_s6 }
   0x5   :  { %2507 = sst [smem:[#allocation11_spill]] %s2496_s14 }
   0x6   :  { %2508 = sst [smem:[#allocation12_spill]] %s2497_s15 }
   0x7   :  { %2509 = sst [smem:[#allocation13_spill]] %s2498_s16 }
   0x8   :  { %2510 = sst [smem:[#allocation14_spill]] %s2499_s17 }
   0x9   :  { %22 = vsyncpa [#allocation4], 0  ;;  %s2167_s24 = smov 0  }
   0xa LB: > { %2511 = sst [smem:[#allocation6_spill]] %s2058_s24  ;;  %s2173_s25 = sadd.s32 4294967295, %s2058_s24   ;;  %s2058_s24 = sphi %s2167_s24, %s28_s24  }
   0xb   : > { %p1865_p0 = scmp.ge.s32.totalorder %s2058_s24, 1  ;;  %p577_p1 = scmp.lt.s32.totalorder %s2058_s24, 3 }
   0xd   : > { %p578_p2 = pnand %p1865_p0, %p577_p1 }
   0xe   : > { %p663_p3 = scmp.lt.s32.totalorder (!%p578_p2), %s2173_s25, 1  ;;  %s2512_s4 = sld [smem:[#allocation9_spill]] (!%p578_p2) }
   0xf   : > { %581 = sbr.rel (%p578_p2) target bundleno = 3013 (0xbc5), region = 88  ;;  %s2513_s6 = sld [smem:[#allocation10_spill]] (!%p578_p2) }
  0x10   : > { %p1874_p4 = scmp.ne.s32.totalorder (!%p578_p2), %s2173_s25, 0 }
  0x14   : > { %s2179_s26 = scalar_select %p663_p3, %s2173_s25, 1 }
  0x15   : > { %s2514_s22 = sld [smem:[#allocation7_spill]] (!%p1874_p4) }
  0x16   : > { %s1916_s19 = sshll.u32 %s2179_s26, 5  ;;  %s687_s14 = scalar_lea.vmem %s2490_s8, %s2179_s26 }
  0x17   : > { %s2197_s27 = scalar_lea.vmem %s2512_s4, %s1916_s19  ;;  %s2202_s17 = scalar_lea.vmem %s2513_s6, %s1916_s19 }
  0x18   : > { %s690_s21 = scalar_lea.vmem %s2491_s9, %s2179_s26  ;;  %s2219_s4 = scalar_lea.vmem %s2492_s10, %s1916_s19 }
  0x19   : > { %s698_s6 = scalar_lea.vmem %s2493_s11, %s2179_s26  ;;  %s1919_s16 = sshll.u32 %s2179_s26, 6 }
  0x1a   : > { %s2229_s0 = scalar_lea.vmem %s2494_s12, %s1919_s16  ;;  %s706_s1 = scalar_lea.vmem %s2495_s13, %s2179_s26 }
  0x1b   : > { %710 = sbr.rel (%p1874_p4) target bundleno = 35 (0x23), region = 92 }
  0x20   : > { %v711_v0 = vld [vmem:[%s2514_s22] sm:$0xff]  ;;  %vm713_vm0 = vcmask 261120   ;;  %v712_v1 = vld [vmem:[%s2514_s22 + $0x8] sm:$0xff] }
  0x21   : > { %714 = vst.msk [vmem:[#allocation2] sm:$0xff] %vm713_vm0, %v711_v0 }
  0x22   : > { %715 = vst.msk [vmem:[#allocation2 + $0x8] sm:$0xff] %vm713_vm0, %v712_v1 }
  0x23 PF: > { %vm752_vm1 = vcmask 261120   ;;  %v2060_v6 = vmov 32.0   ;;  %v721_v23 = vld [vmem:[%s2197_s27 + $0x18] sm:$0xff]  ;;  %v720_v24 = vld [vmem:[%s2197_s27 + $0x10] sm:$0xff]  ;;  %v719_v25 = vld [vmem:[%s2197_s27 + $0x8] sm:$0xff]  ;;  %s2515_s28 = scalar_lea.vmem %s2484_s2, %s2179_s26  ;;  %s2516_s18 = scalar_lea.vmem %s2485_s3, %s2179_s26  ;;  %vm851_vm9 = vcmask 64512  }
  0x24   : > { %1964 = vrcp.f32 %v2060_v6  ;;  %835 = vmatpush.msra.mxu0 %v721_v23  ;;  %v718_v26 = vld [vmem:[%s2197_s27] sm:$0xff]  ;;  %s2517_s19 = scalar_lea.vmem %s2487_s5, %s2179_s26  ;;  %s2061_s23 = smov 64   ;;  %vm1395_vm11 = vcmask 130048   ;;  %vm1398_vm12 = vcmask 195584  }
  0x25   : > { %v1956_v45 = vld [vmem:[%s2515_s28] ss:$0 sm:$0xff]  ;;  %s2062_s24 = smov 96   ;;  %s2063_s16 = smov 80  }
  0x26   : > { %836 = vmatpush.msra.mxu0 %v720_v24  ;;  %v1957_v49 = vld [vmem:[%s2516_s18] ss:$0 sm:$0xff]  ;;  %s2064_s27 = smov 88   ;;  %s2065_s28 = smov 72  }
  0x27   : > { %v1958_v55 = vld [vmem:[%s2517_s19] ss:$0 sm:$0xff]  ;;  %s2066_s15 = smov 112   ;;  %s2067_s29 = smov 104  }
  0x28   : > { %v2242_v2 = vld [vmem:[#allocation2] sm:$0xff]  ;;  %837 = vmatpush.msra.mxu0 %v719_v25  ;;  %s2069_s18 = smov 120   ;;  %s2070_s30 = smov 48  }
  0x29   : > { %v2244_v3 = vld [vmem:[#allocation2 + $0x8] sm:$0xff]  ;;  %v753_v4 = vsel %vm752_vm1, %v2242_v2, 0.0  ;;  %s2071_s20 = smov 40   ;;  %s2072_s19 = smov 56  }
  0x2a   : > { %v756_v5 = vsel %vm752_vm1, %v2244_v3, 0.0  ;;  %754 = vadd.xlane.f32.xlu0 %v753_v4  ;;  %v1965_v7 = vpop.eup %1964  ;;  %838 = vmatpush.msra.mxu0 %v718_v26  ;;  %v744_v4 = vlaneseq  ;;  %p1909_p5 = scmp.ne.s32.totalorder %s2173_s25, 1 }
  0x2b   : > { %757 = vadd.xlane.f32.xlu1 %v756_v5  ;;  %v760_v8 = vmul.f32 32.0, %v1965_v7  ;;  %vm764_vm2 = vweird.f32 %v1965_v7 }
  0x2c   : > { %v745_v5 = vshrl.u32 %v744_v4, 7  ;;  %v747_v6 = vand.u32 127, %v744_v4 }
  0x2d   : > { %v761_v9 = vsub.f32 1.0, %v760_v8 }
  0x2e   : > { %vm748_vm10 = vcmp.gt.s32.totalorder %v747_v6, %v745_v5 }
  0x2f   : > { %v762_v10 = vmul.f32 %v1965_v7, %v761_v9 }
  0x31   : > { %v763_v11 = vadd.f32 %v1965_v7, %v762_v10 }
  0x33   : > { %v2250_v12 = vsel %vm764_vm2, %v1965_v7, %v763_v11  ;;  %v2068_v7 = vmov 0.0  }
  0x34   : > { %v2301_v8 = vsel %vm748_vm10, -1e+09, %v2068_v7 }
  0x9d   : > { %v755_v13 = vpop.xlane.xlu0 %754 }
  0x9e   : > { %v758_v14 = vpop.xlane.xlu1 %757  ;;  %v766_v15 = vmul.f32 %v2250_v12, %v755_v13 }
  0x9f   : > { %v767_v16 = vmul.f32 %v2250_v12, %v758_v14 }
  0xa0   : > { %v768_v17 = vsub.f32 %v2242_v2, %v766_v15 }
  0xa1   : > { %v769_v18 = vsub.f32 %v2244_v3, %v767_v16 }
  0xa2   : > { %v770_v19 = vmul.f32 %v768_v17, %v768_v17 }
  0xa3   : > { %v771_v20 = vmul.f32 %v769_v18, %v769_v18 }
  0xa4   : > { %v772_v21 = vsel %vm752_vm1, %v770_v19, 0.0 }
  0xa5   : > { %v775_v22 = vsel %vm752_vm1, %v771_v20, 0.0  ;;  %773 = vadd.xlane.f32.xlu0 %v772_v21 }
  0xa6   : > { %776 = vadd.xlane.f32.xlu2 %v775_v22 }
 0x118   : > { %v774_v27 = vpop.xlane.xlu0 %773 }
 0x119   : > { %v777_v28 = vpop.xlane.xlu2 %776  ;;  %v778_v29 = vmul.f32 %v774_v27, %v2250_v12 }
 0x11a   : > { %v779_v30 = vmul.f32 %v777_v28, %v2250_v12 }
 0x11b   : > { %v780_v31 = vadd.f32 1e-05, %v778_v29 }
 0x11c   : > { %v781_v32 = vadd.f32 1e-05, %v779_v30 }
 0x11d   : > { %1966 = vrsqrt.f32 %v780_v31  ;;  %vm788_vm6 = vweird.f32 %v780_v31 }
 0x11e   : > { %1968 = vrsqrt.f32 %v781_v32  ;;  %vm798_vm3 = vweird.f32 %v781_v32 }
 0x123   : > { %v1967_v33 = vpop.eup %1966 }
 0x124   : > { %v1969_v34 = vpop.eup %1968  ;;  %v783_v35 = vmul.f32 %v1967_v33, %v780_v31  ;;  %vm789_vm5 = vweird.f32 %v1967_v33 }
 0x125   : > { %v793_v36 = vmul.f32 %v1969_v34, %v781_v32  ;;  %vm799_vm4 = vweird.f32 %v1969_v34  ;;  %vm790_vm8 = vmor %vm788_vm6, %vm789_vm5 }
 0x126   : > { %v784_v37 = vmul.f32 %v1967_v33, %v783_v35  ;;  %vm800_vm7 = vmor %vm798_vm3, %vm799_vm4 }
 0x127   : > { %v794_v38 = vmul.f32 %v1969_v34, %v793_v36 }
 0x128   : > { %v785_v39 = vmul.f32 0.5, %v784_v37 }
 0x129   : > { %v795_v40 = vmul.f32 0.5, %v794_v38 }
 0x12a   : > { %v786_v41 = vsub.f32 1.5, %v785_v39 }
 0x12b   : > { %v796_v42 = vsub.f32 1.5, %v795_v40 }
 0x12c   : > { %v787_v43 = vmul.f32 %v1967_v33, %v786_v41 }
 0x12d   : > { %v797_v44 = vmul.f32 %v1969_v34, %v796_v42 }
 0x12e   : > { %v791_v46 = vsel %vm790_vm8, %v1967_v33, %v787_v43  ;;  %vm1566_vm8 = vcmask 523264  }
 0x12f   : > { %v801_v47 = vsel %vm800_vm7, %v1969_v34, %v797_v44  ;;  %v802_v48 = vmul.f32 %v791_v46, %v768_v17 }
 0x130   : > { %v803_v51 = vmul.f32 %v801_v47, %v769_v18 }
 0x131   : > { %v807_v50 = vmul.f32 %v1956_v45, %v802_v48 }
 0x132   : > { %v808_v53 = vmul.f32 %v1956_v45, %v803_v51 }
 0x133   : > { %v812_v52 = vadd.f32 %v1957_v49, %v807_v50 }
 0x134   : > { %v813_v54 = vadd.f32 %v1957_v49, %v808_v53 }
 0x135   : > { %1875 = vmatmul.msk.f32.vlgmr.msra.gmra.mxu0 %vm752_vm1, %v812_v52 }
 0x13d   : > { %1876 = vmatmul.msk.f32.gmra.mxu0 %vm752_vm1, %v813_v54 }
 0x1b2   : > { %v840_v56 = vpop.f32.mrf.mxu0 }
 0x1b3   : > { %v2281_v57 = vadd.f32 %v1958_v55, %v840_v56 }
 0x1b5   : > { %927 = vrot.lane.b32.xlu0 %v2281_v57, %s2061_s23  ;;  %849 = vrot.lane.b32.xlu1 %v2281_v57, %s2062_s24  ;;  %v846_v60 = vmul.f32 0.35355338, %v2281_v57 }
 0x1ba   : > { %v843_v58 = vpop.f32.mrf.mxu0 }
 0x1bb   : > { %v2287_v59 = vadd.f32 %v1958_v55, %v843_v58 }
 0x1bd   : > { %1111 = vrot.lane.b32.xlu0 %v2281_v57, %s2063_s16  ;;  %1009 = vrot.lane.b32.xlu1 %v2287_v59, %s2064_s27  ;;  %v847_v61 = vmul.f32 0.35355338, %v2287_v59 }
 0x1c5   : > { %1241 = vrot.lane.b32.xlu0 %v2281_v57, %s2065_s28  ;;  %981 = vrot.lane.b32.xlu1 %v2281_v57, %s2064_s27 }
 0x1cd   : > { %1109 = vrot.lane.b32.xlu1 %v846_v60, %s2066_s15 }
 0x1d5   : > { %1139 = vrot.lane.b32.xlu1 %v2287_v59, %s2063_s16  ;;  %s2075_s16 = smov 24  }
 0x1dd   : > { %1267 = vrot.lane.b32.xlu1 %v847_v61, %s2067_s29 }
 0x227   : > { %v928_v62 = vpop.permute.xlu0 %927  ;;  %v850_v63 = vpop.permute.xlu1 %849 }
 0x228   : > { %1877 = vmatpush.xpose.msk.msra.mxu1 %vm851_vm9, %v850_v63 }
 0x22b   : > { %1878 = vmatmul.msk.f32.vlgmr.msra.gmra.mxu1 %vm851_vm9, %v846_v60 }
 0x22c   : > { %948 = vmatpush.msrb.mxu1 %v928_v62 }
 0x22f   : > { %v1010_v0 = vpop.permute.xlu1 %1009  ;;  %v1112_v19 = vpop.permute.xlu0 %1111 }
 0x237   : > { %v982_v1 = vpop.permute.xlu1 %981  ;;  %v1242_v23 = vpop.permute.xlu0 %1241 }
 0x238   : > { %1883 = vmatpush.xpose.msk.msra.mxu1 %vm851_vm9, %v982_v1 }
 0x23f   : > { %v1110_v13 = vpop.permute.xlu1 %1109 }
 0x247   : > { %v1140_v14 = vpop.permute.xlu1 %1139 }
 0x248   : > { %1891 = vmatpush.xpose.msk.msrb.mxu0 %vm851_vm9, %v1140_v14 }
 0x24f   : > { %v1268_v37 = vpop.permute.xlu1 %1267 }
 0x2a8   : > { %v874_v9 = vpop.f32.mrf.mxu1 }
 0x2a9   : > { %v875_v10 = vadd.f32 %v874_v9, %v2301_v8 }
 0x2ab   : > { %v905_v11 = vsel %vm851_vm9, %v875_v10, -inf }
 0x2ac   : > { %906 = vmax.xlane.f32.xlu2 %v905_v11 }
 0x2c4   : > { %878 = vrot.lane.b32.xlu2 %v2287_v59, %s2062_s24  ;;  %s2074_s24 = smov 16  }
 0x2cc   : > { %1007 = vrot.lane.b32.xlu2 %v847_v61, %s2069_s18 }
 0x2d4   : > { %979 = vrot.lane.b32.xlu2 %v846_v60, %s2069_s18  ;;  %s2521_s18 = sld [smem:[#allocation11_spill]] (!%p1909_p5) }
 0x2dc   : > { %1239 = vrot.lane.b32.xlu2 %v846_v60, %s2067_s29 }
 0x2e4   : > { %1269 = vrot.lane.b32.xlu2 %v2287_v59, %s2065_s28  ;;  %s2518_s28 = scalar_lea.vmem %s2489_s7, %s2179_s26  ;;  %s2519_s26 = sld [smem:[#allocation8_spill]] (!%p1909_p5) }
 0x31f   : > { %v907_v15 = vpop.xlane.xlu2 %906 }
 0x320   : > { %v911_v16 = vsub.f32 %v875_v10, %v907_v15 }
 0x322   : > { %v913_v17 = vmul.f32 1.442695, %v911_v16 }
 0x324   : > { %1970 = vpow2.f32 %v913_v17 }
 0x327   : > { %v879_v18 = vpop.permute.xlu2 %878 }
 0x328   : > { %1879 = vmatpush.xpose.msk.msra.mxu2 %vm851_vm9, %v879_v18 }
 0x32a   : > { %v1971_v20 = vpop.eup %1970 }
 0x32b   : > { %1880 = vmatmul.msk.f32.vlgmr.msra.gmra.mxu2 %vm851_vm9, %v847_v61  ;;  %v917_v21 = vsel %vm851_vm9, %v1971_v20, 0.0 }
 0x32c   : > { %1885 = vmatpush.xpose.msk.msrb.mxu2 %vm851_vm9, %v1010_v0  ;;  %918 = vadd.xlane.f32.xlu0 %v917_v21 }
 0x32f   : > { %v1008_v22 = vpop.permute.xlu2 %1007 }
 0x330   : > { %1889 = vmatpush.xpose.msk.msra.mxu2 %vm851_vm9, %v1112_v19 }
 0x333   : > { %1886 = vmatmul.msk.f32.vlgmr.msrb.gmra.mxu2 %vm851_vm9, %v1008_v22 }
 0x334   : > { %1895 = vmatpush.xpose.msk.msrb.mxu2 %vm851_vm9, %v1242_v23 }
 0x337   : > { %v980_v24 = vpop.permute.xlu2 %979 }
 0x33b   : > { %1890 = vmatmul.msk.f32.vlgmr.msra.gmra.mxu2 %vm851_vm9, %v1110_v13 }
 0x33f   : > { %v1240_v25 = vpop.permute.xlu2 %1239 }
 0x340   : > { %1137 = vrot.lane.b32.xlu0 %v847_v61, %s2066_s15 }
 0x343   : > { %1896 = vmatmul.msk.f32.vlgmr.msrb.gmra.mxu2 %vm851_vm9, %v1240_v25 }
 0x347   : > { %v1270_v26 = vpop.permute.xlu2 %1269 }
 0x348   : > { %1897 = vmatpush.xpose.msk.msra.mxu0 %vm851_vm9, %v1270_v26 }
 0x39f   : > { %v919_v27 = vpop.xlane.xlu0 %918 }
 0x3a0   : > { %1972 = vrcp.f32 %v919_v27 }
 0x3a6   : > { %v1973_v28 = vpop.eup %1972 }
 0x3a7   : > { %v925_v29 = vmul.f32 %v1973_v28, %v1971_v20 }
 0x3a9   : > { %1881 = vmatmul.msk.f32.vlgmr.msrb.gmra.mxu1 %vm851_vm9, %v925_v29 }
 0x3ae   : > { %v902_v30 = vpop.f32.mrf.mxu2 }
 0x3af   : > { %v903_v31 = vadd.f32 %v902_v30, %v2301_v8  ;;  %v1951_v30 = vpack.i.bf16 %v2287_v59, %v2281_v57 }
 0x3b1   : > { %1884 = vmatmul.msk.f32.vlgmr.msra.gmra.mxu1 %vm851_vm9, %v980_v24  ;;  %v908_v32 = vsel %vm851_vm9, %v903_v31, -inf }
 0x3b2   : > { %v1138_v33 = vpop.permute.xlu0 %1137  ;;  %909 = vmax.xlane.f32.xlu0 %v908_v32 }
 0x3b3   : > { %1892 = vmatmul.msk.f32.vlgmr.msrb.gmra.mxu0 %vm851_vm9, %v1138_v33 }
 0x3b6   : > { %v1032_v34 = vpop.f32.mrf.mxu2 }
 0x3b7   : > { %v1033_v35 = vadd.f32 %v1032_v34, %v2301_v8 }
 0x3b9   : > { %v1038_v36 = vsel %vm851_vm9, %v1033_v35, -inf }
 0x3ba   : > { %1039 = vmax.xlane.f32.xlu0 %v1038_v36 }
 0x3bb   : > { %1898 = vmatmul.msk.f32.vlgmr.msra.gmra.mxu0 %vm851_vm9, %v1268_v37 }
 0x3be   : > { %v1134_v38 = vpop.f32.mrf.mxu2 }
 0x3bf   : > { %v1135_v39 = vadd.f32 %v1134_v38, %v2301_v8 }
 0x3c1   : > { %v1165_v40 = vsel %vm851_vm9, %v1135_v39, -inf }
 0x3c2   : > { %1166 = vmax.xlane.f32.xlu1 %v1165_v40 }
 0x3c6   : > { %v1264_v49 = vpop.f32.mrf.mxu2 }
 0x3c7   : > { %v1265_v52 = vadd.f32 %v1264_v49, %v2301_v8 }
 0x3c9   : > { %v1295_v58 = vsel %vm851_vm9, %v1265_v52, -inf }
 0x425   : > { %v910_v42 = vpop.xlane.xlu0 %909 }
 0x426   : > { %v2331_v41 = vpop.f32.mrf.mxu1  ;;  %v912_v45 = vsub.f32 %v903_v31, %v910_v42 }
 0x428   : > { %v915_v51 = vmul.f32 1.442695, %v912_v45 }
 0x42a   : > { %1974 = vpow2.f32 %v915_v51 }
 0x42d   : > { %v1040_v62 = vpop.xlane.xlu0 %1039 }
 0x42e   : > { %v1004_v43 = vpop.f32.mrf.mxu1  ;;  %v1042_v0 = vsub.f32 %v1033_v35, %v1040_v62 }
 0x42f   : > { %v1005_v44 = vadd.f32 %v1004_v43, %v2301_v8 }
 0x430   : > { %v1162_v46 = vpop.f32.mrf.mxu0  ;;  %v1975_v63 = vpop.eup %1974  ;;  %v1045_v4 = vmul.f32 1.442695, %v1042_v0 }
 0x431   : > { %v1163_v47 = vadd.f32 %v1162_v46, %v2301_v8  ;;  %v1035_v48 = vsel %vm851_vm9, %v1005_v44, -inf  ;;  %v920_v1 = vsel %vm851_vm9, %v1975_v63, 0.0 }
 0x432   : > { %1036 = vmax.xlane.f32.xlu2 %v1035_v48 }
 0x433   : > { %v1168_v50 = vsel %vm851_vm9, %v1163_v47, -inf }
 0x434   : > { %1169 = vmax.xlane.f32.xlu1 %v1168_v50 }
 0x435   : > { %v1167_v53 = vpop.xlane.xlu1 %1166 }
 0x436   : > { %v1171_v54 = vsub.f32 %v1135_v39, %v1167_v53 }
 0x438   : > { %v1292_v55 = vpop.f32.mrf.mxu0  ;;  %v1173_v61 = vmul.f32 1.442695, %v1171_v54 }
 0x439   : > { %v1293_v56 = vadd.f32 %v1292_v55, %v2301_v8 }
 0x43a   : > { %1296 = vmax.xlane.f32.xlu2 %v1295_v58  ;;  %1976 = vpow2.f32 %v1173_v61 }
 0x43b   : > { %v1298_v60 = vsel %vm851_vm9, %v1293_v56, -inf  ;;  %1978 = vpow2.f32 %v1045_v4 }
 0x43c   : > { %1299 = vmax.xlane.f32.xlu0 %v1298_v60 }
 0x440   : > { %v2342_v5 = vpop.eup %1976 }
 0x441   : > { %v1177_v6 = vsel %vm851_vm9, %v2342_v5, 0.0  ;;  %v2346_v7 = vpop.eup %1978 }
 0x442   : > { %921 = vadd.xlane.f32.xlu2 %v920_v1  ;;  %v1050_v8 = vsel %vm851_vm9, %v2346_v7, 0.0 }
 0x44a   : > { %1178 = vadd.xlane.f32.xlu2 %v1177_v6  ;;  %v726_v6 = vld [vmem:[%s2202_s17 + $0x18] sm:$0xff] }
 0x44b   : > { %1422 = vmatpush.msra.mxu2 %v726_v6 }
 0x450   : > { %953 = vrot.lane.b32.xlu0 %v2287_v59, %s2061_s23  ;;  %s2073_s23 = smov 8  }
 0x452   : > { %1051 = vadd.xlane.f32.xlu2 %v1050_v8  ;;  %v724_v8 = vld [vmem:[%s2202_s17 + $0x8] sm:$0xff] }
 0x458   : > { %1187 = vrot.lane.b32.xlu0 %v2281_v57, %s2070_s30 }
 0x460   : > { %1317 = vrot.lane.b32.xlu0 %v2281_v57, %s2071_s20 }
 0x468   : > { %1343 = vrot.lane.b32.xlu0 %v2287_v59, %s2071_s20 }
 0x4a5   : > { %v1037_v9 = vpop.xlane.xlu2 %1036 }
 0x4a6   : > { %v1041_v10 = vsub.f32 %v1005_v44, %v1037_v9  ;;  %v723_v9 = vld [vmem:[%s2202_s17] sm:$0xff] }
 0x4a7   : > { %v1170_v13 = vpop.xlane.xlu1 %1169 }
 0x4a8   : > { %v1043_v11 = vmul.f32 1.442695, %v1041_v10  ;;  %v1172_v17 = vsub.f32 %v1163_v47, %v1170_v13 }
 0x4aa   : > { %1980 = vpow2.f32 %v1043_v11  ;;  %v1175_v20 = vmul.f32 1.442695, %v1172_v17 }
 0x4ad   : > { %v1297_v14 = vpop.xlane.xlu2 %1296 }
 0x4ae   : > { %v1301_v15 = vsub.f32 %v1265_v52, %v1297_v14 }
 0x4af   : > { %v1300_v24 = vpop.xlane.xlu0 %1299 }
 0x4b0   : > { %v1981_v16 = vpop.eup %1980  ;;  %v1303_v18 = vmul.f32 1.442695, %v1301_v15  ;;  %v1302_v31 = vsub.f32 %v1293_v56, %v1300_v24 }
 0x4b1   : > { %v1047_v19 = vsel %vm851_vm9, %v1981_v16, 0.0 }
 0x4b2   : > { %1982 = vpow2.f32 %v1303_v18  ;;  %1048 = vadd.xlane.f32.xlu1 %v1047_v19  ;;  %v1305_v32 = vmul.f32 1.442695, %v1302_v31 }
 0x4b3   : > { %1984 = vpow2.f32 %v1175_v20 }
 0x4b5   : > { %v922_v21 = vpop.xlane.xlu2 %921 }
 0x4b6   : > { %1986 = vrcp.f32 %v922_v21 }
 0x4b7   : > { %1988 = vpow2.f32 %v1305_v32 }
 0x4b8   : > { %v1983_v22 = vpop.eup %1982 }
 0x4b9   : > { %v1307_v23 = vsel %vm851_vm9, %v1983_v22, 0.0  ;;  %v1985_v25 = vpop.eup %1984 }
 0x4ba   : > { %1308 = vadd.xlane.f32.xlu2 %v1307_v23  ;;  %v1180_v27 = vsel %vm851_vm9, %v1985_v25, 0.0 }
 0x4bc   : > { %v1987_v26 = vpop.eup %1986 }
 0x4bd   : > { %v926_v29 = vmul.f32 %v1987_v26, %v1975_v63  ;;  %v1989_v33 = vpop.eup %1988  ;;  %v1179_v35 = vpop.xlane.xlu2 %1178 }
 0x4be   : > { %v1310_v34 = vsel %vm851_vm9, %v1989_v33, 0.0 }
 0x4c2   : > { %v954_v28 = vpop.permute.xlu0 %953  ;;  %1181 = vadd.xlane.f32.xlu2 %v1180_v27 }
 0x4c3   : > { %974 = vmatpush.msra.mxu3 %v954_v28 }
 0x4c4   : > { %1882 = vmatmul.msk.f32.vlgmr.msra.gmra.mxu3 %vm851_vm9, %v926_v29 }
 0x4c5   : > { %v1052_v36 = vpop.xlane.xlu2 %1051 }
 0x4c6   : > { %1990 = vrcp.f32 %v1052_v36 }
 0x4ca   : > { %v1188_v38 = vpop.permute.xlu0 %1187 }
 0x4cb   : > { %1952 = vrot.lane.b32.xlu1 %v1951_v30, %s2072_s19 }
 0x4cc   : > { %v1991_v42 = vpop.eup %1990 }
 0x4cd   : > { %v1056_v46 = vmul.f32 %v1991_v42, %v2346_v7  ;;  %v725_v7 = vld [vmem:[%s2202_s17 + $0x10] sm:$0xff]  ;;  %v730_v42 = vld [vmem:[%s2219_s4] sm:$0xff] }
 0x4ce   : > { %1423 = vmatpush.msra.mxu2 %v725_v7 }
 0x4d0   : > { %1424 = vmatpush.msra.mxu2 %v724_v8 }
 0x4d2   : > { %v1318_v40 = vpop.permute.xlu0 %1317  ;;  %1425 = vmatpush.msra.mxu2 %v723_v9 }
 0x4da   : > { %1213 = vrot.lane.b32.xlu2 %v2287_v59, %s2070_s30  ;;  %v1344_v49 = vpop.permute.xlu0 %1343 }
 0x4f5   : > { %1311 = vadd.xlane.f32.xlu1 %v1310_v34 }
 0x525   : > { %v1049_v39 = vpop.xlane.xlu1 %1048 }
 0x526   : > { %1992 = vrcp.f32 %v1049_v39  ;;  %v733_v39 = vld [vmem:[%s2219_s4 + $0x18] sm:$0xff] }
 0x527   : > { %1994 = vrcp.f32 %v1179_v35  ;;  %1510 = vmatpush.msrb.mxu0 %v733_v39 }
 0x52c   : > { %v1993_v43 = vpop.eup %1992 }
 0x52d   : > { %v1309_v37 = vpop.xlane.xlu2 %1308  ;;  %v1055_v47 = vmul.f32 %v1993_v43, %v1981_v16  ;;  %v1995_v50 = vpop.eup %1994 }
 0x52e   : > { %v1185_v52 = vmul.f32 %v1995_v50, %v2342_v5 }
 0x535   : > { %v1182_v57 = vpop.xlane.xlu2 %1181 }
 0x536   : > { %1996 = vrcp.f32 %v1182_v57  ;;  %v732_v57 = vld [vmem:[%s2219_s4 + $0x10] sm:$0xff] }
 0x537   : > { %1998 = vrcp.f32 %v1309_v37  ;;  %1511 = vmatpush.msrb.mxu0 %v732_v57 }
 0x53c   : > { %v1997_v51 = vpop.eup %1996 }
 0x53d   : > { %v1953_v59 = vpop.permute.xlu1 %1952  ;;  %v1214_v48 = vpop.permute.xlu2 %1213  ;;  %v1186_v53 = vmul.f32 %v1997_v51, %v1985_v25  ;;  %v1960_v51 = vld [vmem:[%s687_s14] ss:$0 sm:$0xff] }
 0x53e   : > { %v1955_v44 = vunpack.i.h.bf16 %v1953_v59  ;;  %v1954_v45 = vunpack.i.l.bf16 %v1953_v59  ;;  %v1999_v54 = vpop.eup %1998 }
 0x53f   : > { %v1315_v55 = vmul.f32 %v1999_v54, %v1983_v22  ;;  %v1961_v54 = vld [vmem:[%s690_s21] ss:$0 sm:$0xff] }
 0x540   : > { %1078 = vmatpush.msrb.mxu3 %v1954_v45  ;;  %1104 = vmatpush.msrb.mxu1 %v1955_v44 }
 0x541   : > { %1887 = vmatmul.msk.f32.vlgmr.msrb.gmra.mxu3 %vm851_vm9, %v1055_v47  ;;  %1888 = vmatmul.msk.f32.vlgmr.msrb.gmra.mxu1 %vm851_vm9, %v1056_v46 }
 0x542   : > { %1208 = vmatpush.msra.mxu3 %v1188_v38  ;;  %1234 = vmatpush.msra.mxu1 %v1214_v48 }
 0x544   : > { %1338 = vmatpush.msrb.mxu3 %v1318_v40  ;;  %1364 = vmatpush.msrb.mxu1 %v1344_v49  ;;  %v731_v40 = vld [vmem:[%s2219_s4 + $0x8] sm:$0xff] }
 0x545   : > { %1512 = vmatpush.msrb.mxu0 %v731_v40 }
 0x547   : > { %v976_v61 = vpop.f32.mrf.mxu3  ;;  %1513 = vmatpush.msrb.mxu0 %v730_v42 }
 0x549   : > { %1893 = vmatmul.msk.f32.vlgmr.msra.gmra.mxu3 %vm851_vm9, %v1185_v52  ;;  %1894 = vmatmul.msk.f32.vlgmr.msra.gmra.mxu1 %vm851_vm9, %v1186_v53 }
 0x551   : > { %1899 = vmatmul.msk.f32.vlgmr.msrb.gmra.mxu3 %vm851_vm9, %v1315_v55 }
 0x568   : > { %v1312_v56 = vpop.xlane.xlu1 %1311 }
 0x569   : > { %2000 = vrcp.f32 %v1312_v56 }
 0x56f   : > { %v2001_v58 = vpop.eup %2000 }
 0x570   : > { %v1316_v60 = vmul.f32 %v2001_v58, %v1989_v33 }
 0x572   : > { %1900 = vmatmul.msk.f32.vlgmr.msrb.gmra.mxu1 %vm851_vm9, %v1316_v60 }
 0x5be   : > { %v1106_v0 = vpop.f32.mrf.mxu1 }
 0x5c4   : > { %v1080_v62 = vpop.f32.mrf.mxu3 }
 0x5c5   : > { %1371 = vrot.lane.b32.xlu0 %v1080_v62, %s2073_s23 }
 0x5c6   : > { %v1236_v4 = vpop.f32.mrf.mxu1 }
 0x5cc   : > { %v1210_v63 = vpop.f32.mrf.mxu3 }
 0x5cd   : > { %1379 = vrot.lane.b32.xlu0 %v1210_v63, %s2074_s24 }
 0x5d4   : > { %v1340_v1 = vpop.f32.mrf.mxu3 }
 0x5d5   : > { %1373 = vrot.lane.b32.xlu0 %v1106_v0, %s2073_s23  ;;  %1387 = vrot.lane.b32.xlu2 %v1340_v1, %s2075_s16  ;;  %s2520_s23 = sld [smem:[#allocation13_spill]] (!%p1909_p5) }
 0x5dd   : > { %1381 = vrot.lane.b32.xlu2 %v1236_v4, %s2074_s24 }
 0x5ef   : > { %v1366_v5 = vpop.f32.mrf.mxu1 }
 0x5f0   : > { %1389 = vrot.lane.b32.xlu0 %v1366_v5, %s2075_s16 }
 0x62f   : > { %v1388_v14 = vpop.permute.xlu2 %1387 }
 0x637   : > { %v1372_v10 = vpop.permute.xlu0 %1371  ;;  %v1382_v19 = vpop.permute.xlu2 %1381 }
 0x638   : > { %v1393_v11 = vsel %vm851_vm9, %v2331_v41, %v1372_v10  ;;  %v1959_v41 = vld [vmem:[%s2518_s28] ss:$0 sm:$0xff]  ;;  %v742_v10 = vld [vmem:[%s2229_s0 + $0x38] sm:$0xff] }
 0x639   : > { %1581 = vmatpush.msra.mxu3 %v742_v10 }
 0x63f   : > { %v1380_v13 = vpop.permute.xlu0 %1379 }
 0x640   : > { %v1396_v15 = vsel %vm1395_vm11, %v1393_v11, %v1380_v13  ;;  %v741_v11 = vld [vmem:[%s2229_s0 + $0x30] sm:$0xff]  ;;  %v740_v13 = vld [vmem:[%s2229_s0 + $0x28] sm:$0xff] }
 0x641   : > { %v1399_v16 = vsel %vm1398_vm12, %v1396_v15, %v1388_v14  ;;  %1582 = vmatpush.msra.mxu3 %v741_v11  ;;  %v739_v14 = vld [vmem:[%s2229_s0 + $0x20] sm:$0xff]  ;;  %v738_v15 = vld [vmem:[%s2229_s0 + $0x18] sm:$0xff] }
 0x642   : > { %1901 = vmatmul.msk.f32.vlgmr.msra.gmra.mxu2 %vm752_vm1, %v1399_v16  ;;  %v1962_v16 = vld [vmem:[%s698_s6] ss:$0 sm:$0xff]  ;;  %s2522_s6 = sld [smem:[#allocation12_spill]] (!%p1909_p5) }
 0x643   : > { %1583 = vmatpush.msra.mxu3 %v740_v13 }
 0x645   : > { %1584 = vmatpush.msra.mxu3 %v739_v14 }
 0x647   : > { %v1374_v17 = vpop.permute.xlu0 %1373  ;;  %1585 = vmatpush.msra.mxu3 %v738_v15 }
 0x648   : > { %v1394_v18 = vsel %vm851_vm9, %v976_v61, %v1374_v17  ;;  %v737_v17 = vld [vmem:[%s2229_s0 + $0x10] sm:$0xff] }
 0x649   : > { %v1397_v21 = vsel %vm1395_vm11, %v1394_v18, %v1382_v19  ;;  %1586 = vmatpush.msra.mxu3 %v737_v17  ;;  %v736_v19 = vld [vmem:[%s2229_s0 + $0x8] sm:$0xff] }
 0x64b   : > { %1587 = vmatpush.msra.mxu3 %v736_v19 }
 0x662   : > { %v1390_v20 = vpop.permute.xlu0 %1389 }
 0x663   : > { %v1400_v22 = vsel %vm1398_vm12, %v1397_v21, %v1390_v20  ;;  %v735_v21 = vld [vmem:[%s2229_s0] sm:$0xff] }
 0x664   : > { %1902 = vmatmul.msk.f32.gmra.mxu2 %vm752_vm1, %v1400_v22  ;;  %1588 = vmatpush.msra.mxu3 %v735_v21 }
 0x6c5   : > { %v1427_v23 = vpop.f32.mrf.mxu2 }
 0x6c6   : > { %v1428_v24 = vadd.f32 %v1959_v41, %v1427_v23 }
 0x6c8   : > { %v2390_v25 = vadd.f32 %v1428_v24, %v2242_v2 }
 0x6ca   : > { %v1435_v26 = vsel %vm752_vm1, %v2390_v25, 0.0 }
 0x6cb   : > { %1436 = vadd.xlane.f32.xlu1 %v1435_v26 }
 0x6e7   : > { %v1430_v27 = vpop.f32.mrf.mxu2 }
 0x6e8   : > { %v1431_v28 = vadd.f32 %v1959_v41, %v1430_v27 }
 0x6ea   : > { %v2395_v29 = vadd.f32 %v1431_v28, %v2244_v3 }
 0x6ec   : > { %v1438_v30 = vsel %vm752_vm1, %v2395_v29, 0.0 }
 0x6ed   : > { %1439 = vadd.xlane.f32.xlu2 %v1438_v30 }
 0x73e   : > { %v1437_v31 = vpop.xlane.xlu1 %1436 }
 0x73f   : > { %v1441_v2 = vmul.f32 %v1437_v31, %v2250_v12 }
 0x741   : > { %v1443_v32 = vsub.f32 %v2390_v25, %v1441_v2 }
 0x743   : > { %v1445_v33 = vmul.f32 %v1443_v32, %v1443_v32 }
 0x745   : > { %v1447_v34 = vsel %vm752_vm1, %v1445_v33, 0.0 }
 0x746   : > { %1448 = vadd.xlane.f32.xlu0 %v1447_v34 }
 0x760   : > { %v1440_v35 = vpop.xlane.xlu2 %1439 }
 0x761   : > { %v1442_v3 = vmul.f32 %v1440_v35, %v2250_v12 }
 0x763   : > { %v1444_v36 = vsub.f32 %v2395_v29, %v1442_v3 }
 0x765   : > { %v1446_v37 = vmul.f32 %v1444_v36, %v1444_v36 }
 0x767   : > { %v1450_v38 = vsel %vm752_vm1, %v1446_v37, 0.0 }
 0x768   : > { %1451 = vadd.xlane.f32.xlu1 %v1450_v38 }
 0x7b9   : > { %v1449_v43 = vpop.xlane.xlu0 %1448 }
 0x7ba   : > { %v1453_v59 = vmul.f32 %v1449_v43, %v2250_v12 }
 0x7bc   : > { %v1455_v44 = vadd.f32 1e-05, %v1453_v59 }
 0x7be   : > { %2002 = vrsqrt.f32 %v1455_v44  ;;  %vm1463_vm14 = vweird.f32 %v1455_v44 }
 0x7c4   : > { %v2003_v45 = vpop.eup %2002 }
 0x7c5   : > { %v1458_v46 = vmul.f32 %v2003_v45, %v1455_v44  ;;  %vm1464_vm13 = vweird.f32 %v2003_v45 }
 0x7c6   : > { %vm1465_vm15 = vmor %vm1463_vm14, %vm1464_vm13 }
 0x7c7   : > { %v1459_v47 = vmul.f32 %v2003_v45, %v1458_v46 }
 0x7c9   : > { %v1460_v48 = vmul.f32 0.5, %v1459_v47 }
 0x7cb   : > { %v1461_v49 = vsub.f32 1.5, %v1460_v48 }
 0x7cd   : > { %v1462_v50 = vmul.f32 %v2003_v45, %v1461_v49 }
 0x7cf   : > { %v1466_v52 = vsel %vm1465_vm15, %v2003_v45, %v1462_v50 }
 0x7d0   : > { %v1477_v53 = vmul.f32 %v1466_v52, %v1443_v32  ;;  %v1963_v52 = vld [vmem:[%s706_s1] ss:$0 sm:$0xff] }
 0x7d2   : > { %v1482_v55 = vmul.f32 %v1960_v51, %v1477_v53 }
 0x7d4   : > { %v1487_v56 = vadd.f32 %v1961_v54, %v1482_v55 }
 0x7d6   : > { %1903 = vmatmul.msk.f32.vlgmr.msrb.gmra.mxu0 %vm752_vm1, %v1487_v56 }
 0x7db   : > { %v1452_v58 = vpop.xlane.xlu1 %1451 }
 0x7dc   : > { %v1454_v60 = vmul.f32 %v1452_v58, %v2250_v12 }
 0x7de   : > { %v1456_v61 = vadd.f32 1e-05, %v1454_v60 }
 0x7e0   : > { %2004 = vrsqrt.f32 %v1456_v61  ;;  %vm1473_vm2 = vweird.f32 %v1456_v61 }
 0x7e6   : > { %v2005_v62 = vpop.eup %2004 }
 0x7e7   : > { %v1468_v63 = vmul.f32 %v2005_v62, %v1456_v61  ;;  %vm1474_vm0 = vweird.f32 %v2005_v62 }
 0x7e8   : > { %vm1475_vm3 = vmor %vm1473_vm2, %vm1474_vm0 }
 0x7e9   : > { %v1469_v0 = vmul.f32 %v2005_v62, %v1468_v63 }
 0x7eb   : > { %v1470_v1 = vmul.f32 0.5, %v1469_v0 }
 0x7ed   : > { %v1471_v4 = vsub.f32 1.5, %v1470_v1 }
 0x7ef   : > { %v1472_v5 = vmul.f32 %v2005_v62, %v1471_v4 }
 0x7f1   : > { %v1476_v6 = vsel %vm1475_vm3, %v2005_v62, %v1472_v5 }
 0x7f2   : > { %v1478_v7 = vmul.f32 %v1476_v6, %v1444_v36 }
 0x7f4   : > { %v1483_v8 = vmul.f32 %v1960_v51, %v1478_v7 }
 0x7f6   : > { %v1488_v9 = vadd.f32 %v1961_v54, %v1483_v8 }
 0x7f8   : > { %1904 = vmatmul.msk.f32.gmra.mxu0 %vm752_vm1, %v1488_v9 }
 0x853   : > { %v1515_v18 = vpop.f32.mrf.mxu0 }
 0x854   : > { %v1516_v20 = vadd.f32 %v1962_v16, %v1515_v18 }
 0x856   : > { %v1905_v22 = vmul.f32 -1.702, %v1516_v20 }
 0x858   : > { %v1525_v41 = vmul.f32 1.442695, %v1905_v22 }
 0x85a   : > { %2006 = vpow2.f32 %v1525_v41 }
 0x860   : > { %v2007_v23 = vpop.eup %2006 }
 0x861   : > { %v1529_v24 = vadd.f32 1.0, %v2007_v23 }
 0x863   : > { %2008 = vrcp.f32 %v1529_v24  ;;  %v1542_v30 = vand.u32 2147483648, %v1529_v24  ;;  %v1540_v2 = vand.u32 2147483647, %v1529_v24  ;;  %vm1536_vm5 = vweird.f32 %v1529_v24 }
 0x865   : > { %v1543_v33 = vor.u32 1.1754944e-38, %v1542_v30  ;;  %vm1541_vm7 = vcmp.eq.f32.partialorder %v1540_v2, 8.507059e+37 }
 0x869   : > { %v2009_v26 = vpop.eup %2008 }
 0x86a   : > { %v1532_v27 = vmul.f32 %v2009_v26, %v1529_v24  ;;  %vm1537_vm4 = vweird.f32 %v2009_v26 }
 0x86b   : > { %vm1538_vm6 = vmor %vm1536_vm5, %vm1537_vm4 }
 0x86c   : > { %v1533_v28 = vsub.f32 1.0, %v1532_v27 }
 0x86e   : > { %v1534_v31 = vmul.f32 %v2009_v26, %v1533_v28 }
 0x870   : > { %v1535_v32 = vadd.f32 %v2009_v26, %v1534_v31 }
 0x872   : > { %v1539_v34 = vsel %vm1538_vm6, %v2009_v26, %v1535_v32 }
 0x873   : > { %v1544_v35 = vsel %vm1541_vm7, %v1543_v33, %v1539_v34 }
 0x874   : > { %v1561_v3 = vmul.f32 %v1544_v35, %v1516_v20 }
 0x875   : > { %v1518_v36 = vpop.f32.mrf.mxu0 }
 0x876   : > { %v1519_v37 = vadd.f32 %v1962_v16, %v1518_v36  ;;  %1907 = vmatmul.msk.f32.vlgmr.msra.gmra.mxu3 %vm1566_vm8, %v1561_v3 }
 0x878   : > { %v1906_v38 = vmul.f32 -1.702, %v1519_v37 }
 0x87a   : > { %v1527_v39 = vmul.f32 1.442695, %v1906_v38 }
 0x87c   : > { %2010 = vpow2.f32 %v1527_v39 }
 0x882   : > { %v2011_v57 = vpop.eup %2010 }
 0x883   : > { %v1530_v40 = vadd.f32 1.0, %v2011_v57 }
 0x885   : > { %2012 = vrcp.f32 %v1530_v40  ;;  %v1557_v44 = vand.u32 2147483648, %v1530_v40  ;;  %v1555_v46 = vand.u32 2147483647, %v1530_v40  ;;  %vm1551_vm10 = vweird.f32 %v1530_v40 }
 0x887   : > { %v1558_v48 = vor.u32 1.1754944e-38, %v1557_v44  ;;  %vm1556_vm13 = vcmp.eq.f32.partialorder %v1555_v46, 8.507059e+37 }
 0x88b   : > { %v2013_v42 = vpop.eup %2012 }
 0x88c   : > { %v1547_v43 = vmul.f32 %v2013_v42, %v1530_v40  ;;  %vm1552_vm9 = vweird.f32 %v2013_v42 }
 0x88d   : > { %vm1553_vm12 = vmor %vm1551_vm10, %vm1552_vm9 }
 0x88e   : > { %v1548_v59 = vsub.f32 1.0, %v1547_v43 }
 0x890   : > { %v1549_v45 = vmul.f32 %v2013_v42, %v1548_v59 }
 0x892   : > { %v1550_v47 = vadd.f32 %v2013_v42, %v1549_v45 }
 0x894   : > { %v1554_v49 = vsel %vm1553_vm12, %v2013_v42, %v1550_v47 }
 0x895   : > { %v1559_v50 = vsel %vm1556_vm13, %v1558_v48, %v1554_v49 }
 0x896   : > { %v1562_v51 = vmul.f32 %v1559_v50, %v1519_v37 }
 0x898   : > { %1908 = vmatmul.msk.f32.gmra.mxu3 %vm1566_vm8, %v1562_v51 }
 0x8f9   : > { %v1590_v53 = vpop.f32.mrf.mxu3 }
 0x8fa   : > { %v1591_v54 = vadd.f32 %v1963_v52, %v1590_v53 }
 0x8fc   : > { %v1596_v55 = vadd.f32 %v1591_v54, %v2390_v25 }
 0x8fe   : > { %1598 = vst.msk [vmem:[#allocation2] sm:$0xff] %vm752_vm1, %v1596_v55 }
 0x91b   : > { %v1593_v56 = vpop.f32.mrf.mxu3 }
 0x91c   : > { %v1594_v58 = vadd.f32 %v1963_v52, %v1593_v56  ;;  %1603 = sbr.rel (%p1909_p5) target bundleno = 3002 (0xbba), region = 96 }
 0x91e   : > { %v1597_v60 = vadd.f32 %v1594_v58, %v2395_v29 }
 0x920   : > { %1599 = vst.msk [vmem:[#allocation2 + $0x8] sm:$0xff] %vm752_vm1, %v1597_v60 }
 0x921   : > { %1622 = vmatpush.msra.mxu0 %v1597_v60  ;;  %v1604_v61 = vld [vmem:[%s2519_s26] sm:$0x3]  ;;  %vm1634_vm14 = vcmask 254976   ;;  %v1633_v5 = vld [vmem:[%s2520_s23 + $0x18] sm:$0xff]  ;;  %v1632_v6 = vld [vmem:[%s2520_s23 + $0x10] sm:$0xff]  ;;  %vm1689_vm2 = vcmask 123904  }
 0x922   : > { %1680 = vmatpush.msra.mxu1 %v1633_v5  ;;  %v1631_v7 = vld [vmem:[%s2520_s23 + $0x8] sm:$0xff]  ;;  %v1630_v8 = vld [vmem:[%s2520_s23] sm:$0xff] }
 0x923   : > { %1623 = vmatpush.msra.mxu0 %v1596_v55  ;;  %v2014_v19 = vld [vmem:[%s2521_s18] ss:$0 sm:$0xff] }
 0x924   : > { %1910 = vmatmul.msk.f32.vlgmr.msra.gmra.mxu0 %vm1395_vm11, %v1604_v61  ;;  %1681 = vmatpush.msra.mxu1 %v1632_v6 }
 0x926   : > { %1682 = vmatpush.msra.mxu1 %v1631_v7 }
 0x928   : > { %1683 = vmatpush.msra.mxu1 %v1630_v8 }
 0x9a1   : > { %v1625_v25 = vpop.f32.mrf.mxu0 }
 0x9a2   : > { %v1635_v62 = vsel %vm1634_vm14, %v1625_v25, 0.0 }
 0x9a3   : > { %1636 = vadd.xlane.f32.xlu0 %v1635_v62 }
 0xa16   : > { %v1637_v63 = vpop.xlane.xlu0 %1636 }
 0xa17   : > { %v1638_v29 = vmul.f32 %v1637_v63, %v2250_v12 }
 0xa19   : > { %v1639_v0 = vsub.f32 %v1625_v25, %v1638_v29 }
 0xa1b   : > { %v1640_v1 = vmul.f32 %v1639_v0, %v1639_v0 }
 0xa1d   : > { %v1641_v4 = vsel %vm1634_vm14, %v1640_v1, 0.0 }
 0xa1e   : > { %1642 = vadd.xlane.f32.xlu0 %v1641_v4 }
 0xa91   : > { %v1643_v9 = vpop.xlane.xlu0 %1642 }
 0xa92   : > { %v1644_v10 = vmul.f32 %v1643_v9, %v2250_v12  ;;  %v2015_v12 = vld [vmem:[%s2522_s6] ss:$0 sm:$0xff] }
 0xa94   : > { %v1645_v11 = vadd.f32 1e-05, %v1644_v10 }
 0xa96   : > { %2016 = vrsqrt.f32 %v1645_v11  ;;  %vm1652_vm15 = vweird.f32 %v1645_v11 }
 0xa9c   : > { %v2017_v13 = vpop.eup %2016 }
 0xa9d   : > { %v1647_v14 = vmul.f32 %v2017_v13, %v1645_v11  ;;  %vm1653_vm11 = vweird.f32 %v2017_v13 }
 0xa9e   : > { %vm1654_vm0 = vmor %vm1652_vm15, %vm1653_vm11 }
 0xa9f   : > { %v1648_v15 = vmul.f32 %v2017_v13, %v1647_v14 }
 0xaa1   : > { %v1649_v16 = vmul.f32 0.5, %v1648_v15 }
 0xaa3   : > { %v1650_v17 = vsub.f32 1.5, %v1649_v16 }
 0xaa5   : > { %v1651_v18 = vmul.f32 %v2017_v13, %v1650_v17 }
 0xaa7   : > { %v1655_v20 = vsel %vm1654_vm0, %v2017_v13, %v1651_v18 }
 0xaa8   : > { %v1656_v21 = vmul.f32 %v1655_v20, %v1639_v0 }
 0xaaa   : > { %v1660_v22 = vmul.f32 %v2014_v19, %v1656_v21 }
 0xaac   : > { %v1664_v41 = vadd.f32 %v2015_v12, %v1660_v22 }
 0xaae   : > { %1911 = vmatmul.msk.f32.vlgmr.msra.gmra.mxu1 %vm752_vm1, %v1664_v41 }
 0xb2b   : > { %v1685_v23 = vpop.f32.mrf.mxu1 }
 0xb2c   : > { %v1688_v24 = vmul.f32 %v1685_v23, %v1685_v23 }
 0xb2e   : > { %v1690_v26 = vsel %vm1689_vm2, %v1688_v24, 0.0 }
 0xb2f   : > { %1691 = vadd.xlane.f32.xlu1 %v1690_v26 }
 0xba2   : > { %v1692_v27 = vpop.xlane.xlu1 %1691 }
 0xba3   : > { %v1693_v28 = vmax.f32 %v1692_v27, 1e-24 }
 0xba5   : > { %2018 = vrsqrt.f32 %v1693_v28  ;;  %vm1700_vm4 = vweird.f32 %v1693_v28 }
 0xbab   : > { %v2019_v30 = vpop.eup %2018 }
 0xbac   : > { %v1695_v31 = vmul.f32 %v2019_v30, %v1693_v28  ;;  %vm1701_vm3 = vweird.f32 %v2019_v30 }
 0xbad   : > { %vm1702_vm5 = vmor %vm1700_vm4, %vm1701_vm3 }
 0xbae   : > { %v1696_v2 = vmul.f32 %v2019_v30, %v1695_v31 }
 0xbb0   : > { %v1697_v32 = vmul.f32 0.5, %v1696_v2 }
 0xbb2   : > { %v1698_v33 = vsub.f32 1.5, %v1697_v32 }
 0xbb4   : > { %v1699_v34 = vmul.f32 %v2019_v30, %v1698_v33 }
 0xbb6   : > { %v1703_v35 = vsel %vm1702_vm5, %v2019_v30, %v1699_v34 }
 0xbb7   : > { %v1704_v3 = vmul.f32 %v1703_v35, %v1685_v23 }
 0xbb9   : > { %1705 = vst.msk [vmem:[#allocation3] sm:$0x3] %vm1689_vm2, %v1704_v3 }
 0xbba PF: > { %p1924_p6 = scmp.eq.s32.totalorder %s2173_s25, 1  ;;  %s2076_s0 = smov [#allocation3]  }
 0xbbb   : > { %s1712_s30 = sshll.u32 %s2076_s0, 4  ;;  %s2523_s1 = sld [smem:[#allocation14_spill]]  ;;  %s1713_s30 = int_to_ptr.vmem [resolvable:$true] %s1712_s30 }
 0xbc1   : > { %s1714_s19 = sshll.u32 %s2523_s1, 4  ;;  %s1715_s19 = int_to_ptr.hbm [resolvable:$true] %s1714_s19 }
 0xbc2   : > { %1921 = dma.vmem_to_hbm [thread:$0]  (%p1924_p6), %s1713_s30, 32, %s1715_s19, [#allocation4]  }
 0xbc3   : > { %2053 = dma.done.wait (%p1924_p6), [#allocation4], 32  }
 0xbc4   : > { %2055 = vsyncadd (%p1924_p6), [#allocation4], 4294967264 }
 0xbc5 PF: > { %s2524_s24 = sld [smem:[#allocation6_spill]] }
 0xbcb   : > { %s28_s24 = sadd.s32 1, %s2524_s24  }
 0xbcc   : > { %p25_p7 = scmp.ge.s32.totalorder %s28_s24, 4  }
 0xbce   :  { %27 = sbr.rel (!%p25_p7) target bundleno = 10 (0xa), region = 156 }
 0xbd3   :  { %1728 = vsyncpa [#allocation4], 1 }
 0xbd4   :  { %1730 = vsyncpa [#allocation4 + $0x1], 1 }

// kernel: clip_forward.2
= control target key start
LH: loop header
LB: loop body
LE: loop exit
PB: predicated region body
PF: predicated region fallthrough
CT: control target
= control target key end

     0   :  { %s2979_s0 = inlined_call_operand.vmem [shape: f32[2,4,192], index: 0, kind: input, shape index: {}]   ;;  %s2980_s1 = inlined_call_operand.vmem [shape: f32[192,32], index: 1, kind: input, shape index: {}]   ;;  %s2981_s2 = inlined_call_operand.vmem [shape: f32[1,32], index: 2, kind: input, shape index: {}]   ;;  %s2982_s3 = inlined_call_operand.vmem [shape: f32[5,32], index: 3, kind: input, shape index: {}]   ;;  %s2983_s4 = inlined_call_operand.vmem [shape: f32[1,32], index: 4, kind: input, shape index: {}]   ;;  %s2984_s5 = inlined_call_operand.vmem [shape: f32[1,32], index: 5, kind: input, shape index: {}]   ;;  %s2985_s6 = inlined_call_operand.vmem [shape: f32[2,1,32], index: 6, kind: input, shape index: {}]   ;;  %s2986_s7 = inlined_call_operand.vmem [shape: f32[2,1,32], index: 7, kind: input, shape index: {}]   ;;  %s2987_s8 = inlined_call_operand.vmem [shape: f32[2,32,96], index: 8, kind: input, shape index: {}]   ;;  %s2988_s9 = inlined_call_operand.vmem [shape: f32[2,1,96], index: 9, kind: input, shape index: {}]   ;;  %s2989_s10 = inlined_call_operand.vmem [shape: f32[2,32,32], index: 10, kind: input, shape index: {}]   ;;  %s2990_s11 = inlined_call_operand.vmem [shape: f32[2,1,32], index: 11, kind: input, shape index: {}]   ;;  %s2991_s12 = inlined_call_operand.vmem [shape: f32[2,1,32], index: 12, kind: input, shape index: {}]   ;;  %s2992_s13 = inlined_call_operand.vmem [shape: f32[2,1,32], index: 13, kind: input, shape index: {}]   ;;  %s2993_s14 = inlined_call_operand.vmem [shape: f32[2,32,64], index: 14, kind: input, shape index: {}]   ;;  %s2994_s15 = inlined_call_operand.vmem [shape: f32[2,1,64], index: 15, kind: input, shape index: {}]   ;;  %s2995_s16 = inlined_call_operand.vmem [shape: f32[2,64,32], index: 16, kind: input, shape index: {}]   ;;  %s2996_s17 = inlined_call_operand.vmem [shape: f32[2,1,32], index: 17, kind: input, shape index: {}]   ;;  %s2997_s18 = inlined_call_operand.vmem [shape: f32[2,16], index: 18, kind: input, shape index: {}]   ;;  %s2998_s19 = inlined_call_operand.vmem [shape: f32[1,32], index: 19, kind: input, shape index: {}]   ;;  %s2999_s20 = inlined_call_operand.vmem [shape: f32[1,32], index: 20, kind: input, shape index: {}]   ;;  %s3000_s21 = inlined_call_operand.vmem [shape: f32[32,16], index: 21, kind: input, shape index: {}]   ;;  %s3001_s22 = inlined_call_operand.hbm [shape: f32[2,16], index: 22, kind: output, shape index: {}]  }
   0x1   :  { %3007 = sst [smem:[#allocation7_spill]] %s2979_s0 }
   0x2   :  { %3008 = sst [smem:[#allocation8_spill]] %s2980_s1 }
   0x3   :  { %3009 = sst [smem:[#allocation9_spill]] %s2981_s2 }
   0x4   :  { %3010 = sst [smem:[#allocation10_spill]] %s2982_s3 }
   0x5   :  { %3011 = sst [smem:[#allocation11_spill]] %s2983_s4 }
   0x6   :  { %3012 = sst [smem:[#allocation12_spill]] %s2984_s5 }
   0x7   :  { %3013 = sst [smem:[#allocation13_spill]] %s2985_s6 }
   0x8   :  { %3014 = sst [smem:[#allocation14_spill]] %s2987_s8 }
   0x9   :  { %3015 = sst [smem:[#allocation15_spill]] %s2989_s10 }
   0xa   :  { %3016 = sst [smem:[#allocation16_spill]] %s2998_s19 }
   0xb   :  { %3017 = sst [smem:[#allocation17_spill]] %s2999_s20 }
   0xc   :  { %3018 = sst [smem:[#allocation18_spill]] %s3000_s21 }
   0xd   :  { %3019 = sst [smem:[#allocation19_spill]] %s3001_s22 }
   0xe   :  { %27 = vsyncpa [#allocation4], 0  ;;  %s2558_s3 = smov 0  }
   0xf LB: > { %3020 = sst [smem:[#allocation6_spill]] %s2422_s3  ;;  %s2564_s28 = sadd.s32 4294967295, %s2422_s3   ;;  %s2422_s3 = sphi %s2558_s3, %s33_s3  }
  0x10   : > { %p2216_p0 = scmp.ge.s32.totalorder %s2422_s3, 1  ;;  %p702_p1 = scmp.lt.s32.totalorder %s2422_s3, 3 }
  0x12   : > { %p703_p2 = pnand %p2216_p0, %p702_p1 }
  0x13   : > { %p798_p3 = scmp.lt.s32.totalorder (!%p703_p2), %s2564_s28, 1  ;;  %s3022_s8 = sld [smem:[#allocation14_spill]] (!%p703_p2) }
  0x14   : > { %706 = sbr.rel (%p703_p2) target bundleno = 3444 (0xd74), region = 108  ;;  %s3023_s10 = sld [smem:[#allocation15_spill]] (!%p703_p2) }
  0x15   : > { %p2225_p4 = scmp.ne.s32.totalorder (!%p703_p2), %s2564_s28, 0 }
  0x19   : > { %s2570_s29 = scalar_select %p798_p3, %s2564_s28, 1 }
  0x1a   : > { %845 = sbr.rel (%p2225_p4) target bundleno = 471 (0x1d7), region = 112  ;;  %s3024_s27 = sld [smem:[#allocation8_spill]] (!%p2225_p4) }
  0x1b   : > { %s2270_s6 = sshll.u32 %s2570_s29, 5  ;;  %s822_s19 = scalar_lea.vmem %s2991_s12, %s2570_s29 }
  0x1c   : > { %s2588_s4 = scalar_lea.vmem %s3022_s8, %s2270_s6  ;;  %s2593_s20 = scalar_lea.vmem %s3023_s10, %s2270_s6 }
  0x1d   : > { %s2610_s8 = scalar_lea.vmem %s2993_s14, %s2270_s6  ;;  %s2273_s21 = sshll.u32 %s2570_s29, 6 }
  0x1e   : > { %s2620_s1 = scalar_lea.vmem %s2995_s16, %s2273_s21  ;;  %s3025_s26 = sld [smem:[#allocation7_spill]] (!%p2225_p4) }
  0x1f   : > { %vm990_vm0 = vcmask 256000   ;;  %v2424_v2 = vmov 0.0   ;;  %s3026_s24 = sld [smem:[#allocation9_spill]]  ;;  %vm875_vm1 = vcmask 253952   ;;  %vm914_vm2 = vcmask 523264  }
  0x20   : > { %v861_v0 = vld [vmem:[%s3024_s27 + $0x78] sm:$0xff]  ;;  %v860_v1 = vld [vmem:[%s3024_s27 + $0x70] sm:$0xff]  ;;  %991 = vst.msk [vmem:[#allocation2 + $0x5] sm:$0x7] %vm990_vm0, %v2424_v2  ;;  %v859_v3 = vld [vmem:[%s3024_s27 + $0x68] sm:$0xff]  ;;  %s3027_s6 = sld [smem:[#allocation10_spill]] }
  0x21   : > { %917 = vmatpush.msra.mxu0 %v861_v0  ;;  %1002 = vmatpush.msra.mxu2 %v861_v0  ;;  %1068 = vst.msk [vmem:[#allocation2 + $0xd] sm:$0x7] %vm990_vm0, %v2424_v2  ;;  %v869_v4 = vld [vmem:[%s3024_s27 + $0xb8] sm:$0xff]  ;;  %v858_v5 = vld [vmem:[%s3024_s27 + $0x60] sm:$0xff]  ;;  %v868_v6 = vld [vmem:[%s3024_s27 + $0xb0] sm:$0xff]  ;;  %v2425_v35 = vmov 32.0  }
  0x22   : > { %945 = vmatpush.msra.mxu1 %v869_v4  ;;  %1030 = vmatpush.msra.mxu3 %v869_v4  ;;  %v867_v7 = vld [vmem:[%s3024_s27 + $0xa8] sm:$0xff]  ;;  %v857_v8 = vld [vmem:[%s3024_s27 + $0x58] sm:$0xff]  ;;  %v866_v9 = vld [vmem:[%s3024_s27 + $0xa0] sm:$0xff]  ;;  %2307 = vrcp.f32 %v2425_v35  ;;  %vm957_vm4 = vcmask 257024   ;;  %s3029_s30 = sld [smem:[#allocation12_spill]] }
  0x23   : > { %918 = vmatpush.msra.mxu0 %v860_v1  ;;  %1003 = vmatpush.msra.mxu2 %v860_v1  ;;  %v856_v11 = vld [vmem:[%s3024_s27 + $0x50] sm:$0xff]  ;;  %v865_v12 = vld [vmem:[%s3024_s27 + $0x98] sm:$0xff]  ;;  %v855_v13 = vld [vmem:[%s3024_s27 + $0x48] sm:$0xff] }
  0x24   : > { %946 = vmatpush.msra.mxu1 %v868_v6  ;;  %1031 = vmatpush.msra.mxu3 %v868_v6  ;;  %v907_v10 = vld [vmem:[%s3025_s26] sm:$0xff]  ;;  %v864_v16 = vld [vmem:[%s3024_s27 + $0x90] sm:$0xff]  ;;  %v863_v18 = vld [vmem:[%s3024_s27 + $0x88] sm:$0xff] }
  0x25   : > { %919 = vmatpush.msra.mxu0 %v859_v3  ;;  %1004 = vmatpush.msra.mxu2 %v859_v3  ;;  %910 = vst [vmem:[#allocation1] ss:$2 sm:$0xff] %v907_v10  ;;  %v872_v14 = vld [vmem:[%s3026_s24] sm:$0x1]  ;;  %v2227_v19 = vld [vmem:[%s3025_s26 + $0x8] sm:$0xff]  ;;  %v853_v21 = vld [vmem:[%s3024_s27 + $0x38] sm:$0xff] }
  0x26   : > { %947 = vmatpush.msra.mxu1 %v867_v7  ;;  %1032 = vmatpush.msra.mxu3 %v867_v7  ;;  %v873_v15 = vld [vmem:[%s3027_s6] sm:$0x1]  ;;  %v852_v25 = vld [vmem:[%s3024_s27 + $0x30] sm:$0xff]  ;;  %v851_v27 = vld [vmem:[%s3024_s27 + $0x28] sm:$0xff]  ;;  %s3028_s24 = sld [smem:[#allocation11_spill]] }
  0x27   : > { %920 = vmatpush.msra.mxu0 %v858_v5  ;;  %1005 = vmatpush.msra.mxu2 %v858_v5  ;;  %v854_v17 = vld [vmem:[%s3024_s27 + $0x40] sm:$0xff]  ;;  %v2684_v20 = vadd.f32 %v873_v15, %v872_v14  ;;  %v849_v29 = vld [vmem:[%s3024_s27 + $0x18] sm:$0xff]  ;;  %v848_v31 = vld [vmem:[%s3024_s27 + $0x10] sm:$0xff] }
  0x28   : > { %948 = vmatpush.msra.mxu1 %v866_v9  ;;  %1033 = vmatpush.msra.mxu3 %v866_v9  ;;  %v862_v22 = vld [vmem:[%s3024_s27 + $0x80] sm:$0xff]  ;;  %v847_v32 = vld [vmem:[%s3024_s27 + $0x8] sm:$0xff]  ;;  %v2308_v36 = vpop.eup %2307 }
  0x29   : > { %921 = vmatpush.msra.mxu0 %v857_v8  ;;  %1006 = vmatpush.msra.mxu2 %v857_v8  ;;  %v876_v26 = vsel %vm875_vm1, %v2684_v20, 0.0  ;;  %v850_v28 = vld [vmem:[%s3024_s27 + $0x20] sm:$0xff]  ;;  %v880_v37 = vmul.f32 32.0, %v2308_v36  ;;  %vm884_vm3 = vweird.f32 %v2308_v36 }
  0x2a   : > { %949 = vmatpush.msra.mxu1 %v865_v12  ;;  %1034 = vmatpush.msra.mxu3 %v865_v12  ;;  %v846_v33 = vld [vmem:[%s3024_s27] sm:$0xff] }
  0x2b   : > { %922 = vmatpush.msra.mxu0 %v856_v11  ;;  %1007 = vmatpush.msra.mxu2 %v856_v11  ;;  %v881_v38 = vsub.f32 1.0, %v880_v37  ;;  %v908_v40 = vld [vmem:[%s3027_s6 + $0x1] sm:$0xf] }
  0x2c   : > { %950 = vmatpush.msra.mxu1 %v864_v16  ;;  %1035 = vmatpush.msra.mxu3 %v864_v16  ;;  %v911_v23 = vld.sshfl [vmem:[#allocation1] sm:$0xff pattern:$0x75316420]  ;;  %v912_v24 = vld.sshfl [vmem:[#allocation1 + $0x8] sm:$0xff pattern:$0x75316420] }
  0x2d   : > { %923 = vmatpush.msra.mxu0 %v855_v13  ;;  %1008 = vmatpush.msra.mxu2 %v855_v13  ;;  %996 = vst [vmem:[#allocation1] ss:$2 sm:$0xff] %v2227_v19  ;;  %v882_v39 = vmul.f32 %v2308_v36, %v881_v38  ;;  %v994_v48 = vld [vmem:[%s3027_s6 + $0x1] sm:$0xf]  ;;  %v870_v14 = vld [vmem:[%s3028_s24] sm:$0x1] }
  0x2e   : > { %951 = vmatpush.msra.mxu1 %v863_v18  ;;  %1036 = vmatpush.msra.mxu3 %v863_v18 }
  0x2f   : > { %924 = vmatpush.msra.mxu0 %v854_v17  ;;  %1009 = vmatpush.msra.mxu2 %v854_v17  ;;  %v883_v41 = vadd.f32 %v2308_v36, %v882_v39  ;;  %v871_v17 = vld [vmem:[%s3029_s30] sm:$0x1] }
  0x30   : > { %952 = vmatpush.msra.mxu1 %v862_v22  ;;  %1037 = vmatpush.msra.mxu3 %v862_v22  ;;  %v985_v37 = vperm.slane %v871_v17, 0 }
  0x31   : > { %925 = vmatpush.msra.mxu0 %v853_v21  ;;  %1010 = vmatpush.msra.mxu2 %v853_v21  ;;  %v885_v45 = vsel %vm884_vm3, %v2308_v36, %v883_v41 }
  0x32   : > { %2226 = vmatmul.msk.f32.vlgmr.msra.gmra.mxu1 %vm914_vm2, %v912_v24  ;;  %877 = vadd.xlane.f32.xlu0 %v876_v26 }
  0x33   : > { %926 = vmatpush.msra.mxu0 %v852_v25  ;;  %1011 = vmatpush.msra.mxu2 %v852_v25 }
  0x34   : > { %v998_v30 = vld.sshfl [vmem:[#allocation1 + $0x8] sm:$0xff pattern:$0x75316420]  ;;  %v997_v34 = vld.sshfl [vmem:[#allocation1] sm:$0xff pattern:$0x75316420] }
  0x35   : > { %927 = vmatpush.msra.mxu0 %v851_v27  ;;  %1012 = vmatpush.msra.mxu2 %v851_v27 }
  0x36   : > { %2228 = vmatmul.msk.f32.vlgmr.msra.gmra.mxu3 %vm914_vm2, %v998_v30 }
  0x37   : > { %928 = vmatpush.msra.mxu0 %v850_v28  ;;  %1013 = vmatpush.msra.mxu2 %v850_v28 }
  0x39   : > { %929 = vmatpush.msra.mxu0 %v849_v29  ;;  %1014 = vmatpush.msra.mxu2 %v849_v29 }
  0x3b   : > { %930 = vmatpush.msra.mxu0 %v848_v31  ;;  %1015 = vmatpush.msra.mxu2 %v848_v31 }
  0x3d   : > { %931 = vmatpush.msra.mxu0 %v847_v32  ;;  %1016 = vmatpush.msra.mxu2 %v847_v32 }
  0x3f   : > { %932 = vmatpush.msra.mxu0 %v846_v33  ;;  %1017 = vmatpush.msra.mxu2 %v846_v33 }
  0x40   : > { %933 = vmatmul.f32.vlgmr.msra.gmra.mxu0 %v911_v23  ;;  %1018 = vmatmul.f32.vlgmr.msra.gmra.mxu2 %v997_v34  ;;  %v981_v34 = vperm.slane %v870_v14, 0 }
  0xa5   : > { %v878_v46 = vpop.xlane.xlu0 %877 }
  0xa6   : > { %v886_v50 = vmul.f32 %v885_v45, %v878_v46 }
  0xa8   : > { %v887_v55 = vsub.f32 %v2684_v20, %v886_v50 }
  0xaa   : > { %v888_v57 = vmul.f32 %v887_v55, %v887_v55 }
  0xac   : > { %v889_v58 = vsel %vm875_vm1, %v888_v57, 0.0 }
  0xaf   : > { %v954_v43 = vpop.f32.mrf.mxu1 }
  0xb9   : > { %v1039_v52 = vpop.f32.mrf.mxu3 }
  0xbd   : > { %v934_v42 = vpop.f32.mrf.mxu0 }
  0xbe   : > { %v935_v44 = vadd.f32 %v934_v42, %v908_v40 }
  0xc0   : > { %v955_v47 = vadd.f32 %v954_v43, %v935_v44 }
  0xc2   : > { %v958_v49 = vsel %vm957_vm4, %v955_v47, 0.0 }
  0xc3   : > { %v1019_v51 = vpop.f32.mrf.mxu2  ;;  %959 = vadd.xlane.f32.xlu0 %v958_v49 }
  0xc4   : > { %v1020_v53 = vadd.f32 %v1019_v51, %v994_v48 }
  0xc6   : > { %v1040_v54 = vadd.f32 %v1039_v52, %v1020_v53 }
  0xc8   : > { %v1042_v56 = vsel %vm957_vm4, %v1040_v54, 0.0 }
  0xc9   : > { %1043 = vadd.xlane.f32.xlu1 %v1042_v56 }
  0xd1   : > { %890 = vadd.xlane.f32.xlu1 %v889_v58 }
 0x136   : > { %v960_v59 = vpop.xlane.xlu0 %959 }
 0x137   : > { %v961_v60 = vmul.f32 %v960_v59, %v885_v45 }
 0x139   : > { %v962_v61 = vsub.f32 %v955_v47, %v961_v60 }
 0x13b   : > { %v963_v62 = vmul.f32 %v962_v61, %v962_v61 }
 0x13c   : > { %v1044_v63 = vpop.xlane.xlu1 %1043 }
 0x13d   : > { %v1045_v0 = vmul.f32 %v1044_v63, %v885_v45  ;;  %v964_v1 = vsel %vm957_vm4, %v963_v62, 0.0 }
 0x13e   : > { %965 = vadd.xlane.f32.xlu2 %v964_v1 }
 0x13f   : > { %v1046_v2 = vsub.f32 %v1040_v54, %v1045_v0 }
 0x141   : > { %v1047_v3 = vmul.f32 %v1046_v2, %v1046_v2 }
 0x143   : > { %v1048_v6 = vsel %vm957_vm4, %v1047_v3, 0.0 }
 0x144   : > { %v891_v4 = vpop.xlane.xlu1 %890 }
 0x145   : > { %v892_v5 = vmul.f32 %v891_v4, %v885_v45 }
 0x146   : > { %1049 = vadd.xlane.f32.xlu2 %v1048_v6 }
 0x147   : > { %v893_v7 = vadd.f32 1e-05, %v892_v5 }
 0x149   : > { %2309 = vrsqrt.f32 %v893_v7  ;;  %vm900_vm5 = vweird.f32 %v893_v7 }
 0x14f   : > { %v2310_v8 = vpop.eup %2309 }
 0x150   : > { %v895_v9 = vmul.f32 %v2310_v8, %v893_v7  ;;  %vm901_vm6 = vweird.f32 %v2310_v8 }
 0x151   : > { %vm902_vm7 = vmor %vm900_vm5, %vm901_vm6 }
 0x152   : > { %v896_v10 = vmul.f32 %v2310_v8, %v895_v9 }
 0x154   : > { %v897_v11 = vmul.f32 0.5, %v896_v10 }
 0x156   : > { %v898_v12 = vsub.f32 1.5, %v897_v11 }
 0x158   : > { %v899_v13 = vmul.f32 %v2310_v8, %v898_v12 }
 0x15a   : > { %v903_v15 = vsel %vm902_vm7, %v2310_v8, %v899_v13 }
 0x15b   : > { %v904_v16 = vmul.f32 %v903_v15, %v887_v55 }
 0x15d   : > { %v905_v18 = vmul.f32 %v904_v16, %v870_v14 }
 0x15f   : > { %v906_v19 = vadd.f32 %v905_v18, %v871_v17 }
 0x161   : > { %988 = vst.msk [vmem:[#allocation2] sm:$0x1] %vm875_vm1, %v906_v19 }
 0x162   : > { %1066 = vst.msk [vmem:[#allocation2 + $0x8] sm:$0x1] %vm875_vm1, %v906_v19 }
 0x1b1   : > { %v966_v20 = vpop.xlane.xlu2 %965 }
 0x1b2   : > { %v967_v21 = vmul.f32 %v966_v20, %v885_v45 }
 0x1b4   : > { %v968_v22 = vadd.f32 1e-05, %v967_v21 }
 0x1b6   : > { %2311 = vrsqrt.f32 %v968_v22  ;;  %vm975_vm9 = vweird.f32 %v968_v22 }
 0x1b9   : > { %v1050_v23 = vpop.xlane.xlu2 %1049 }
 0x1ba   : > { %v1051_v24 = vmul.f32 %v1050_v23, %v885_v45 }
 0x1bc   : > { %v2312_v25 = vpop.eup %2311  ;;  %v1052_v26 = vadd.f32 1e-05, %v1051_v24 }
 0x1bd   : > { %v970_v27 = vmul.f32 %v2312_v25, %v968_v22  ;;  %vm976_vm8 = vweird.f32 %v2312_v25 }
 0x1be   : > { %2313 = vrsqrt.f32 %v1052_v26  ;;  %vm977_vm10 = vmor %vm975_vm9, %vm976_vm8  ;;  %vm1059_vm12 = vweird.f32 %v1052_v26 }
 0x1bf   : > { %v971_v28 = vmul.f32 %v2312_v25, %v970_v27 }
 0x1c1   : > { %v972_v29 = vmul.f32 0.5, %v971_v28 }
 0x1c3   : > { %v973_v30 = vsub.f32 1.5, %v972_v29 }
 0x1c4   : > { %v2314_v31 = vpop.eup %2313 }
 0x1c5   : > { %v974_v32 = vmul.f32 %v2312_v25, %v973_v30  ;;  %v1054_v33 = vmul.f32 %v2314_v31, %v1052_v26  ;;  %vm1060_vm11 = vweird.f32 %v2314_v31 }
 0x1c6   : > { %vm1061_vm13 = vmor %vm1059_vm12, %vm1060_vm11 }
 0x1c7   : > { %v978_v35 = vsel %vm977_vm10, %v2312_v25, %v974_v32  ;;  %v1055_v36 = vmul.f32 %v2314_v31, %v1054_v33 }
 0x1c8   : > { %v979_v38 = vmul.f32 %v978_v35, %v962_v61 }
 0x1c9   : > { %v1056_v39 = vmul.f32 0.5, %v1055_v36 }
 0x1ca   : > { %v983_v40 = vmul.f32 %v981_v34, %v979_v38 }
 0x1cb   : > { %v1057_v41 = vsub.f32 1.5, %v1056_v39 }
 0x1cc   : > { %v987_v42 = vadd.f32 %v985_v37, %v983_v40 }
 0x1cd   : > { %v1058_v43 = vmul.f32 %v2314_v31, %v1057_v41 }
 0x1ce   : > { %989 = vst.msk [vmem:[#allocation2 + $0x1] sm:$0xf] %vm957_vm4, %v987_v42 }
 0x1cf   : > { %v1062_v44 = vsel %vm1061_vm13, %v2314_v31, %v1058_v43 }
 0x1d0   : > { %v1063_v45 = vmul.f32 %v1062_v44, %v1046_v2 }
 0x1d2   : > { %v1064_v46 = vmul.f32 %v1063_v45, %v981_v34 }
 0x1d4   : > { %v1065_v47 = vadd.f32 %v1064_v46, %v985_v37 }
 0x1d6   : > { %1067 = vst.msk [vmem:[#allocation2 + $0x9] sm:$0xf] %vm957_vm4, %v1065_v47 }
 0x1d7 PF: > { %v2739_v48 = vld [vmem:[#allocation2] sm:$0xff]  ;;  %vm1103_vm14 = vcmask 261120   ;;  %v2426_v52 = vmov 32.0   ;;  %v1074_v5 = vld [vmem:[%s2588_s4 + $0x18] sm:$0xff]  ;;  %v1073_v6 = vld [vmem:[%s2588_s4 + $0x10] sm:$0xff]  ;;  %s3030_s21 = sld [smem:[#allocation13_spill]]  ;;  %s3032_s10 = scalar_lea.vmem %s2986_s7, %s2570_s29 }
 0x1d8   : > { %v1104_v50 = vsel %vm1103_vm14, %v2739_v48, 0.0  ;;  %2328 = vrcp.f32 %v2426_v52  ;;  %1186 = vmatpush.msra.mxu0 %v1074_v5  ;;  %v1072_v7 = vld [vmem:[%s2588_s4 + $0x8] sm:$0xff]  ;;  %v1071_v8 = vld [vmem:[%s2588_s4] sm:$0xff]  ;;  %s3033_s25 = scalar_lea.vmem %s2988_s9, %s2570_s29  ;;  %s2427_s5 = smov 64   ;;  %vm1202_vm6 = vcmask 64512   ;;  %v2434_v52 = vmov 0.0  }
 0x1d9   : > { %1105 = vadd.xlane.f32.xlu0 %v1104_v50  ;;  %v2321_v31 = vld [vmem:[%s3032_s10] ss:$0 sm:$0xff]  ;;  %s2428_s30 = smov 96   ;;  %s2429_s4 = smov 80   ;;  %v1097_v50 = vlaneseq  ;;  %vm1746_vm8 = vcmask 130048   ;;  %vm1749_vm9 = vcmask 195584  }
 0x1da   : > { %1187 = vmatpush.msra.mxu0 %v1073_v6  ;;  %v2322_v37 = vld [vmem:[%s3033_s25] ss:$0 sm:$0xff]  ;;  %s2430_s22 = smov 88   ;;  %s2433_s23 = smov 104  }
 0x1db   : > { %s2435_s0 = smov 120   ;;  %s2436_s10 = smov 48  }
 0x1dc   : > { %1188 = vmatpush.msra.mxu0 %v1072_v7  ;;  %s2437_s2 = smov 40   ;;  %s2438_s24 = smov 56  }
 0x1dd   : > { %v2741_v49 = vld [vmem:[#allocation2 + $0x8] sm:$0xff]  ;;  %s3031_s3 = scalar_lea.vmem %s3030_s21, %s2570_s29  ;;  %s2431_s21 = smov 72  }
 0x1de   : > { %v1107_v51 = vsel %vm1103_vm14, %v2741_v49, 0.0  ;;  %v2329_v53 = vpop.eup %2328  ;;  %1189 = vmatpush.msra.mxu0 %v1071_v8  ;;  %v2320_v27 = vld [vmem:[%s3031_s3] ss:$0 sm:$0xff]  ;;  %s2432_s3 = smov 112   ;;  %s2439_s25 = smov 8  }
 0x1df   : > { %1108 = vadd.xlane.f32.xlu1 %v1107_v51  ;;  %v1111_v54 = vmul.f32 32.0, %v2329_v53  ;;  %vm1115_vm15 = vweird.f32 %v2329_v53  ;;  %v1098_v51 = vand.u32 127, %v1097_v50  ;;  %p2263_p5 = scmp.ne.s32.totalorder %s2564_s28, 1 }
 0x1e1   : > { %v1112_v55 = vsub.f32 1.0, %v1111_v54  ;;  %vm1099_vm7 = vcmp.ge.s32.totalorder %v1098_v51, 5 }
 0x1e3   : > { %v1113_v56 = vmul.f32 %v2329_v53, %v1112_v55 }
 0x1e5   : > { %v1114_v57 = vadd.f32 %v2329_v53, %v1113_v56 }
 0x1e7   : > { %v2747_v58 = vsel %vm1115_vm15, %v2329_v53, %v1114_v57  ;;  %v2798_v53 = vsel %vm1099_vm7, -1e+09, %v2434_v52 }
 0x24c   : > { %v1106_v59 = vpop.xlane.xlu0 %1105 }
 0x24d   : > { %v1117_v61 = vmul.f32 %v2747_v58, %v1106_v59 }
 0x24f   : > { %v1119_v63 = vsub.f32 %v2739_v48, %v1117_v61 }
 0x251   : > { %v1121_v1 = vmul.f32 %v1119_v63, %v1119_v63 }
 0x252   : > { %v1109_v60 = vpop.xlane.xlu1 %1108 }
 0x253   : > { %v1118_v62 = vmul.f32 %v2747_v58, %v1109_v60  ;;  %v1123_v3 = vsel %vm1103_vm14, %v1121_v1, 0.0 }
 0x254   : > { %1124 = vadd.xlane.f32.xlu0 %v1123_v3 }
 0x255   : > { %v1120_v0 = vsub.f32 %v2741_v49, %v1118_v62 }
 0x257   : > { %v1122_v2 = vmul.f32 %v1120_v0, %v1120_v0 }
 0x259   : > { %v1126_v4 = vsel %vm1103_vm14, %v1122_v2, 0.0 }
 0x25a   : > { %1127 = vadd.xlane.f32.xlu2 %v1126_v4 }
 0x2c7   : > { %v1125_v9 = vpop.xlane.xlu0 %1124 }
 0x2c8   : > { %v1129_v11 = vmul.f32 %v1125_v9, %v2747_v58 }
 0x2ca   : > { %v1131_v13 = vadd.f32 1e-05, %v1129_v11 }
 0x2cc   : > { %2330 = vrsqrt.f32 %v1131_v13  ;;  %vm1139_vm3 = vweird.f32 %v1131_v13 }
 0x2cd   : > { %v1128_v10 = vpop.xlane.xlu2 %1127 }
 0x2ce   : > { %v1130_v12 = vmul.f32 %v1128_v10, %v2747_v58 }
 0x2d0   : > { %v1132_v14 = vadd.f32 1e-05, %v1130_v12 }
 0x2d2   : > { %2332 = vrsqrt.f32 %v1132_v14  ;;  %v2331_v15 = vpop.eup %2330  ;;  %vm1149_vm0 = vweird.f32 %v1132_v14 }
 0x2d3   : > { %v1134_v17 = vmul.f32 %v2331_v15, %v1131_v13  ;;  %vm1140_vm2 = vweird.f32 %v2331_v15 }
 0x2d4   : > { %vm1141_vm5 = vmor %vm1139_vm3, %vm1140_vm2 }
 0x2d5   : > { %v1135_v19 = vmul.f32 %v2331_v15, %v1134_v17 }
 0x2d7   : > { %v1136_v21 = vmul.f32 0.5, %v1135_v19 }
 0x2d8   : > { %v2333_v16 = vpop.eup %2332 }
 0x2d9   : > { %v1144_v18 = vmul.f32 %v2333_v16, %v1132_v14  ;;  %vm1150_vm1 = vweird.f32 %v2333_v16  ;;  %v1137_v23 = vsub.f32 1.5, %v1136_v21 }
 0x2da   : > { %vm1151_vm4 = vmor %vm1149_vm0, %vm1150_vm1 }
 0x2db   : > { %v1145_v20 = vmul.f32 %v2333_v16, %v1144_v18  ;;  %v1138_v25 = vmul.f32 %v2331_v15, %v1137_v23 }
 0x2dd   : > { %v1146_v22 = vmul.f32 0.5, %v1145_v20  ;;  %v1142_v28 = vsel %vm1141_vm5, %v2331_v15, %v1138_v25  ;;  %vm1917_vm5 = vcmask 523264  }
 0x2de   : > { %v1153_v30 = vmul.f32 %v1142_v28, %v1119_v63 }
 0x2df   : > { %v1147_v24 = vsub.f32 1.5, %v1146_v22 }
 0x2e0   : > { %v1158_v32 = vmul.f32 %v2320_v27, %v1153_v30 }
 0x2e1   : > { %v1148_v26 = vmul.f32 %v2333_v16, %v1147_v24 }
 0x2e2   : > { %v1163_v34 = vadd.f32 %v2321_v31, %v1158_v32 }
 0x2e3   : > { %v1152_v29 = vsel %vm1151_vm4, %v2333_v16, %v1148_v26 }
 0x2e4   : > { %v1154_v33 = vmul.f32 %v1152_v29, %v1120_v0  ;;  %2229 = vmatmul.msk.f32.vlgmr.msra.gmra.mxu0 %vm1103_vm14, %v1163_v34 }
 0x2e6   : > { %v1159_v35 = vmul.f32 %v2320_v27, %v1154_v33 }
 0x2e8   : > { %v1164_v36 = vadd.f32 %v2321_v31, %v1159_v35 }
 0x2ec   : > { %2230 = vmatmul.msk.f32.gmra.mxu0 %vm1103_vm14, %v1164_v36 }
 0x361   : > { %v1191_v38 = vpop.f32.mrf.mxu0 }
 0x362   : > { %v2778_v39 = vadd.f32 %v2322_v37, %v1191_v38 }
 0x364   : > { %1278 = vrot.lane.b32.xlu0 %v2778_v39, %s2427_s5  ;;  %1200 = vrot.lane.b32.xlu1 %v2778_v39, %s2428_s30  ;;  %v1197_v42 = vmul.f32 0.35355338, %v2778_v39 }
 0x369   : > { %v1194_v40 = vpop.f32.mrf.mxu0 }
 0x36a   : > { %v2784_v41 = vadd.f32 %v2322_v37, %v1194_v40 }
 0x36c   : > { %1462 = vrot.lane.b32.xlu0 %v2778_v39, %s2429_s4  ;;  %1360 = vrot.lane.b32.xlu1 %v2784_v41, %s2430_s22  ;;  %v1198_v43 = vmul.f32 0.35355338, %v2784_v41 }
 0x374   : > { %1592 = vrot.lane.b32.xlu0 %v2778_v39, %s2431_s21  ;;  %1332 = vrot.lane.b32.xlu1 %v2778_v39, %s2430_s22  ;;  %s3034_s22 = scalar_lea.vmem %s2990_s11, %s2570_s29 }
 0x37c   : > { %1460 = vrot.lane.b32.xlu1 %v1197_v42, %s2432_s3 }
 0x384   : > { %1490 = vrot.lane.b32.xlu1 %v2784_v41, %s2429_s4  ;;  %s3038_s4 = sld [smem:[#allocation18_spill]] (!%p2263_p5) }
 0x38c   : > { %1618 = vrot.lane.b32.xlu1 %v1198_v43, %s2433_s23 }
 0x3d6   : > { %v1279_v44 = vpop.permute.xlu0 %1278  ;;  %v1201_v45 = vpop.permute.xlu1 %1200 }
 0x3d7   : > { %2231 = vmatpush.xpose.msk.msra.mxu1 %vm1202_vm6, %v1201_v45 }
 0x3da   : > { %2232 = vmatmul.msk.f32.vlgmr.msra.gmra.mxu1 %vm1202_vm6, %v1197_v42 }
 0x3db   : > { %1299 = vmatpush.msrb.mxu1 %v1279_v44 }
 0x3de   : > { %v1361_v46 = vpop.permute.xlu1 %1360  ;;  %v1463_v0 = vpop.permute.xlu0 %1462 }
 0x3e6   : > { %v1333_v47 = vpop.permute.xlu1 %1332  ;;  %v1593_v4 = vpop.permute.xlu0 %1592 }
 0x3e7   : > { %2237 = vmatpush.xpose.msk.msra.mxu1 %vm1202_vm6, %v1333_v47 }
 0x3ee   : > { %v1461_v57 = vpop.permute.xlu1 %1460 }
 0x3f6   : > { %v1491_v59 = vpop.permute.xlu1 %1490 }
 0x3f7   : > { %2245 = vmatpush.xpose.msk.msrb.mxu0 %vm1202_vm6, %v1491_v59 }
 0x3fe   : > { %v1619_v18 = vpop.permute.xlu1 %1618 }
 0x457   : > { %v1225_v54 = vpop.f32.mrf.mxu1 }
 0x458   : > { %v1226_v55 = vadd.f32 %v1225_v54, %v2798_v53 }
 0x45a   : > { %v1256_v56 = vsel %vm1202_vm6, %v1226_v55, -inf }
 0x45b   : > { %1257 = vmax.xlane.f32.xlu2 %v1256_v56 }
 0x473   : > { %1229 = vrot.lane.b32.xlu2 %v2784_v41, %s2428_s30  ;;  %s2441_s30 = smov 24  }
 0x47b   : > { %1358 = vrot.lane.b32.xlu2 %v1198_v43, %s2435_s0 }
 0x483   : > { %1330 = vrot.lane.b32.xlu2 %v1197_v42, %s2435_s0  ;;  %s3035_s0 = scalar_lea.vmem %s2992_s13, %s2570_s29 }
 0x48b   : > { %1590 = vrot.lane.b32.xlu2 %v1197_v42, %s2433_s23 }
 0x493   : > { %1620 = vrot.lane.b32.xlu2 %v2784_v41, %s2431_s21 }
 0x4ce   : > { %v1258_v60 = vpop.xlane.xlu2 %1257 }
 0x4cf   : > { %v1262_v61 = vsub.f32 %v1226_v55, %v1258_v60 }
 0x4d1   : > { %v1264_v62 = vmul.f32 1.442695, %v1262_v61 }
 0x4d3   : > { %2334 = vpow2.f32 %v1264_v62 }
 0x4d6   : > { %v1230_v63 = vpop.permute.xlu2 %1229 }
 0x4d7   : > { %2233 = vmatpush.xpose.msk.msra.mxu2 %vm1202_vm6, %v1230_v63 }
 0x4d9   : > { %v2335_v1 = vpop.eup %2334 }
 0x4da   : > { %2234 = vmatmul.msk.f32.vlgmr.msra.gmra.mxu2 %vm1202_vm6, %v1198_v43  ;;  %v1268_v2 = vsel %vm1202_vm6, %v2335_v1, 0.0 }
 0x4db   : > { %2239 = vmatpush.xpose.msk.msrb.mxu2 %vm1202_vm6, %v1361_v46  ;;  %1269 = vadd.xlane.f32.xlu0 %v1268_v2 }
 0x4de   : > { %v1359_v3 = vpop.permute.xlu2 %1358 }
 0x4df   : > { %2243 = vmatpush.xpose.msk.msra.mxu2 %vm1202_vm6, %v1463_v0 }
 0x4e2   : > { %2240 = vmatmul.msk.f32.vlgmr.msrb.gmra.mxu2 %vm1202_vm6, %v1359_v3 }
 0x4e3   : > { %2249 = vmatpush.xpose.msk.msrb.mxu2 %vm1202_vm6, %v1593_v4 }
 0x4e6   : > { %v1331_v5 = vpop.permute.xlu2 %1330 }
 0x4ea   : > { %2244 = vmatmul.msk.f32.vlgmr.msra.gmra.mxu2 %vm1202_vm6, %v1461_v57 }
 0x4ee   : > { %v1591_v6 = vpop.permute.xlu2 %1590 }
 0x4ef   : > { %1488 = vrot.lane.b32.xlu0 %v1198_v43, %s2432_s3 }
 0x4f2   : > { %2250 = vmatmul.msk.f32.vlgmr.msrb.gmra.mxu2 %vm1202_vm6, %v1591_v6 }
 0x4f6   : > { %v1621_v7 = vpop.permute.xlu2 %1620 }
 0x4f7   : > { %2251 = vmatpush.xpose.msk.msra.mxu0 %vm1202_vm6, %v1621_v7 }
 0x54e   : > { %v1270_v8 = vpop.xlane.xlu0 %1269 }
 0x54f   : > { %2336 = vrcp.f32 %v1270_v8 }
 0x555   : > { %v2337_v9 = vpop.eup %2336 }
 0x556   : > { %v1276_v10 = vmul.f32 %v2337_v9, %v2335_v1 }
 0x558   : > { %2235 = vmatmul.msk.f32.vlgmr.msrb.gmra.mxu1 %vm1202_vm6, %v1276_v10 }
 0x55d   : > { %v1253_v11 = vpop.f32.mrf.mxu2 }
 0x55e   : > { %v1254_v12 = vadd.f32 %v1253_v11, %v2798_v53  ;;  %v2315_v11 = vpack.i.bf16 %v2784_v41, %v2778_v39 }
 0x560   : > { %2238 = vmatmul.msk.f32.vlgmr.msra.gmra.mxu1 %vm1202_vm6, %v1331_v5  ;;  %v1259_v13 = vsel %vm1202_vm6, %v1254_v12, -inf }
 0x561   : > { %v1489_v14 = vpop.permute.xlu0 %1488  ;;  %1260 = vmax.xlane.f32.xlu0 %v1259_v13 }
 0x562   : > { %2246 = vmatmul.msk.f32.vlgmr.msrb.gmra.mxu0 %vm1202_vm6, %v1489_v14 }
 0x565   : > { %v1383_v15 = vpop.f32.mrf.mxu2 }
 0x566   : > { %v1384_v16 = vadd.f32 %v1383_v15, %v2798_v53 }
 0x568   : > { %v1389_v17 = vsel %vm1202_vm6, %v1384_v16, -inf }
 0x569   : > { %1390 = vmax.xlane.f32.xlu0 %v1389_v17 }
 0x56a   : > { %2252 = vmatmul.msk.f32.vlgmr.msra.gmra.mxu0 %vm1202_vm6, %v1619_v18 }
 0x56d   : > { %v1485_v19 = vpop.f32.mrf.mxu2 }
 0x56e   : > { %v1486_v20 = vadd.f32 %v1485_v19, %v2798_v53 }
 0x570   : > { %v1516_v21 = vsel %vm1202_vm6, %v1486_v20, -inf }
 0x571   : > { %1517 = vmax.xlane.f32.xlu1 %v1516_v21 }
 0x575   : > { %v1615_v30 = vpop.f32.mrf.mxu2 }
 0x576   : > { %v1616_v33 = vadd.f32 %v1615_v30, %v2798_v53 }
 0x578   : > { %v1646_v38 = vsel %vm1202_vm6, %v1616_v33, -inf }
 0x5d4   : > { %v1261_v23 = vpop.xlane.xlu0 %1260 }
 0x5d5   : > { %v2828_v22 = vpop.f32.mrf.mxu1  ;;  %v1263_v26 = vsub.f32 %v1254_v12, %v1261_v23 }
 0x5d7   : > { %v1266_v32 = vmul.f32 1.442695, %v1263_v26 }
 0x5d9   : > { %2338 = vpow2.f32 %v1266_v32 }
 0x5dc   : > { %v1391_v43 = vpop.xlane.xlu0 %1390 }
 0x5dd   : > { %v1355_v24 = vpop.f32.mrf.mxu1  ;;  %v1393_v45 = vsub.f32 %v1384_v16, %v1391_v43 }
 0x5de   : > { %v1356_v25 = vadd.f32 %v1355_v24, %v2798_v53 }
 0x5df   : > { %v1513_v27 = vpop.f32.mrf.mxu0  ;;  %v2339_v44 = vpop.eup %2338  ;;  %v1396_v47 = vmul.f32 1.442695, %v1393_v45 }
 0x5e0   : > { %v1514_v28 = vadd.f32 %v1513_v27, %v2798_v53  ;;  %v1386_v29 = vsel %vm1202_vm6, %v1356_v25, -inf  ;;  %v1271_v46 = vsel %vm1202_vm6, %v2339_v44, 0.0 }
 0x5e1   : > { %1387 = vmax.xlane.f32.xlu2 %v1386_v29 }
 0x5e2   : > { %v1519_v31 = vsel %vm1202_vm6, %v1514_v28, -inf }
 0x5e3   : > { %1520 = vmax.xlane.f32.xlu1 %v1519_v31 }
 0x5e4   : > { %v1518_v34 = vpop.xlane.xlu1 %1517 }
 0x5e5   : > { %v1522_v35 = vsub.f32 %v1486_v20, %v1518_v34 }
 0x5e7   : > { %v1643_v36 = vpop.f32.mrf.mxu0  ;;  %v1524_v42 = vmul.f32 1.442695, %v1522_v35 }
 0x5e8   : > { %v1644_v37 = vadd.f32 %v1643_v36, %v2798_v53 }
 0x5e9   : > { %1647 = vmax.xlane.f32.xlu2 %v1646_v38  ;;  %2340 = vpow2.f32 %v1524_v42 }
 0x5ea   : > { %v1649_v40 = vsel %vm1202_vm6, %v1644_v37, -inf  ;;  %2342 = vpow2.f32 %v1396_v47 }
 0x5eb   : > { %1650 = vmax.xlane.f32.xlu0 %v1649_v40 }
 0x5ef   : > { %v2839_v50 = vpop.eup %2340 }
 0x5f0   : > { %v1528_v51 = vsel %vm1202_vm6, %v2839_v50, 0.0  ;;  %v2843_v52 = vpop.eup %2342 }
 0x5f1   : > { %1272 = vadd.xlane.f32.xlu2 %v1271_v46  ;;  %v1401_v53 = vsel %vm1202_vm6, %v2843_v52, 0.0 }
 0x5f9   : > { %1529 = vadd.xlane.f32.xlu2 %v1528_v51  ;;  %v1079_v51 = vld [vmem:[%s2593_s20 + $0x18] sm:$0xff] }
 0x5fa   : > { %1773 = vmatpush.msra.mxu2 %v1079_v51 }
 0x5ff   : > { %1304 = vrot.lane.b32.xlu0 %v2784_v41, %s2427_s5  ;;  %s2440_s5 = smov 16  }
 0x601   : > { %1402 = vadd.xlane.f32.xlu2 %v1401_v53  ;;  %v1077_v53 = vld [vmem:[%s2593_s20 + $0x8] sm:$0xff] }
 0x607   : > { %1538 = vrot.lane.b32.xlu0 %v2778_v39, %s2436_s10 }
 0x60f   : > { %1668 = vrot.lane.b32.xlu0 %v2778_v39, %s2437_s2 }
 0x617   : > { %1694 = vrot.lane.b32.xlu0 %v2784_v41, %s2437_s2  ;;  %s3036_s2 = scalar_lea.vmem %s2994_s15, %s2570_s29 }
 0x654   : > { %v1388_v54 = vpop.xlane.xlu2 %1387 }
 0x655   : > { %v1392_v55 = vsub.f32 %v1356_v25, %v1388_v54  ;;  %v1076_v54 = vld [vmem:[%s2593_s20] sm:$0xff] }
 0x656   : > { %v1521_v57 = vpop.xlane.xlu1 %1520 }
 0x657   : > { %v1394_v56 = vmul.f32 1.442695, %v1392_v55  ;;  %v1523_v62 = vsub.f32 %v1514_v28, %v1521_v57 }
 0x659   : > { %2344 = vpow2.f32 %v1394_v56  ;;  %v1526_v1 = vmul.f32 1.442695, %v1523_v62 }
 0x65c   : > { %v1648_v59 = vpop.xlane.xlu2 %1647 }
 0x65d   : > { %v1652_v60 = vsub.f32 %v1616_v33, %v1648_v59 }
 0x65e   : > { %v1651_v5 = vpop.xlane.xlu0 %1650 }
 0x65f   : > { %v2345_v61 = vpop.eup %2344  ;;  %v1654_v63 = vmul.f32 1.442695, %v1652_v60  ;;  %v1653_v12 = vsub.f32 %v1644_v37, %v1651_v5 }
 0x660   : > { %v1398_v0 = vsel %vm1202_vm6, %v2345_v61, 0.0 }
 0x661   : > { %2346 = vpow2.f32 %v1654_v63  ;;  %1399 = vadd.xlane.f32.xlu1 %v1398_v0  ;;  %v1656_v13 = vmul.f32 1.442695, %v1653_v12 }
 0x662   : > { %2348 = vpow2.f32 %v1526_v1 }
 0x664   : > { %v1273_v2 = vpop.xlane.xlu2 %1272 }
 0x665   : > { %2350 = vrcp.f32 %v1273_v2 }
 0x666   : > { %2352 = vpow2.f32 %v1656_v13 }
 0x667   : > { %v2347_v3 = vpop.eup %2346 }
 0x668   : > { %v1658_v4 = vsel %vm1202_vm6, %v2347_v3, 0.0  ;;  %v2349_v6 = vpop.eup %2348 }
 0x669   : > { %1659 = vadd.xlane.f32.xlu2 %v1658_v4  ;;  %v1531_v8 = vsel %vm1202_vm6, %v2349_v6, 0.0 }
 0x66b   : > { %v2351_v7 = vpop.eup %2350 }
 0x66c   : > { %v1277_v10 = vmul.f32 %v2351_v7, %v2339_v44  ;;  %v2353_v14 = vpop.eup %2352  ;;  %v1530_v16 = vpop.xlane.xlu2 %1529 }
 0x66d   : > { %v1661_v15 = vsel %vm1202_vm6, %v2353_v14, 0.0 }
 0x671   : > { %v1305_v9 = vpop.permute.xlu0 %1304  ;;  %1532 = vadd.xlane.f32.xlu2 %v1531_v8 }
 0x672   : > { %1325 = vmatpush.msra.mxu3 %v1305_v9 }
 0x673   : > { %2236 = vmatmul.msk.f32.vlgmr.msra.gmra.mxu3 %vm1202_vm6, %v1277_v10 }
 0x674   : > { %v1403_v17 = vpop.xlane.xlu2 %1402 }
 0x675   : > { %2354 = vrcp.f32 %v1403_v17 }
 0x679   : > { %v1539_v19 = vpop.permute.xlu0 %1538 }
 0x67a   : > { %2316 = vrot.lane.b32.xlu1 %v2315_v11, %s2438_s24 }
 0x67b   : > { %v2355_v23 = vpop.eup %2354 }
 0x67c   : > { %v1407_v27 = vmul.f32 %v2355_v23, %v2843_v52  ;;  %v1078_v52 = vld [vmem:[%s2593_s20 + $0x10] sm:$0xff]  ;;  %v1083_v23 = vld [vmem:[%s2610_s8] sm:$0xff] }
 0x67d   : > { %1774 = vmatpush.msra.mxu2 %v1078_v52 }
 0x67f   : > { %1775 = vmatpush.msra.mxu2 %v1077_v53 }
 0x681   : > { %v1669_v21 = vpop.permute.xlu0 %1668  ;;  %1776 = vmatpush.msra.mxu2 %v1076_v54 }
 0x689   : > { %1564 = vrot.lane.b32.xlu2 %v2784_v41, %s2436_s10  ;;  %v1695_v30 = vpop.permute.xlu0 %1694 }
 0x6a4   : > { %1662 = vadd.xlane.f32.xlu1 %v1661_v15 }
 0x6d4   : > { %v1400_v20 = vpop.xlane.xlu1 %1399 }
 0x6d5   : > { %2356 = vrcp.f32 %v1400_v20  ;;  %v1086_v20 = vld [vmem:[%s2610_s8 + $0x18] sm:$0xff] }
 0x6d6   : > { %2358 = vrcp.f32 %v1530_v16  ;;  %1861 = vmatpush.msrb.mxu0 %v1086_v20 }
 0x6db   : > { %v2357_v24 = vpop.eup %2356 }
 0x6dc   : > { %v1660_v18 = vpop.xlane.xlu2 %1659  ;;  %v1406_v28 = vmul.f32 %v2357_v24, %v2345_v61  ;;  %v2359_v31 = vpop.eup %2358 }
 0x6dd   : > { %v1536_v33 = vmul.f32 %v2359_v31, %v2839_v50 }
 0x6e4   : > { %v1533_v39 = vpop.xlane.xlu2 %1532 }
 0x6e5   : > { %2360 = vrcp.f32 %v1533_v39  ;;  %v1085_v39 = vld [vmem:[%s2610_s8 + $0x10] sm:$0xff] }
 0x6e6   : > { %2362 = vrcp.f32 %v1660_v18  ;;  %1862 = vmatpush.msrb.mxu0 %v1085_v39 }
 0x6eb   : > { %v2361_v32 = vpop.eup %2360 }
 0x6ec   : > { %v2317_v41 = vpop.permute.xlu1 %2316  ;;  %v1565_v29 = vpop.permute.xlu2 %1564  ;;  %v1537_v34 = vmul.f32 %v2361_v32, %v2349_v6  ;;  %v2324_v32 = vld [vmem:[%s822_s19] ss:$0 sm:$0xff] }
 0x6ed   : > { %v2319_v25 = vunpack.i.h.bf16 %v2317_v41  ;;  %v2318_v26 = vunpack.i.l.bf16 %v2317_v41  ;;  %v2363_v35 = vpop.eup %2362 }
 0x6ee   : > { %v1666_v36 = vmul.f32 %v2363_v35, %v2347_v3  ;;  %v2325_v35 = vld [vmem:[%s3035_s0] ss:$0 sm:$0xff] }
 0x6ef   : > { %1429 = vmatpush.msrb.mxu3 %v2318_v26  ;;  %1455 = vmatpush.msrb.mxu1 %v2319_v25 }
 0x6f0   : > { %2241 = vmatmul.msk.f32.vlgmr.msrb.gmra.mxu3 %vm1202_vm6, %v1406_v28  ;;  %2242 = vmatmul.msk.f32.vlgmr.msrb.gmra.mxu1 %vm1202_vm6, %v1407_v27 }
 0x6f1   : > { %1559 = vmatpush.msra.mxu3 %v1539_v19  ;;  %1585 = vmatpush.msra.mxu1 %v1565_v29 }
 0x6f3   : > { %1689 = vmatpush.msrb.mxu3 %v1669_v21  ;;  %1715 = vmatpush.msrb.mxu1 %v1695_v30  ;;  %v1084_v21 = vld [vmem:[%s2610_s8 + $0x8] sm:$0xff] }
 0x6f4   : > { %1863 = vmatpush.msrb.mxu0 %v1084_v21 }
 0x6f6   : > { %v1327_v42 = vpop.f32.mrf.mxu3  ;;  %1864 = vmatpush.msrb.mxu0 %v1083_v23 }
 0x6f8   : > { %2247 = vmatmul.msk.f32.vlgmr.msra.gmra.mxu3 %vm1202_vm6, %v1536_v33  ;;  %2248 = vmatmul.msk.f32.vlgmr.msra.gmra.mxu1 %vm1202_vm6, %v1537_v34 }
 0x700   : > { %2253 = vmatmul.msk.f32.vlgmr.msrb.gmra.mxu3 %vm1202_vm6, %v1666_v36 }
 0x717   : > { %v1663_v37 = vpop.xlane.xlu1 %1662 }
 0x718   : > { %2364 = vrcp.f32 %v1663_v37 }
 0x71e   : > { %v2365_v38 = vpop.eup %2364 }
 0x71f   : > { %v1667_v40 = vmul.f32 %v2365_v38, %v2353_v14 }
 0x721   : > { %2254 = vmatmul.msk.f32.vlgmr.msrb.gmra.mxu1 %vm1202_vm6, %v1667_v40 }
 0x76d   : > { %v1457_v45 = vpop.f32.mrf.mxu1 }
 0x773   : > { %v1431_v43 = vpop.f32.mrf.mxu3 }
 0x774   : > { %1722 = vrot.lane.b32.xlu0 %v1431_v43, %s2439_s25 }
 0x775   : > { %v1587_v47 = vpop.f32.mrf.mxu1 }
 0x77b   : > { %v1561_v44 = vpop.f32.mrf.mxu3 }
 0x77c   : > { %1730 = vrot.lane.b32.xlu0 %v1561_v44, %s2440_s5 }
 0x783   : > { %v1691_v46 = vpop.f32.mrf.mxu3 }
 0x784   : > { %1724 = vrot.lane.b32.xlu0 %v1457_v45, %s2439_s25  ;;  %1738 = vrot.lane.b32.xlu2 %v1691_v46, %s2441_s30  ;;  %s3037_s25 = scalar_lea.vmem %s2996_s17, %s2570_s29 }
 0x78c   : > { %1732 = vrot.lane.b32.xlu2 %v1587_v47, %s2440_s5 }
 0x79e   : > { %v1717_v50 = vpop.f32.mrf.mxu1 }
 0x79f   : > { %1740 = vrot.lane.b32.xlu0 %v1717_v50, %s2441_s30 }
 0x7de   : > { %v1739_v59 = vpop.permute.xlu2 %1738 }
 0x7e6   : > { %v1723_v55 = vpop.permute.xlu0 %1722  ;;  %v1733_v0 = vpop.permute.xlu2 %1732 }
 0x7e7   : > { %v1744_v56 = vsel %vm1202_vm6, %v2828_v22, %v1723_v55  ;;  %v2323_v22 = vld [vmem:[%s3034_s22] ss:$0 sm:$0xff]  ;;  %v1095_v55 = vld [vmem:[%s2620_s1 + $0x38] sm:$0xff] }
 0x7e8   : > { %1932 = vmatpush.msra.mxu3 %v1095_v55 }
 0x7ee   : > { %v1731_v57 = vpop.permute.xlu0 %1730 }
 0x7ef   : > { %v1747_v60 = vsel %vm1746_vm8, %v1744_v56, %v1731_v57  ;;  %v1094_v56 = vld [vmem:[%s2620_s1 + $0x30] sm:$0xff]  ;;  %v1093_v57 = vld [vmem:[%s2620_s1 + $0x28] sm:$0xff] }
 0x7f0   : > { %v1750_v61 = vsel %vm1749_vm9, %v1747_v60, %v1739_v59  ;;  %1933 = vmatpush.msra.mxu3 %v1094_v56  ;;  %v1092_v59 = vld [vmem:[%s2620_s1 + $0x20] sm:$0xff]  ;;  %v1091_v60 = vld [vmem:[%s2620_s1 + $0x18] sm:$0xff] }
 0x7f1   : > { %2255 = vmatmul.msk.f32.vlgmr.msra.gmra.mxu2 %vm1103_vm14, %v1750_v61  ;;  %v2326_v61 = vld [vmem:[%s3036_s2] ss:$0 sm:$0xff]  ;;  %s3039_s2 = sld [smem:[#allocation16_spill]] (!%p2263_p5) }
 0x7f2   : > { %1934 = vmatpush.msra.mxu3 %v1093_v57 }
 0x7f4   : > { %1935 = vmatpush.msra.mxu3 %v1092_v59 }
 0x7f6   : > { %v1725_v62 = vpop.permute.xlu0 %1724  ;;  %1936 = vmatpush.msra.mxu3 %v1091_v60 }
 0x7f7   : > { %v1745_v63 = vsel %vm1202_vm6, %v1327_v42, %v1725_v62  ;;  %v1090_v62 = vld [vmem:[%s2620_s1 + $0x10] sm:$0xff] }
 0x7f8   : > { %v1748_v2 = vsel %vm1746_vm8, %v1745_v63, %v1733_v0  ;;  %1937 = vmatpush.msra.mxu3 %v1090_v62  ;;  %v1089_v0 = vld [vmem:[%s2620_s1 + $0x8] sm:$0xff] }
 0x7fa   : > { %1938 = vmatpush.msra.mxu3 %v1089_v0 }
 0x811   : > { %v1741_v1 = vpop.permute.xlu0 %1740 }
 0x812   : > { %v1751_v3 = vsel %vm1749_vm9, %v1748_v2, %v1741_v1  ;;  %v1088_v2 = vld [vmem:[%s2620_s1] sm:$0xff] }
 0x813   : > { %2256 = vmatmul.msk.f32.gmra.mxu2 %vm1103_vm14, %v1751_v3  ;;  %1939 = vmatpush.msra.mxu3 %v1088_v2 }
 0x874   : > { %v1778_v4 = vpop.f32.mrf.mxu2 }
 0x875   : > { %v1779_v5 = vadd.f32 %v2323_v22, %v1778_v4 }
 0x877   : > { %v2887_v6 = vadd.f32 %v1779_v5, %v2739_v48 }
 0x879   : > { %v1786_v7 = vsel %vm1103_vm14, %v2887_v6, 0.0 }
 0x87a   : > { %1787 = vadd.xlane.f32.xlu1 %v1786_v7 }
 0x896   : > { %v1781_v8 = vpop.f32.mrf.mxu2 }
 0x897   : > { %v1782_v9 = vadd.f32 %v2323_v22, %v1781_v8 }
 0x899   : > { %v2892_v10 = vadd.f32 %v1782_v9, %v2741_v49 }
 0x89b   : > { %v1789_v11 = vsel %vm1103_vm14, %v2892_v10, 0.0 }
 0x89c   : > { %1790 = vadd.xlane.f32.xlu2 %v1789_v11 }
 0x8ed   : > { %v1788_v12 = vpop.xlane.xlu1 %1787 }
 0x8ee   : > { %v1792_v48 = vmul.f32 %v1788_v12, %v2747_v58 }
 0x8f0   : > { %v1794_v13 = vsub.f32 %v2887_v6, %v1792_v48 }
 0x8f2   : > { %v1796_v14 = vmul.f32 %v1794_v13, %v1794_v13 }
 0x8f4   : > { %v1798_v15 = vsel %vm1103_vm14, %v1796_v14, 0.0 }
 0x8f5   : > { %1799 = vadd.xlane.f32.xlu0 %v1798_v15 }
 0x90f   : > { %v1791_v16 = vpop.xlane.xlu2 %1790 }
 0x910   : > { %v1793_v49 = vmul.f32 %v1791_v16, %v2747_v58 }
 0x912   : > { %v1795_v17 = vsub.f32 %v2892_v10, %v1793_v49 }
 0x914   : > { %v1797_v18 = vmul.f32 %v1795_v17, %v1795_v17 }
 0x916   : > { %v1801_v19 = vsel %vm1103_vm14, %v1797_v18, 0.0 }
 0x917   : > { %1802 = vadd.xlane.f32.xlu1 %v1801_v19 }
 0x968   : > { %v1800_v24 = vpop.xlane.xlu0 %1799 }
 0x969   : > { %v1804_v41 = vmul.f32 %v1800_v24, %v2747_v58 }
 0x96b   : > { %v1806_v25 = vadd.f32 1e-05, %v1804_v41 }
 0x96d   : > { %2366 = vrsqrt.f32 %v1806_v25  ;;  %vm1814_vm11 = vweird.f32 %v1806_v25 }
 0x973   : > { %v2367_v26 = vpop.eup %2366 }
 0x974   : > { %v1809_v27 = vmul.f32 %v2367_v26, %v1806_v25  ;;  %vm1815_vm10 = vweird.f32 %v2367_v26 }
 0x975   : > { %vm1816_vm12 = vmor %vm1814_vm11, %vm1815_vm10 }
 0x976   : > { %v1810_v28 = vmul.f32 %v2367_v26, %v1809_v27 }
 0x978   : > { %v1811_v29 = vmul.f32 0.5, %v1810_v28 }
 0x97a   : > { %v1812_v30 = vsub.f32 1.5, %v1811_v29 }
 0x97c   : > { %v1813_v31 = vmul.f32 %v2367_v26, %v1812_v30 }
 0x97e   : > { %v1817_v33 = vsel %vm1816_vm12, %v2367_v26, %v1813_v31 }
 0x97f   : > { %v1828_v34 = vmul.f32 %v1817_v33, %v1794_v13  ;;  %v2327_v33 = vld [vmem:[%s3037_s25] ss:$0 sm:$0xff]  ;;  %s3040_s25 = sld [smem:[#allocation17_spill]] (!%p2263_p5) }
 0x981   : > { %v1833_v36 = vmul.f32 %v2324_v32, %v1828_v34 }
 0x983   : > { %v1838_v37 = vadd.f32 %v2325_v35, %v1833_v36 }
 0x985   : > { %2257 = vmatmul.msk.f32.vlgmr.msrb.gmra.mxu0 %vm1103_vm14, %v1838_v37 }
 0x98a   : > { %v1803_v38 = vpop.xlane.xlu1 %1802 }
 0x98b   : > { %v1805_v40 = vmul.f32 %v1803_v38, %v2747_v58 }
 0x98d   : > { %v1807_v42 = vadd.f32 1e-05, %v1805_v40 }
 0x98f   : > { %2368 = vrsqrt.f32 %v1807_v42  ;;  %vm1824_vm15 = vweird.f32 %v1807_v42 }
 0x995   : > { %v2369_v43 = vpop.eup %2368 }
 0x996   : > { %v1819_v44 = vmul.f32 %v2369_v43, %v1807_v42  ;;  %vm1825_vm13 = vweird.f32 %v2369_v43 }
 0x997   : > { %vm1826_vm0 = vmor %vm1824_vm15, %vm1825_vm13 }
 0x998   : > { %v1820_v45 = vmul.f32 %v2369_v43, %v1819_v44 }
 0x99a   : > { %v1821_v46 = vmul.f32 0.5, %v1820_v45 }
 0x99c   : > { %v1822_v47 = vsub.f32 1.5, %v1821_v46 }
 0x99e   : > { %v1823_v50 = vmul.f32 %v2369_v43, %v1822_v47 }
 0x9a0   : > { %v1827_v51 = vsel %vm1826_vm0, %v2369_v43, %v1823_v50 }
 0x9a1   : > { %v1829_v52 = vmul.f32 %v1827_v51, %v1795_v17 }
 0x9a3   : > { %v1834_v53 = vmul.f32 %v2324_v32, %v1829_v52 }
 0x9a5   : > { %v1839_v54 = vadd.f32 %v2325_v35, %v1834_v53 }
 0x9a7   : > { %2258 = vmatmul.msk.f32.gmra.mxu0 %vm1103_vm14, %v1839_v54 }
 0xa02   : > { %v1866_v63 = vpop.f32.mrf.mxu0 }
 0xa03   : > { %v1867_v1 = vadd.f32 %v2326_v61, %v1866_v63 }
 0xa05   : > { %v2259_v3 = vmul.f32 -1.702, %v1867_v1 }
 0xa07   : > { %v1876_v22 = vmul.f32 1.442695, %v2259_v3 }
 0xa09   : > { %2370 = vpow2.f32 %v1876_v22 }
 0xa0f   : > { %v2371_v4 = vpop.eup %2370 }
 0xa10   : > { %v1880_v5 = vadd.f32 1.0, %v2371_v4 }
 0xa12   : > { %2372 = vrcp.f32 %v1880_v5  ;;  %v1893_v11 = vand.u32 2147483648, %v1880_v5  ;;  %v1891_v48 = vand.u32 2147483647, %v1880_v5  ;;  %vm1887_vm2 = vweird.f32 %v1880_v5 }
 0xa14   : > { %v1894_v14 = vor.u32 1.1754944e-38, %v1893_v11  ;;  %vm1892_vm4 = vcmp.eq.f32.partialorder %v1891_v48, 8.507059e+37 }
 0xa18   : > { %v2373_v7 = vpop.eup %2372 }
 0xa19   : > { %v1883_v8 = vmul.f32 %v2373_v7, %v1880_v5  ;;  %vm1888_vm1 = vweird.f32 %v2373_v7 }
 0xa1a   : > { %vm1889_vm3 = vmor %vm1887_vm2, %vm1888_vm1 }
 0xa1b   : > { %v1884_v9 = vsub.f32 1.0, %v1883_v8 }
 0xa1d   : > { %v1885_v12 = vmul.f32 %v2373_v7, %v1884_v9 }
 0xa1f   : > { %v1886_v13 = vadd.f32 %v2373_v7, %v1885_v12 }
 0xa21   : > { %v1890_v15 = vsel %vm1889_vm3, %v2373_v7, %v1886_v13 }
 0xa22   : > { %v1895_v16 = vsel %vm1892_vm4, %v1894_v14, %v1890_v15 }
 0xa23   : > { %v1912_v49 = vmul.f32 %v1895_v16, %v1867_v1 }
 0xa24   : > { %v1869_v17 = vpop.f32.mrf.mxu0 }
 0xa25   : > { %v1870_v18 = vadd.f32 %v2326_v61, %v1869_v17  ;;  %2261 = vmatmul.msk.f32.vlgmr.msra.gmra.mxu3 %vm1917_vm5, %v1912_v49 }
 0xa27   : > { %v2260_v19 = vmul.f32 -1.702, %v1870_v18 }
 0xa29   : > { %v1878_v20 = vmul.f32 1.442695, %v2260_v19 }
 0xa2b   : > { %2374 = vpow2.f32 %v1878_v20 }
 0xa31   : > { %v2375_v39 = vpop.eup %2374 }
 0xa32   : > { %v1881_v21 = vadd.f32 1.0, %v2375_v39 }
 0xa34   : > { %2376 = vrcp.f32 %v1881_v21  ;;  %v1908_v25 = vand.u32 2147483648, %v1881_v21  ;;  %v1906_v27 = vand.u32 2147483647, %v1881_v21  ;;  %vm1902_vm7 = vweird.f32 %v1881_v21 }
 0xa36   : > { %v1909_v29 = vor.u32 1.1754944e-38, %v1908_v25  ;;  %vm1907_vm10 = vcmp.eq.f32.partialorder %v1906_v27, 8.507059e+37 }
 0xa3a   : > { %v2377_v23 = vpop.eup %2376 }
 0xa3b   : > { %v1898_v24 = vmul.f32 %v2377_v23, %v1881_v21  ;;  %vm1903_vm6 = vweird.f32 %v2377_v23 }
 0xa3c   : > { %vm1904_vm9 = vmor %vm1902_vm7, %vm1903_vm6 }
 0xa3d   : > { %v1899_v41 = vsub.f32 1.0, %v1898_v24 }
 0xa3f   : > { %v1900_v26 = vmul.f32 %v2377_v23, %v1899_v41 }
 0xa41   : > { %v1901_v28 = vadd.f32 %v2377_v23, %v1900_v26 }
 0xa43   : > { %v1905_v30 = vsel %vm1904_vm9, %v2377_v23, %v1901_v28 }
 0xa44   : > { %v1910_v31 = vsel %vm1907_vm10, %v1909_v29, %v1905_v30 }
 0xa45   : > { %v1913_v32 = vmul.f32 %v1910_v31, %v1870_v18 }
 0xa47   : > { %2262 = vmatmul.msk.f32.gmra.mxu3 %vm1917_vm5, %v1913_v32 }
 0xaa8   : > { %v1941_v34 = vpop.f32.mrf.mxu3 }
 0xaa9   : > { %v1942_v35 = vadd.f32 %v2327_v33, %v1941_v34 }
 0xaab   : > { %v1947_v36 = vadd.f32 %v1942_v35, %v2887_v6 }
 0xaad   : > { %1949 = vst.msk [vmem:[#allocation2] sm:$0xff] %vm1103_vm14, %v1947_v36 }
 0xaca   : > { %v1944_v37 = vpop.f32.mrf.mxu3 }
 0xacb   : > { %v1945_v38 = vadd.f32 %v2327_v33, %v1944_v37  ;;  %1954 = sbr.rel (%p2263_p5) target bundleno = 3433 (0xd69), region = 116 }
 0xacd   : > { %v1948_v40 = vadd.f32 %v1945_v38, %v2892_v10 }
 0xacf   : > { %1950 = vst.msk [vmem:[#allocation2 + $0x8] sm:$0xff] %vm1103_vm14, %v1948_v40 }
 0xad0   : > { %1973 = vmatpush.msra.mxu0 %v1948_v40  ;;  %v1955_v42 = vld [vmem:[%s2997_s18] sm:$0x3]  ;;  %vm1985_vm11 = vcmask 254976   ;;  %v1984_v50 = vld [vmem:[%s3038_s4 + $0x18] sm:$0xff]  ;;  %v1983_v51 = vld [vmem:[%s3038_s4 + $0x10] sm:$0xff]  ;;  %vm2040_vm15 = vcmask 123904  }
 0xad1   : > { %2031 = vmatpush.msra.mxu1 %v1984_v50  ;;  %v1982_v52 = vld [vmem:[%s3038_s4 + $0x8] sm:$0xff]  ;;  %v1981_v53 = vld [vmem:[%s3038_s4] sm:$0xff] }
 0xad2   : > { %1974 = vmatpush.msra.mxu0 %v1947_v36  ;;  %v2378_v0 = vld [vmem:[%s3039_s2] ss:$0 sm:$0xff] }
 0xad3   : > { %2264 = vmatmul.msk.f32.vlgmr.msra.gmra.mxu0 %vm1746_vm8, %v1955_v42  ;;  %2032 = vmatpush.msra.mxu1 %v1983_v51 }
 0xad5   : > { %2033 = vmatpush.msra.mxu1 %v1982_v52 }
 0xad7   : > { %2034 = vmatpush.msra.mxu1 %v1981_v53 }
 0xb50   : > { %v1976_v6 = vpop.f32.mrf.mxu0 }
 0xb51   : > { %v1986_v43 = vsel %vm1985_vm11, %v1976_v6, 0.0 }
 0xb52   : > { %1987 = vadd.xlane.f32.xlu0 %v1986_v43 }
 0xbc5   : > { %v1988_v44 = vpop.xlane.xlu0 %1987 }
 0xbc6   : > { %v1989_v10 = vmul.f32 %v1988_v44, %v2747_v58 }
 0xbc8   : > { %v1990_v45 = vsub.f32 %v1976_v6, %v1989_v10 }
 0xbca   : > { %v1991_v46 = vmul.f32 %v1990_v45, %v1990_v45 }
 0xbcc   : > { %v1992_v47 = vsel %vm1985_vm11, %v1991_v46, 0.0 }
 0xbcd   : > { %1993 = vadd.xlane.f32.xlu0 %v1992_v47 }
 0xc40   : > { %v1994_v54 = vpop.xlane.xlu0 %1993 }
 0xc41   : > { %v1995_v55 = vmul.f32 %v1994_v54, %v2747_v58  ;;  %v2379_v58 = vld [vmem:[%s3040_s25] ss:$0 sm:$0xff] }
 0xc43   : > { %v1996_v56 = vadd.f32 1e-05, %v1995_v55 }
 0xc45   : > { %2380 = vrsqrt.f32 %v1996_v56  ;;  %vm2003_vm12 = vweird.f32 %v1996_v56 }
 0xc4b   : > { %v2381_v57 = vpop.eup %2380 }
 0xc4c   : > { %v1998_v59 = vmul.f32 %v2381_v57, %v1996_v56  ;;  %vm2004_vm8 = vweird.f32 %v2381_v57 }
 0xc4d   : > { %vm2005_vm13 = vmor %vm2003_vm12, %vm2004_vm8 }
 0xc4e   : > { %v1999_v60 = vmul.f32 %v2381_v57, %v1998_v59 }
 0xc50   : > { %v2000_v61 = vmul.f32 0.5, %v1999_v60 }
 0xc52   : > { %v2001_v62 = vsub.f32 1.5, %v2000_v61 }
 0xc54   : > { %v2002_v63 = vmul.f32 %v2381_v57, %v2001_v62 }
 0xc56   : > { %v2006_v1 = vsel %vm2005_vm13, %v2381_v57, %v2002_v63 }
 0xc57   : > { %v2007_v2 = vmul.f32 %v2006_v1, %v1990_v45 }
 0xc59   : > { %v2011_v3 = vmul.f32 %v2378_v0, %v2007_v2 }
 0xc5b   : > { %v2015_v22 = vadd.f32 %v2379_v58, %v2011_v3 }
 0xc5d   : > { %2265 = vmatmul.msk.f32.vlgmr.msra.gmra.mxu1 %vm1103_vm14, %v2015_v22 }
 0xcda   : > { %v2036_v4 = vpop.f32.mrf.mxu1 }
 0xcdb   : > { %v2039_v5 = vmul.f32 %v2036_v4, %v2036_v4 }
 0xcdd   : > { %v2041_v7 = vsel %vm2040_vm15, %v2039_v5, 0.0 }
 0xcde   : > { %2042 = vadd.xlane.f32.xlu1 %v2041_v7 }
 0xd51   : > { %v2043_v8 = vpop.xlane.xlu1 %2042 }
 0xd52   : > { %v2044_v9 = vmax.f32 %v2043_v8, 1e-24 }
 0xd54   : > { %2382 = vrsqrt.f32 %v2044_v9  ;;  %vm2051_vm1 = vweird.f32 %v2044_v9 }
 0xd5a   : > { %v2383_v11 = vpop.eup %2382 }
 0xd5b   : > { %v2046_v12 = vmul.f32 %v2383_v11, %v2044_v9  ;;  %vm2052_vm0 = vweird.f32 %v2383_v11 }
 0xd5c   : > { %vm2053_vm2 = vmor %vm2051_vm1, %vm2052_vm0 }
 0xd5d   : > { %v2047_v48 = vmul.f32 %v2383_v11, %v2046_v12 }
 0xd5f   : > { %v2048_v13 = vmul.f32 0.5, %v2047_v48 }
 0xd61   : > { %v2049_v14 = vsub.f32 1.5, %v2048_v13 }
 0xd63   : > { %v2050_v15 = vmul.f32 %v2383_v11, %v2049_v14 }
 0xd65   : > { %v2054_v16 = vsel %vm2053_vm2, %v2383_v11, %v2050_v15 }
 0xd66   : > { %v2055_v49 = vmul.f32 %v2054_v16, %v2036_v4 }
 0xd68   : > { %2056 = vst.msk [vmem:[#allocation3] sm:$0x3] %vm2040_vm15, %v2055_v49 }
 0xd69 PF: > { %p2278_p6 = scmp.eq.s32.totalorder %s2564_s28, 1  ;;  %s2442_s5 = smov [#allocation3]  }
 0xd6a   : > { %s2063_s30 = sshll.u32 %s2442_s5, 4  ;;  %s3041_s22 = sld [smem:[#allocation19_spill]]  ;;  %s2064_s30 = int_to_ptr.vmem [resolvable:$true] %s2063_s30 }
 0xd70   : > { %s2065_s21 = sshll.u32 %s3041_s22, 4  ;;  %s2066_s21 = int_to_ptr.hbm [resolvable:$true] %s2065_s21 }
 0xd71   : > { %2275 = dma.vmem_to_hbm [thread:$0]  (%p2278_p6), %s2064_s30, 32, %s2066_s21, [#allocation4]  }
 0xd72   : > { %2417 = dma.done.wait (%p2278_p6), [#allocation4], 32  }
 0xd73   : > { %2419 = vsyncadd (%p2278_p6), [#allocation4], 4294967264 }
 0xd74 PF: > { %s3042_s3 = sld [smem:[#allocation6_spill]] }
 0xd7a   : > { %s33_s3 = sadd.s32 1, %s3042_s3  }
 0xd7b   : > { %p30_p7 = scmp.ge.s32.totalorder %s33_s3, 4  }
 0xd7d   :  { %32 = sbr.rel (!%p30_p7) target bundleno = 15 (0xf), region = 177 }
 0xd82   :  { %2079 = vsyncpa [#allocation4], 1 }
 0xd83   :  { %2081 = vsyncpa [#allocation4 + $0x1], 1 }

</bundles_post_ra>
